<compile_context>
chip_gen: v6e
topology: v6e:2x2x1
jax: 0.10.0
libtpu: 0.0.40
codegen_flags: <defaults>
</compile_context>

<pallas_src>
import math

import numpy as np
import jax
import jax.numpy as jnp
from jax.experimental import pallas as pl
from jax.experimental.pallas import tpu as pltpu

CFG = dict(in_chans=3, img_size=16, patch_size=4, embed_dim=32,
           depths=(2, 2), num_heads=(2, 4), window_size=2, mlp_ratio=4)

_LN_EPS = 1e-5


def _round_up(n, m):
    return ((n + m - 1) // m) * m


# ----------------------------- in-kernel helpers ---------------------------

def _ln(x, g, b, eps=_LN_EPS):
    """LayerNorm over the last axis of an f32 value. g, b are (1, C)."""
    mu = jnp.mean(x, axis=-1, keepdims=True)
    xc = x - mu
    var = jnp.mean(xc * xc, axis=-1, keepdims=True)
    return xc * jax.lax.rsqrt(var + eps) * g + b


def _gelu_erf(x):
    """Exact (erf-based) GELU via Abramowitz-Stegun 7.1.26 (|err| <= 1.5e-7):
    only exp/mul/add/where, guaranteed to lower on Mosaic."""
    z = x * (1.0 / math.sqrt(2.0))
    az = jnp.abs(z)
    t = 1.0 / (1.0 + 0.3275911 * az)
    poly = t * (0.254829592 + t * (-0.284496736 +
                t * (1.421413741 + t * (-1.453152027 + t * 1.061405429))))
    erf_abs = 1.0 - poly * jnp.exp(-az * az)
    erf = jnp.where(z >= 0, erf_abs, -erf_abs)
    return 0.5 * x * (1.0 + erf)


def _swin_block(x, nxt, heads):
    """One Swin block on a batch-folded (B*L, dim) f32 slab.
    Window structure / cyclic shift / rel-pos bias / batch block-diagonality are
    all inside the precomputed additive bias (heads, B*L, B*L)."""
    BL, dim = x.shape
    hd = dim // heads
    scale = float(hd) ** -0.5

    ln1g = nxt(); ln1b = nxt()
    wqkv = nxt()                      # bf16 (dim, round_up(3*dim,128))
    bqkv = nxt()                      # f32  (1,   round_up(3*dim,128))
    bias = nxt()                      # f32  (heads, BL, BL)
    wo = nxt()                        # bf16 (dim, dim)
    bo = nxt()
    ln2g = nxt(); ln2b = nxt()
    w1 = nxt(); b1 = nxt()            # bf16 / f32
    w2 = nxt(); b2 = nxt()            # bf16 / f32

    # ---- attention half: LN1 -> fused QKV (bf16 MXU) -> masked attention ----
    h = _ln(x, ln1g, ln1b)
    qkv = jnp.dot(h.astype(jnp.bfloat16), wqkv,
                  preferred_element_type=jnp.float32) + bqkv

    attn = jnp.zeros((BL, dim), jnp.float32)
    for hh in range(heads):                                  # static 2 / 4 iters
        q = qkv[:, hh * hd:(hh + 1) * hd] * scale
        k = qkv[:, dim + hh * hd:dim + (hh + 1) * hd]
        v = qkv[:, 2 * dim + hh * hd:2 * dim + (hh + 1) * hd]
        s = jax.lax.dot_general(q, k, (((1,), (1,)), ((), ())),
                                preferred_element_type=jnp.float32)
        s = s + bias[hh]
        s = s - jnp.max(s, axis=-1, keepdims=True)
        p = jnp.exp(s)
        p = p * pl.reciprocal(jnp.sum(p, axis=-1, keepdims=True), approx=True)
        ctx = jnp.dot(p, v, preferred_element_type=jnp.float32)     # (BL, hd)
        # concat-free output projection: sum_h ctx_h @ Wo[h*hd:(h+1)*hd, :]
        attn = attn + jnp.dot(ctx.astype(jnp.bfloat16),
                              wo[hh * hd:(hh + 1) * hd, :],
                              preferred_element_type=jnp.float32)
    x = x + attn + bo

    # ---- MLP half: LN2 -> W1 (bf16) -> exact GELU -> W2 (bf16) ----
    h2 = _ln(x, ln2g, ln2b)
    h2 = jnp.dot(h2.astype(jnp.bfloat16), w1,
                 preferred_element_type=jnp.float32) + b1
    h2 = _gelu_erf(h2)
    h2 = jnp.dot(h2.astype(jnp.bfloat16), w2,
                 preferred_element_type=jnp.float32) + b2
    return x + h2


# ------------------------------ the megakernel ------------------------------

def _make_mega_kernel(meta):
    depths = meta['depths']
    heads_per_stage = meta['heads']
    n_stages = len(depths)

    def kernel(*refs):
        o_ref = refs[-1]
        it = iter(refs[:-1])
        nxt = lambda: next(it)[...]

        # ---- patch embedding: bf16 matmul + bias + LN ----
        xp = nxt()                                            # (B*L0, Cin*p*p) f32
        w = nxt(); b = nxt(); g = nxt(); beta = nxt()
        h = jnp.dot(xp.astype(jnp.bfloat16), w,
                    preferred_element_type=jnp.float32) + b
        h = _ln(h, g, beta)                                   # (B*L0, dim0)

        for si in range(n_stages):
            heads = heads_per_stage[si]
            for _ in range(depths[si]):
                h = _swin_block(h, nxt, heads)
            if si < n_stages - 1:
                # ---- patch merging folded in-kernel: 0/1 selection matmuls
                #      (exact f32 data movement) + lane concat + LN + linear ----
                sel = nxt()                                   # (4, BL_out, BL_in) f32
                gm = nxt(); bm = nxt()
                wm = nxt()                                    # bf16 (4*dim, 2*dim)
                parts = [jnp.dot(sel[q], h, preferred_element_type=jnp.float32)
                         for q in range(sel.shape[0])]
                merged = jnp.concatenate(parts, axis=1)       # (BL_out, 4*dim)
                merged = _ln(merged, gm, bm)
                h = jnp.dot(merged.astype(jnp.bfloat16), wm,
                            preferred_element_type=jnp.float32)

        gf = nxt(); bf = nxt()
        # Final store is a single tiny (8, 64) slab; lane padding on this one
        # store is negligible, so no layout gymnastics here.
        o_ref[...] = _ln(h, gf, bf).astype(o_ref.dtype)

    return kernel


# ----------------------- precomputed attention bias ------------------------

def build_attention_bias(rel_table, H, W, ws, shift, heads, B):
    """Combined additive bias (heads, B*L, B*L) over all batch-folded tokens:
    rel-pos bias + shifted-window (-100) mask + window-locality (-1e9) mask +
    batch block-diagonality (-1e9 across images).  Out-of-window/batch softmax
    terms underflow to exactly 0 after max-subtraction, so the folded full-token
    attention is numerically exact w.r.t. per-window attention."""
    L = H * W
    ii, jj = np.meshgrid(np.arange(H), np.arange(W), indexing='ij')
    ii, jj = ii.reshape(-1), jj.reshape(-1)
    si, sj = (ii - shift) % H, (jj - shift) % W            # coords after cyclic roll
    win = (si // ws) * (W // ws) + (sj // ws)
    same_win = win[:, None] == win[None, :]
    locality = np.where(same_win, 0.0, -1e9).astype(np.float32)

    if shift > 0:                                          # HF/Swin shift mask (-100)
        def region(s, size):
            r = np.zeros_like(s)
            r = np.where(s >= size - ws, 1, r)
            r = np.where(s >= size - shift, 2, r)
            return r
        lab = region(si, H) * 3 + region(sj, W)
        locality = locality + np.where(lab[:, None] == lab[None, :],
                                       0.0, -100.0).astype(np.float32)

    # every row must keep at least one in-window key (its diagonal) -> no 0/0
    assert np.all(locality.max(axis=-1) > -1e8), "attention row fully masked"

    ph, pw = si % ws, sj % ws                              # within-window coords
    rel_idx = ((ph[:, None] - ph[None, :] + ws - 1) * (2 * ws - 1)
               + (pw[:, None] - pw[None, :] + ws - 1))     # (L, L)
    per = rel_table[rel_idx.reshape(-1)].reshape(L, L, heads)
    per = jnp.transpose(per, (2, 0, 1)) + jnp.asarray(locality)[None]   # (heads,L,L)

    big = jnp.full((heads, B * L, B * L), -1e9, jnp.float32)
    for b in range(B):
        big = big.at[:, b * L:(b + 1) * L, b * L:(b + 1) * L].set(per)
    return big


def build_merge_select(B, Hs, Ws):
    """0/1 selection matrices (4, B*Ho*Wo, B*Hs*Ws) implementing the HF Swin
    patch-merging gather (x0=[0::2,0::2], x1=[1::2,0::2], x2=[0::2,1::2],
    x3=[1::2,1::2]) as matmuls over the batch-folded token axis."""
    Ho, Wo = Hs // 2, Ws // 2
    sel = np.zeros((4, B * Ho * Wo, B * Hs * Ws), np.float32)
    offs = [(0, 0), (1, 0), (0, 1), (1, 1)]                # (hi, wi) per quadrant
    for q, (hi, wi) in enumerate(offs):
        for b in range(B):
            for ho in range(Ho):
                for wo in range(Wo):
                    r_out = b * Ho * Wo + ho * Wo + wo
                    r_in = b * Hs * Ws + (2 * ho + hi) * Ws + (2 * wo + wi)
                    sel[q, r_out, r_in] = 1.0
    return jnp.asarray(sel)


# ------------------------------- forward pass ------------------------------

def swin_forward(prep, x, cfg):
    B, Cin, H, W = x.shape
    pch, ed = cfg['patch_size'], cfg['embed_dim']
    Hg, Wg = H // pch, W // pch

    # Patch extraction: one XLA reshape/transpose on the raw NCHW input; the rest
    # of the forward is a single fused Pallas call.
    xp = x.reshape(B, Cin, Hg, pch, Wg, pch)
    xp = jnp.transpose(xp, (0, 2, 4, 1, 3, 5)).reshape(B * Hg * Wg, Cin * pch * pch)

    n_stages = len(cfg['depths'])
    final_dim = ed * 2 ** (n_stages - 1)
    final_len = (Hg // 2 ** (n_stages - 1)) * (Wg // 2 ** (n_stages - 1))

    out = pl.pallas_call(
        _make_mega_kernel(prep['meta']),
        out_shape=jax.ShapeDtypeStruct((B * final_len, final_dim), jnp.float32),
        # advisory cost hint: ~4 MFLOP, ~20k transcendentals, ~320 KB traffic
        cost_estimate=pl.CostEstimate(flops=4_000_000, transcendentals=20_000,
                                      bytes_accessed=320_000),
        compiler_params=pltpu.CompilerParams(vmem_limit_bytes=32 << 20),
    )(xp, *prep['flat'])
    return out.reshape(B, final_len, final_dim)             # last_hidden_state


# ------------------------------- parameters --------------------------------

class KeyGen:
    def __init__(self, key):
        self.key = key

    def __call__(self):
        self.key, sub = jax.random.split(self.key)
        return sub


def _trunc_normal(key, shape, std=0.02):
    return (std * jax.random.truncated_normal(key, -2.0, 2.0, shape)).astype(jnp.float32)


def init_block(kg, dim, heads, mlp_dim, ws):
    return dict(
        ln1_g=jnp.ones((dim,), jnp.float32), ln1_b=jnp.zeros((dim,), jnp.float32),
        wq=_trunc_normal(kg(), (dim, dim)), bq=jnp.zeros((dim,), jnp.float32),
        wk=_trunc_normal(kg(), (dim, dim)), bk=jnp.zeros((dim,), jnp.float32),
        wv=_trunc_normal(kg(), (dim, dim)), bv=jnp.zeros((dim,), jnp.float32),
        rel_table=_trunc_normal(kg(), ((2 * ws - 1) ** 2, heads)),
        wo=_trunc_normal(kg(), (dim, dim)), bo=jnp.zeros((dim,), jnp.float32),
        ln2_g=jnp.ones((dim,), jnp.float32), ln2_b=jnp.zeros((dim,), jnp.float32),
        w1=_trunc_normal(kg(), (dim, mlp_dim)), b1=jnp.zeros((mlp_dim,), jnp.float32),
        w2=_trunc_normal(kg(), (mlp_dim, dim)), b2=jnp.zeros((dim,), jnp.float32),
    )


def init_params(key, cfg):
    kg = KeyGen(key)
    ed, Cin, pch = cfg['embed_dim'], cfg['in_chans'], cfg['patch_size']
    params = {
        'patch_embed': dict(
            w=_trunc_normal(kg(), (ed, Cin, pch, pch)),
            b=jnp.zeros((ed,), jnp.float32),
            ln_g=jnp.ones((ed,), jnp.float32),
            ln_b=jnp.zeros((ed,), jnp.float32)),
        'stages': [],
    }
    dim = ed
    for si, depth in enumerate(cfg['depths']):
        heads = cfg['num_heads'][si]
        blocks = [init_block(kg, dim, heads, cfg['mlp_ratio'] * dim, cfg['window_size'])
                  for _ in range(depth)]
        stage = {'blocks': blocks}
        if si < len(cfg['depths']) - 1:
            stage['downsample'] = dict(
                ln_g=jnp.ones((4 * dim,), jnp.float32),
                ln_b=jnp.zeros((4 * dim,), jnp.float32),
                w=_trunc_normal(kg(), (4 * dim, 2 * dim)))
            dim *= 2
        params['stages'].append(stage)
    params['final_ln_g'] = jnp.ones((dim,), jnp.float32)
    params['final_ln_b'] = jnp.zeros((dim,), jnp.float32)
    return params


def preprocess_params(params, cfg, B):
    """One-time prep (outside jit): flat, kernel-ordered list of weight blocks.
    Matmul weights cast to bf16; fused+padded QKV; (1, C) LN/bias vectors;
    precomputed batch-block-diagonal attention biases; merge selection matrices."""
    bf16 = jnp.bfloat16
    ed, Cin, pch = cfg['embed_dim'], cfg['in_chans'], cfg['patch_size']
    Hs = Ws = cfg['img_size'] // pch
    pe = params['patch_embed']
    flat = [pe['w'].reshape(ed, Cin * pch * pch).T.astype(bf16),
            pe['b'].reshape(1, ed),
            pe['ln_g'].reshape(1, ed),
            pe['ln_b'].reshape(1, ed)]
    dim = ed
    for si, depth in enumerate(cfg['depths']):
        heads = cfg['num_heads'][si]
        ws = min(cfg['window_size'], Hs, Ws)
        for bi in range(depth):
            shift = 0 if (bi % 2 == 0 or min(Hs, Ws) <= cfg['window_size']) \
                else cfg['window_size'] // 2
            p = params['stages'][si]['blocks'][bi]
            wqkv = jnp.concatenate([p['wq'], p['wk'], p['wv']], axis=1)
            bqkv = jnp.concatenate([p['bq'], p['bk'], p['bv']]).reshape(1, 3 * dim)
            npad = _round_up(3 * dim, 128)                 # lane-dense QKV columns
            wqkv = jnp.pad(wqkv, ((0, 0), (0, npad - 3 * dim)))
            bqkv = jnp.pad(bqkv, ((0, 0), (0, npad - 3 * dim)))
            flat += [p['ln1_g'].reshape(1, dim), p['ln1_b'].reshape(1, dim),
                     wqkv.astype(bf16), bqkv,
                     build_attention_bias(p['rel_table'], Hs, Ws, ws, shift, heads, B),
                     p['wo'].astype(bf16), p['bo'].reshape(1, dim),
                     p['ln2_g'].reshape(1, dim), p['ln2_b'].reshape(1, dim),
                     p['w1'].astype(bf16), p['b1'].reshape(1, -1),
                     p['w2'].astype(bf16), p['b2'].reshape(1, dim)]
        if si < len(cfg['depths']) - 1:
            d = params['stages'][si]['downsample']
            flat += [build_merge_select(B, Hs, Ws),
                     d['ln_g'].reshape(1, 4 * dim), d['ln_b'].reshape(1, 4 * dim),
                     d['w'].astype(bf16)]
            Hs, Ws, dim = Hs // 2, Ws // 2, dim * 2
    flat += [params['final_ln_g'].reshape(1, dim), params['final_ln_b'].reshape(1, dim)]
    meta = dict(B=B, depths=tuple(cfg['depths']), heads=tuple(cfg['num_heads']))
    return dict(flat=flat, meta=meta)


def _rt_bf16(w):
    return w.astype(jnp.bfloat16).astype(jnp.float32)


def roundtrip_matmul_weights(params):
    """Reference sees the same bf16-rounded matmul weights the kernel uses, so the
    comparison isolates the kernel math (activation casts / approx recip / erf)."""
    out = {'patch_embed': dict(params['patch_embed'], w=_rt_bf16(params['patch_embed']['w'])),
           'stages': [],
           'final_ln_g': params['final_ln_g'], 'final_ln_b': params['final_ln_b']}
    for st in params['stages']:
        blocks = [dict(b, wq=_rt_bf16(b['wq']), wk=_rt_bf16(b['wk']), wv=_rt_bf16(b['wv']),
                       wo=_rt_bf16(b['wo']), w1=_rt_bf16(b['w1']), w2=_rt_bf16(b['w2']))
                  for b in st['blocks']]
        new_st = {'blocks': blocks}
        if 'downsample' in st:
            new_st['downsample'] = dict(st['downsample'], w=_rt_bf16(st['downsample']['w']))
        out['stages'].append(new_st)
    return out


# ----------------------- pure-JAX reference (windowed) ----------------------

def window_partition(x, ws):
    B, H, W, C = x.shape
    x = x.reshape(B, H // ws, ws, W // ws, ws, C)
    return x.transpose(0, 1, 3, 2, 4, 5).reshape(-1, ws * ws, C)


def window_reverse(wins, ws, H, W, B):
    C = wins.shape[-1]
    x = wins.reshape(B, H // ws, W // ws, ws, ws, C)
    return x.transpose(0, 1, 3, 2, 4, 5).reshape(B, H, W, C)


def relative_position_index(ws):
    coords = np.stack(np.meshgrid(np.arange(ws), np.arange(ws), indexing='ij'))
    cf = coords.reshape(2, -1)
    rel = (cf[:, :, None] - cf[:, None, :]).transpose(1, 2, 0)
    rel[:, :, 0] += ws - 1
    rel[:, :, 1] += ws - 1
    rel[:, :, 0] *= 2 * ws - 1
    return rel.sum(-1)


def attention_mask(H, W, ws, shift):
    if shift == 0:
        return None
    img = np.zeros((1, H, W, 1), np.float32)
    cnt = 0
    for hs in (slice(0, -ws), slice(-ws, -shift), slice(-shift, None)):
        for wc in (slice(0, -ws), slice(-ws, -shift), slice(-shift, None)):
            img[:, hs, wc, :] = cnt
            cnt += 1
    mw = img.reshape(1, H // ws, ws, W // ws, ws, 1)
    mw = mw.transpose(0, 1, 3, 2, 4, 5).reshape(-1, ws * ws)
    am = mw[:, None, :] - mw[:, :, None]
    return jnp.asarray(np.where(am != 0, -100.0, 0.0).astype(np.float32))


def _ln_ref(x, g, b, eps=_LN_EPS):
    mu = jnp.mean(x, -1, keepdims=True)
    var = jnp.mean((x - mu) ** 2, -1, keepdims=True)
    return (x - mu) * jax.lax.rsqrt(var + eps) * g + b


def _block_ref(x, p, B, H, W, dim, heads, ws, shift):
    L, hd = H * W, dim // heads
    scale = hd ** -0.5
    shortcut = x
    h = _ln_ref(x, p['ln1_g'], p['ln1_b']).reshape(B, H, W, dim)
    if shift > 0:
        h = jnp.roll(h, (-shift, -shift), axis=(1, 2))
    wins = window_partition(h, ws)
    nWB, wl, _ = wins.shape
    flat = wins.reshape(nWB * wl, dim)
    q = flat @ p['wq'] + p['bq']
    k = flat @ p['wk'] + p['bk']
    v = flat @ p['wv'] + p['bv']

    def sh(t):
        return t.reshape(nWB, wl, heads, hd).transpose(0, 2, 1, 3)

    qh, kh, vh = sh(q) * scale, sh(k), sh(v)
    s = jnp.einsum('bhld,bhmd->bhlm', qh, kh)
    rp = relative_position_index(ws)
    bias = p['rel_table'][rp.reshape(-1)].reshape(wl, wl, heads).transpose(2, 0, 1)
    s = s + bias[None]
    mask = attention_mask(H, W, ws, shift)
    if mask is not None:
        nW = mask.shape[0]
        s = (s.reshape(B, nW, heads, wl, wl) + mask[None, :, None]).reshape(nWB, heads, wl, wl)
    pa = jax.nn.softmax(s, axis=-1)
    ctx = jnp.einsum('bhlm,bhmd->bhld', pa, vh)
    ctx = ctx.transpose(0, 2, 1, 3).reshape(nWB * wl, dim)
    attn_out = (ctx @ p['wo'] + p['bo']).reshape(nWB, wl, dim)
    h = window_reverse(attn_out, ws, H, W, B)
    if shift > 0:
        h = jnp.roll(h, (shift, shift), axis=(1, 2))
    x = shortcut + h.reshape(B, L, dim)
    h2 = _ln_ref(x, p['ln2_g'], p['ln2_b'])
    h2 = jax.nn.gelu(h2 @ p['w1'] + p['b1'], approximate=False)
    return x + (h2 @ p['w2'] + p['b2'])


def swin_forward_reference(params, x, cfg):
    B, Cin, H, W = x.shape
    pch, ed = cfg['patch_size'], cfg['embed_dim']
    Hg, Wg = H // pch, W // pch
    xp = x.reshape(B, Cin, Hg, pch, Wg, pch)
    xp = jnp.transpose(xp, (0, 2, 4, 1, 3, 5)).reshape(B * Hg * Wg, Cin * pch * pch)
    wconv = params['patch_embed']['w'].reshape(ed, Cin * pch * pch).T
    h = _ln_ref(xp @ wconv + params['patch_embed']['b'],
                params['patch_embed']['ln_g'], params['patch_embed']['ln_b'])
    h = h.reshape(B, Hg * Wg, ed)
    dim, Hs, Ws = ed, Hg, Wg
    for si, depth in enumerate(cfg['depths']):
        heads = cfg['num_heads'][si]
        ws = min(cfg['window_size'], Hs, Ws)
        for bi in range(depth):
            shift = 0 if (bi % 2 == 0 or min(Hs, Ws) <= cfg['window_size']) \
                else cfg['window_size'] // 2
            h = _block_ref(h, params['stages'][si]['blocks'][bi],
                           B, Hs, Ws, dim, heads, ws, shift)
        if si < len(cfg['depths']) - 1:
            p = params['stages'][si]['downsample']
            h4 = h.reshape(B, Hs, Ws, dim)
            cat = jnp.concatenate([h4[:, 0::2, 0::2], h4[:, 1::2, 0::2],
                                   h4[:, 0::2, 1::2], h4[:, 1::2, 1::2]], axis=-1)
            cat = _ln_ref(cat.reshape(B * (Hs // 2) * (Ws // 2), 4 * dim),
                          p['ln_g'], p['ln_b'])
            h = (cat @ p['w']).reshape(B, (Hs // 2) * (Ws // 2), 2 * dim)
            Hs, Ws, dim = Hs // 2, Ws // 2, dim * 2
    out = _ln_ref(h.reshape(-1, dim), params['final_ln_g'], params['final_ln_b'])
    return out.reshape(B, Hs * Ws, dim)


# ---------------------------------- main ------------------------------------

if __name__ == "__main__":
    key = jax.random.PRNGKey(0)
    pkey, xkey = jax.random.split(key)
    params = init_params(pkey, CFG)
    B = 2
    prep = preprocess_params(params, CFG, B)                 # outside jit, once
    x = jax.random.normal(xkey, (B, CFG['in_chans'], CFG['img_size'], CFG['img_size']),
                          jnp.float32)                       # NCHW pixel_values

    # prep['flat'] (arrays) and prep['meta'] (static Python config) are closed over.
    fwd = jax.jit(lambda x_: swin_forward(prep, x_, CFG))
    out = jax.block_until_ready(fwd(x))

    n_stages = len(CFG['depths'])
    final_dim = CFG['embed_dim'] * 2 ** (n_stages - 1)
    final_len = (CFG['img_size'] // CFG['patch_size'] // 2 ** (n_stages - 1)) ** 2
    assert out.shape == (B, final_len, final_dim), out.shape
    assert bool(jnp.all(jnp.isfinite(out)))

    # Validate against the plain-JAX windowed reference (same bf16-rounded matmul
    # weights; remaining delta = in-kernel bf16 activation casts, approx
    # reciprocal in softmax, erf approximation).
    ref = jax.block_until_ready(
        swin_forward_reference(roundtrip_matmul_weights(params), x, CFG))
    np.testing.assert_allclose(np.asarray(out), np.asarray(ref), rtol=3e-2, atol=3e-2)
    print("KERNEL_OK")
</pallas_src>

<mosaic_0001>
module attributes {stable_mosaic.version = 11 : i64} {
  func.func @kernel(%arg0: memref<32x48xf32, #tpu.memory_space<vmem>>, %arg1: memref<48x32xbf16, #tpu.memory_space<vmem>>, %arg2: memref<1x32xf32, #tpu.memory_space<vmem>>, %arg3: memref<1x32xf32, #tpu.memory_space<vmem>>, %arg4: memref<1x32xf32, #tpu.memory_space<vmem>>, %arg5: memref<1x32xf32, #tpu.memory_space<vmem>>, %arg6: memref<1x32xf32, #tpu.memory_space<vmem>>, %arg7: memref<32x128xbf16, #tpu.memory_space<vmem>>, %arg8: memref<1x128xf32, #tpu.memory_space<vmem>>, %arg9: memref<2x32x32xf32, #tpu.memory_space<vmem>>, %arg10: memref<32x32xbf16, #tpu.memory_space<vmem>>, %arg11: memref<1x32xf32, #tpu.memory_space<vmem>>, %arg12: memref<1x32xf32, #tpu.memory_space<vmem>>, %arg13: memref<1x32xf32, #tpu.memory_space<vmem>>, %arg14: memref<32x128xbf16, #tpu.memory_space<vmem>>, %arg15: memref<1x128xf32, #tpu.memory_space<vmem>>, %arg16: memref<128x32xbf16, #tpu.memory_space<vmem>>, %arg17: memref<1x32xf32, #tpu.memory_space<vmem>>, %arg18: memref<1x32xf32, #tpu.memory_space<vmem>>, %arg19: memref<1x32xf32, #tpu.memory_space<vmem>>, %arg20: memref<32x128xbf16, #tpu.memory_space<vmem>>, %arg21: memref<1x128xf32, #tpu.memory_space<vmem>>, %arg22: memref<2x32x32xf32, #tpu.memory_space<vmem>>, %arg23: memref<32x32xbf16, #tpu.memory_space<vmem>>, %arg24: memref<1x32xf32, #tpu.memory_space<vmem>>, %arg25: memref<1x32xf32, #tpu.memory_space<vmem>>, %arg26: memref<1x32xf32, #tpu.memory_space<vmem>>, %arg27: memref<32x128xbf16, #tpu.memory_space<vmem>>, %arg28: memref<1x128xf32, #tpu.memory_space<vmem>>, %arg29: memref<128x32xbf16, #tpu.memory_space<vmem>>, %arg30: memref<1x32xf32, #tpu.memory_space<vmem>>, %arg31: memref<4x8x32xf32, #tpu.memory_space<vmem>>, %arg32: memref<1x128xf32, #tpu.memory_space<vmem>>, %arg33: memref<1x128xf32, #tpu.memory_space<vmem>>, %arg34: memref<128x64xbf16, #tpu.memory_space<vmem>>, %arg35: memref<1x64xf32, #tpu.memory_space<vmem>>, %arg36: memref<1x64xf32, #tpu.memory_space<vmem>>, %arg37: memref<64x256xbf16, #tpu.memory_space<vmem>>, %arg38: memref<1x256xf32, #tpu.memory_space<vmem>>, %arg39: memref<4x8x8xf32, #tpu.memory_space<vmem>>, %arg40: memref<64x64xbf16, #tpu.memory_space<vmem>>, %arg41: memref<1x64xf32, #tpu.memory_space<vmem>>, %arg42: memref<1x64xf32, #tpu.memory_space<vmem>>, %arg43: memref<1x64xf32, #tpu.memory_space<vmem>>, %arg44: memref<64x256xbf16, #tpu.memory_space<vmem>>, %arg45: memref<1x256xf32, #tpu.memory_space<vmem>>, %arg46: memref<256x64xbf16, #tpu.memory_space<vmem>>, %arg47: memref<1x64xf32, #tpu.memory_space<vmem>>, %arg48: memref<1x64xf32, #tpu.memory_space<vmem>>, %arg49: memref<1x64xf32, #tpu.memory_space<vmem>>, %arg50: memref<64x256xbf16, #tpu.memory_space<vmem>>, %arg51: memref<1x256xf32, #tpu.memory_space<vmem>>, %arg52: memref<4x8x8xf32, #tpu.memory_space<vmem>>, %arg53: memref<64x64xbf16, #tpu.memory_space<vmem>>, %arg54: memref<1x64xf32, #tpu.memory_space<vmem>>, %arg55: memref<1x64xf32, #tpu.memory_space<vmem>>, %arg56: memref<1x64xf32, #tpu.memory_space<vmem>>, %arg57: memref<64x256xbf16, #tpu.memory_space<vmem>>, %arg58: memref<1x256xf32, #tpu.memory_space<vmem>>, %arg59: memref<256x64xbf16, #tpu.memory_space<vmem>>, %arg60: memref<1x64xf32, #tpu.memory_space<vmem>>, %arg61: memref<1x64xf32, #tpu.memory_space<vmem>>, %arg62: memref<1x64xf32, #tpu.memory_space<vmem>>, %arg63: memref<8x64xf32, #tpu.memory_space<vmem>>) attributes {dimension_semantics = [], scalar_prefetch = 0 : i64, scratch_operands = 0 : i64, tpu.core_type = #tpu.core_type<tc>} {
    %c0 = arith.constant 0 : index
    %c0_0 = arith.constant 0 : index
    %0 = vector.load %arg0[%c0, %c0_0] : memref<32x48xf32, #tpu.memory_space<vmem>>, vector<32x48xf32>
    %c0_1 = arith.constant 0 : index
    %c0_2 = arith.constant 0 : index
    %1 = vector.load %arg1[%c0_1, %c0_2] : memref<48x32xbf16, #tpu.memory_space<vmem>>, vector<48x32xbf16>
    %c0_3 = arith.constant 0 : index
    %c0_4 = arith.constant 0 : index
    %2 = vector.load %arg2[%c0_3, %c0_4] : memref<1x32xf32, #tpu.memory_space<vmem>>, vector<1x32xf32>
    %c0_5 = arith.constant 0 : index
    %c0_6 = arith.constant 0 : index
    %3 = vector.load %arg3[%c0_5, %c0_6] : memref<1x32xf32, #tpu.memory_space<vmem>>, vector<1x32xf32>
    %c0_7 = arith.constant 0 : index
    %c0_8 = arith.constant 0 : index
    %4 = vector.load %arg4[%c0_7, %c0_8] : memref<1x32xf32, #tpu.memory_space<vmem>>, vector<1x32xf32>
    %5 = arith.truncf %0 : vector<32x48xf32> to vector<32x48xbf16>
    %cst = arith.constant dense<0.000000e+00> : vector<32x32xf32>
    %6 = tpu.matmul %5, %1, %cst {dimension_numbers = #tpu.dot_dimension_numbers<[1], [0], [0], [1], [0, 0, 1, 1], [], []>} : vector<32x48xbf16>, vector<48x32xbf16>, vector<32x32xf32> -> vector<32x32xf32>
    %7 = vector.broadcast %2 : vector<1x32xf32> to vector<32x32xf32>
    %8 = arith.addf %6, %7 : vector<32x32xf32>
    %cst_9 = arith.constant dense<0.000000e+00> : vector<32xf32>
    %9 = vector.multi_reduction <add>, %8, %cst_9 [1] : vector<32x32xf32> to vector<32xf32>
    %10 = vector.shape_cast %9 : vector<32xf32> to vector<32x1xf32>
    %cst_10 = arith.constant 3.200000e+01 : f32
    %11 = vector.broadcast %cst_10 : f32 to vector<32x1xf32>
    %12 = arith.divf %10, %11 : vector<32x1xf32>
    %13 = vector.broadcast %12 : vector<32x1xf32> to vector<32x32xf32>
    %14 = arith.subf %8, %13 : vector<32x32xf32>
    %15 = arith.mulf %14, %14 : vector<32x32xf32>
    %cst_11 = arith.constant dense<0.000000e+00> : vector<32xf32>
    %16 = vector.multi_reduction <add>, %15, %cst_11 [1] : vector<32x32xf32> to vector<32xf32>
    %17 = vector.shape_cast %16 : vector<32xf32> to vector<32x1xf32>
    %cst_12 = arith.constant 3.200000e+01 : f32
    %18 = vector.broadcast %cst_12 : f32 to vector<32x1xf32>
    %19 = arith.divf %17, %18 : vector<32x1xf32>
    %cst_13 = arith.constant 9.99999974E-6 : f32
    %20 = vector.broadcast %cst_13 : f32 to vector<32x1xf32>
    %21 = arith.addf %19, %20 : vector<32x1xf32>
    %22 = math.rsqrt %21 : vector<32x1xf32>
    %23 = vector.broadcast %22 : vector<32x1xf32> to vector<32x32xf32>
    %24 = arith.mulf %14, %23 : vector<32x32xf32>
    %25 = vector.broadcast %3 : vector<1x32xf32> to vector<32x32xf32>
    %26 = arith.mulf %24, %25 : vector<32x32xf32>
    %27 = vector.broadcast %4 : vector<1x32xf32> to vector<32x32xf32>
    %28 = arith.addf %26, %27 : vector<32x32xf32>
    %c0_14 = arith.constant 0 : index
    %c0_15 = arith.constant 0 : index
    %29 = vector.load %arg5[%c0_14, %c0_15] : memref<1x32xf32, #tpu.memory_space<vmem>>, vector<1x32xf32>
    %c0_16 = arith.constant 0 : index
    %c0_17 = arith.constant 0 : index
    %30 = vector.load %arg6[%c0_16, %c0_17] : memref<1x32xf32, #tpu.memory_space<vmem>>, vector<1x32xf32>
    %c0_18 = arith.constant 0 : index
    %c0_19 = arith.constant 0 : index
    %31 = vector.load %arg7[%c0_18, %c0_19] : memref<32x128xbf16, #tpu.memory_space<vmem>>, vector<32x128xbf16>
    %c0_20 = arith.constant 0 : index
    %c0_21 = arith.constant 0 : index
    %32 = vector.load %arg8[%c0_20, %c0_21] : memref<1x128xf32, #tpu.memory_space<vmem>>, vector<1x128xf32>
    %c0_22 = arith.constant 0 : index
    %c0_23 = arith.constant 0 : index
    %c0_24 = arith.constant 0 : index
    %33 = vector.load %arg9[%c0_22, %c0_23, %c0_24] : memref<2x32x32xf32, #tpu.memory_space<vmem>>, vector<2x32x32xf32>
    %c0_25 = arith.constant 0 : index
    %c0_26 = arith.constant 0 : index
    %34 = vector.load %arg10[%c0_25, %c0_26] : memref<32x32xbf16, #tpu.memory_space<vmem>>, vector<32x32xbf16>
    %c0_27 = arith.constant 0 : index
    %c0_28 = arith.constant 0 : index
    %35 = vector.load %arg11[%c0_27, %c0_28] : memref<1x32xf32, #tpu.memory_space<vmem>>, vector<1x32xf32>
    %c0_29 = arith.constant 0 : index
    %c0_30 = arith.constant 0 : index
    %36 = vector.load %arg12[%c0_29, %c0_30] : memref<1x32xf32, #tpu.memory_space<vmem>>, vector<1x32xf32>
    %c0_31 = arith.constant 0 : index
    %c0_32 = arith.constant 0 : index
    %37 = vector.load %arg13[%c0_31, %c0_32] : memref<1x32xf32, #tpu.memory_space<vmem>>, vector<1x32xf32>
    %c0_33 = arith.constant 0 : index
    %c0_34 = arith.constant 0 : index
    %38 = vector.load %arg14[%c0_33, %c0_34] : memref<32x128xbf16, #tpu.memory_space<vmem>>, vector<32x128xbf16>
    %c0_35 = arith.constant 0 : index
    %c0_36 = arith.constant 0 : index
    %39 = vector.load %arg15[%c0_35, %c0_36] : memref<1x128xf32, #tpu.memory_space<vmem>>, vector<1x128xf32>
    %c0_37 = arith.constant 0 : index
    %c0_38 = arith.constant 0 : index
    %40 = vector.load %arg16[%c0_37, %c0_38] : memref<128x32xbf16, #tpu.memory_space<vmem>>, vector<128x32xbf16>
    %c0_39 = arith.constant 0 : index
    %c0_40 = arith.constant 0 : index
    %41 = vector.load %arg17[%c0_39, %c0_40] : memref<1x32xf32, #tpu.memory_space<vmem>>, vector<1x32xf32>
    %cst_41 = arith.constant dense<0.000000e+00> : vector<32xf32>
    %42 = vector.multi_reduction <add>, %28, %cst_41 [1] : vector<32x32xf32> to vector<32xf32>
    %43 = vector.shape_cast %42 : vector<32xf32> to vector<32x1xf32>
    %cst_42 = arith.constant 3.200000e+01 : f32
    %44 = vector.broadcast %cst_42 : f32 to vector<32x1xf32>
    %45 = arith.divf %43, %44 : vector<32x1xf32>
    %46 = vector.broadcast %45 : vector<32x1xf32> to vector<32x32xf32>
    %47 = arith.subf %28, %46 : vector<32x32xf32>
    %48 = arith.mulf %47, %47 : vector<32x32xf32>
    %cst_43 = arith.constant dense<0.000000e+00> : vector<32xf32>
    %49 = vector.multi_reduction <add>, %48, %cst_43 [1] : vector<32x32xf32> to vector<32xf32>
    %50 = vector.shape_cast %49 : vector<32xf32> to vector<32x1xf32>
    %cst_44 = arith.constant 3.200000e+01 : f32
    %51 = vector.broadcast %cst_44 : f32 to vector<32x1xf32>
    %52 = arith.divf %50, %51 : vector<32x1xf32>
    %cst_45 = arith.constant 9.99999974E-6 : f32
    %53 = vector.broadcast %cst_45 : f32 to vector<32x1xf32>
    %54 = arith.addf %52, %53 : vector<32x1xf32>
    %55 = math.rsqrt %54 : vector<32x1xf32>
    %56 = vector.broadcast %55 : vector<32x1xf32> to vector<32x32xf32>
    %57 = arith.mulf %47, %56 : vector<32x32xf32>
    %58 = vector.broadcast %29 : vector<1x32xf32> to vector<32x32xf32>
    %59 = arith.mulf %57, %58 : vector<32x32xf32>
    %60 = vector.broadcast %30 : vector<1x32xf32> to vector<32x32xf32>
    %61 = arith.addf %59, %60 : vector<32x32xf32>
    %62 = arith.truncf %61 : vector<32x32xf32> to vector<32x32xbf16>
    %cst_46 = arith.constant dense<0.000000e+00> : vector<32x128xf32>
    %63 = tpu.matmul %62, %31, %cst_46 {dimension_numbers = #tpu.dot_dimension_numbers<[1], [0], [0], [1], [0, 0, 1, 1], [], []>} : vector<32x32xbf16>, vector<32x128xbf16>, vector<32x128xf32> -> vector<32x128xf32>
    %64 = vector.broadcast %32 : vector<1x128xf32> to vector<32x128xf32>
    %65 = arith.addf %63, %64 : vector<32x128xf32>
    %cst_47 = arith.constant 0.000000e+00 : f32
    %66 = vector.broadcast %cst_47 : f32 to vector<32x32xf32>
    %67 = vector.extract_strided_slice %65 {offsets = [0, 0], sizes = [32, 16], strides = [1, 1]} : vector<32x128xf32> to vector<32x16xf32>
    %cst_48 = arith.constant 2.500000e-01 : f32
    %68 = vector.broadcast %cst_48 : f32 to vector<32x16xf32>
    %69 = arith.mulf %67, %68 : vector<32x16xf32>
    %70 = vector.extract_strided_slice %65 {offsets = [0, 32], sizes = [32, 16], strides = [1, 1]} : vector<32x128xf32> to vector<32x16xf32>
    %71 = vector.extract_strided_slice %65 {offsets = [0, 64], sizes = [32, 16], strides = [1, 1]} : vector<32x128xf32> to vector<32x16xf32>
    %cst_49 = arith.constant dense<0.000000e+00> : vector<32x32xf32>
    %72 = tpu.matmul %69, %70, %cst_49 {dimension_numbers = #tpu.dot_dimension_numbers<[1], [1], [0], [0], [0, 0, 1, 0], [], []>} : vector<32x16xf32>, vector<32x16xf32>, vector<32x32xf32> -> vector<32x32xf32>
    %73 = vector.extract_strided_slice %33 {offsets = [0, 0, 0], sizes = [1, 32, 32], strides = [1, 1, 1]} : vector<2x32x32xf32> to vector<1x32x32xf32>
    %74 = vector.shape_cast %73 : vector<1x32x32xf32> to vector<32x32xf32>
    %75 = arith.addf %72, %74 : vector<32x32xf32>
    %cst_50 = arith.constant dense<0xFF800000> : vector<32xf32>
    %76 = vector.multi_reduction <maximumf>, %75, %cst_50 [1] : vector<32x32xf32> to vector<32xf32>
    %77 = vector.shape_cast %76 : vector<32xf32> to vector<32x1xf32>
    %78 = vector.broadcast %77 : vector<32x1xf32> to vector<32x32xf32>
    %79 = arith.subf %75, %78 : vector<32x32xf32>
    %80 = math.exp %79 : vector<32x32xf32>
    %cst_51 = arith.constant dense<0.000000e+00> : vector<32xf32>
    %81 = vector.multi_reduction <add>, %80, %cst_51 [1] : vector<32x32xf32> to vector<32xf32>
    %82 = vector.shape_cast %81 : vector<32xf32> to vector<32x1xf32>
    %83 = tpu.reciprocal %82 {approx = true} : vector<32x1xf32> -> vector<32x1xf32>
    %84 = vector.broadcast %83 : vector<32x1xf32> to vector<32x32xf32>
    %85 = arith.mulf %80, %84 : vector<32x32xf32>
    %cst_52 = arith.constant dense<0.000000e+00> : vector<32x16xf32>
    %86 = tpu.matmul %85, %71, %cst_52 {dimension_numbers = #tpu.dot_dimension_numbers<[1], [0], [0], [1], [0, 0, 1, 1], [], []>} : vector<32x32xf32>, vector<32x16xf32>, vector<32x16xf32> -> vector<32x16xf32>
    %87 = arith.truncf %86 : vector<32x16xf32> to vector<32x16xbf16>
    %88 = vector.extract_strided_slice %34 {offsets = [0, 0], sizes = [16, 32], strides = [1, 1]} : vector<32x32xbf16> to vector<16x32xbf16>
    %cst_53 = arith.constant dense<0.000000e+00> : vector<32x32xf32>
    %89 = tpu.matmul %87, %88, %cst_53 {dimension_numbers = #tpu.dot_dimension_numbers<[1], [0], [0], [1], [0, 0, 1, 1], [], []>} : vector<32x16xbf16>, vector<16x32xbf16>, vector<32x32xf32> -> vector<32x32xf32>
    %90 = arith.addf %66, %89 : vector<32x32xf32>
    %91 = vector.extract_strided_slice %65 {offsets = [0, 16], sizes = [32, 16], strides = [1, 1]} : vector<32x128xf32> to vector<32x16xf32>
    %cst_54 = arith.constant 2.500000e-01 : f32
    %92 = vector.broadcast %cst_54 : f32 to vector<32x16xf32>
    %93 = arith.mulf %91, %92 : vector<32x16xf32>
    %94 = vector.extract_strided_slice %65 {offsets = [0, 48], sizes = [32, 16], strides = [1, 1]} : vector<32x128xf32> to vector<32x16xf32>
    %95 = vector.extract_strided_slice %65 {offsets = [0, 80], sizes = [32, 16], strides = [1, 1]} : vector<32x128xf32> to vector<32x16xf32>
    %cst_55 = arith.constant dense<0.000000e+00> : vector<32x32xf32>
    %96 = tpu.matmul %93, %94, %cst_55 {dimension_numbers = #tpu.dot_dimension_numbers<[1], [1], [0], [0], [0, 0, 1, 0], [], []>} : vector<32x16xf32>, vector<32x16xf32>, vector<32x32xf32> -> vector<32x32xf32>
    %97 = vector.extract_strided_slice %33 {offsets = [1, 0, 0], sizes = [1, 32, 32], strides = [1, 1, 1]} : vector<2x32x32xf32> to vector<1x32x32xf32>
    %98 = vector.shape_cast %97 : vector<1x32x32xf32> to vector<32x32xf32>
    %99 = arith.addf %96, %98 : vector<32x32xf32>
    %cst_56 = arith.constant dense<0xFF800000> : vector<32xf32>
    %100 = vector.multi_reduction <maximumf>, %99, %cst_56 [1] : vector<32x32xf32> to vector<32xf32>
    %101 = vector.shape_cast %100 : vector<32xf32> to vector<32x1xf32>
    %102 = vector.broadcast %101 : vector<32x1xf32> to vector<32x32xf32>
    %103 = arith.subf %99, %102 : vector<32x32xf32>
    %104 = math.exp %103 : vector<32x32xf32>
    %cst_57 = arith.constant dense<0.000000e+00> : vector<32xf32>
    %105 = vector.multi_reduction <add>, %104, %cst_57 [1] : vector<32x32xf32> to vector<32xf32>
    %106 = vector.shape_cast %105 : vector<32xf32> to vector<32x1xf32>
    %107 = tpu.reciprocal %106 {approx = true} : vector<32x1xf32> -> vector<32x1xf32>
    %108 = vector.broadcast %107 : vector<32x1xf32> to vector<32x32xf32>
    %109 = arith.mulf %104, %108 : vector<32x32xf32>
    %cst_58 = arith.constant dense<0.000000e+00> : vector<32x16xf32>
    %110 = tpu.matmul %109, %95, %cst_58 {dimension_numbers = #tpu.dot_dimension_numbers<[1], [0], [0], [1], [0, 0, 1, 1], [], []>} : vector<32x32xf32>, vector<32x16xf32>, vector<32x16xf32> -> vector<32x16xf32>
    %111 = arith.truncf %110 : vector<32x16xf32> to vector<32x16xbf16>
    %112 = vector.extract_strided_slice %34 {offsets = [16, 0], sizes = [16, 32], strides = [1, 1]} : vector<32x32xbf16> to vector<16x32xbf16>
    %cst_59 = arith.constant dense<0.000000e+00> : vector<32x32xf32>
    %113 = tpu.matmul %111, %112, %cst_59 {dimension_numbers = #tpu.dot_dimension_numbers<[1], [0], [0], [1], [0, 0, 1, 1], [], []>} : vector<32x16xbf16>, vector<16x32xbf16>, vector<32x32xf32> -> vector<32x32xf32>
    %114 = arith.addf %90, %113 : vector<32x32xf32>
    %115 = arith.addf %28, %114 : vector<32x32xf32>
    %116 = vector.broadcast %35 : vector<1x32xf32> to vector<32x32xf32>
    %117 = arith.addf %115, %116 : vector<32x32xf32>
    %cst_60 = arith.constant dense<0.000000e+00> : vector<32xf32>
    %118 = vector.multi_reduction <add>, %117, %cst_60 [1] : vector<32x32xf32> to vector<32xf32>
    %119 = vector.shape_cast %118 : vector<32xf32> to vector<32x1xf32>
    %cst_61 = arith.constant 3.200000e+01 : f32
    %120 = vector.broadcast %cst_61 : f32 to vector<32x1xf32>
    %121 = arith.divf %119, %120 : vector<32x1xf32>
    %122 = vector.broadcast %121 : vector<32x1xf32> to vector<32x32xf32>
    %123 = arith.subf %117, %122 : vector<32x32xf32>
    %124 = arith.mulf %123, %123 : vector<32x32xf32>
    %cst_62 = arith.constant dense<0.000000e+00> : vector<32xf32>
    %125 = vector.multi_reduction <add>, %124, %cst_62 [1] : vector<32x32xf32> to vector<32xf32>
    %126 = vector.shape_cast %125 : vector<32xf32> to vector<32x1xf32>
    %cst_63 = arith.constant 3.200000e+01 : f32
    %127 = vector.broadcast %cst_63 : f32 to vector<32x1xf32>
    %128 = arith.divf %126, %127 : vector<32x1xf32>
    %cst_64 = arith.constant 9.99999974E-6 : f32
    %129 = vector.broadcast %cst_64 : f32 to vector<32x1xf32>
    %130 = arith.addf %128, %129 : vector<32x1xf32>
    %131 = math.rsqrt %130 : vector<32x1xf32>
    %132 = vector.broadcast %131 : vector<32x1xf32> to vector<32x32xf32>
    %133 = arith.mulf %123, %132 : vector<32x32xf32>
    %134 = vector.broadcast %36 : vector<1x32xf32> to vector<32x32xf32>
    %135 = arith.mulf %133, %134 : vector<32x32xf32>
    %136 = vector.broadcast %37 : vector<1x32xf32> to vector<32x32xf32>
    %137 = arith.addf %135, %136 : vector<32x32xf32>
    %138 = arith.truncf %137 : vector<32x32xf32> to vector<32x32xbf16>
    %cst_65 = arith.constant dense<0.000000e+00> : vector<32x128xf32>
    %139 = tpu.matmul %138, %38, %cst_65 {dimension_numbers = #tpu.dot_dimension_numbers<[1], [0], [0], [1], [0, 0, 1, 1], [], []>} : vector<32x32xbf16>, vector<32x128xbf16>, vector<32x128xf32> -> vector<32x128xf32>
    %140 = vector.broadcast %39 : vector<1x128xf32> to vector<32x128xf32>
    %141 = arith.addf %139, %140 : vector<32x128xf32>
    %cst_66 = arith.constant 0.707106769 : f32
    %142 = vector.broadcast %cst_66 : f32 to vector<32x128xf32>
    %143 = arith.mulf %141, %142 : vector<32x128xf32>
    %144 = math.absf %143 : vector<32x128xf32>
    %cst_67 = arith.constant 0.327591091 : f32
    %145 = vector.broadcast %cst_67 : f32 to vector<32x128xf32>
    %146 = arith.mulf %145, %144 : vector<32x128xf32>
    %cst_68 = arith.constant 1.000000e+00 : f32
    %147 = vector.broadcast %cst_68 : f32 to vector<32x128xf32>
    %148 = arith.addf %147, %146 : vector<32x128xf32>
    %cst_69 = arith.constant 1.000000e+00 : f32
    %149 = vector.broadcast %cst_69 : f32 to vector<32x128xf32>
    %150 = arith.divf %149, %148 : vector<32x128xf32>
    %cst_70 = arith.constant 1.06140542 : f32
    %151 = vector.broadcast %cst_70 : f32 to vector<32x128xf32>
    %152 = arith.mulf %150, %151 : vector<32x128xf32>
    %cst_71 = arith.constant -1.45315206 : f32
    %153 = vector.broadcast %cst_71 : f32 to vector<32x128xf32>
    %154 = arith.addf %153, %152 : vector<32x128xf32>
    %155 = arith.mulf %150, %154 : vector<32x128xf32>
    %cst_72 = arith.constant 1.42141378 : f32
    %156 = vector.broadcast %cst_72 : f32 to vector<32x128xf32>
    %157 = arith.addf %156, %155 : vector<32x128xf32>
    %158 = arith.mulf %150, %157 : vector<32x128xf32>
    %cst_73 = arith.constant -0.284496725 : f32
    %159 = vector.broadcast %cst_73 : f32 to vector<32x128xf32>
    %160 = arith.addf %159, %158 : vector<32x128xf32>
    %161 = arith.mulf %150, %160 : vector<32x128xf32>
    %cst_74 = arith.constant 0.254829586 : f32
    %162 = vector.broadcast %cst_74 : f32 to vector<32x128xf32>
    %163 = arith.addf %162, %161 : vector<32x128xf32>
    %164 = arith.mulf %150, %163 : vector<32x128xf32>
    %cst_75 = arith.constant 0.000000e+00 : f32
    %165 = vector.broadcast %cst_75 : f32 to vector<32x128xf32>
    %166 = arith.subf %165, %144 : vector<32x128xf32>
    %167 = arith.mulf %166, %144 : vector<32x128xf32>
    %168 = math.exp %167 : vector<32x128xf32>
    %169 = arith.mulf %164, %168 : vector<32x128xf32>
    %cst_76 = arith.constant 1.000000e+00 : f32
    %170 = vector.broadcast %cst_76 : f32 to vector<32x128xf32>
    %171 = arith.subf %170, %169 : vector<32x128xf32>
    %cst_77 = arith.constant 0.000000e+00 : f32
    %172 = vector.broadcast %cst_77 : f32 to vector<32x128xf32>
    %173 = arith.cmpf oge, %143, %172 : vector<32x128xf32>
    %cst_78 = arith.constant 0.000000e+00 : f32
    %174 = vector.broadcast %cst_78 : f32 to vector<32x128xf32>
    %175 = arith.subf %174, %171 : vector<32x128xf32>
    %176 = arith.select %173, %171, %175 : vector<32x128xi1>, vector<32x128xf32>
    %cst_79 = arith.constant 5.000000e-01 : f32
    %177 = vector.broadcast %cst_79 : f32 to vector<32x128xf32>
    %178 = arith.mulf %177, %141 : vector<32x128xf32>
    %cst_80 = arith.constant 1.000000e+00 : f32
    %179 = vector.broadcast %cst_80 : f32 to vector<32x128xf32>
    %180 = arith.addf %179, %176 : vector<32x128xf32>
    %181 = arith.mulf %178, %180 : vector<32x128xf32>
    %182 = arith.truncf %181 : vector<32x128xf32> to vector<32x128xbf16>
    %cst_81 = arith.constant dense<0.000000e+00> : vector<32x32xf32>
    %183 = tpu.matmul %182, %40, %cst_81 {dimension_numbers = #tpu.dot_dimension_numbers<[1], [0], [0], [1], [0, 0, 1, 1], [], []>} : vector<32x128xbf16>, vector<128x32xbf16>, vector<32x32xf32> -> vector<32x32xf32>
    %184 = vector.broadcast %41 : vector<1x32xf32> to vector<32x32xf32>
    %185 = arith.addf %183, %184 : vector<32x32xf32>
    %186 = arith.addf %117, %185 : vector<32x32xf32>
    %c0_82 = arith.constant 0 : index
    %c0_83 = arith.constant 0 : index
    %187 = vector.load %arg18[%c0_82, %c0_83] : memref<1x32xf32, #tpu.memory_space<vmem>>, vector<1x32xf32>
    %c0_84 = arith.constant 0 : index
    %c0_85 = arith.constant 0 : index
    %188 = vector.load %arg19[%c0_84, %c0_85] : memref<1x32xf32, #tpu.memory_space<vmem>>, vector<1x32xf32>
    %c0_86 = arith.constant 0 : index
    %c0_87 = arith.constant 0 : index
    %189 = vector.load %arg20[%c0_86, %c0_87] : memref<32x128xbf16, #tpu.memory_space<vmem>>, vector<32x128xbf16>
    %c0_88 = arith.constant 0 : index
    %c0_89 = arith.constant 0 : index
    %190 = vector.load %arg21[%c0_88, %c0_89] : memref<1x128xf32, #tpu.memory_space<vmem>>, vector<1x128xf32>
    %c0_90 = arith.constant 0 : index
    %c0_91 = arith.constant 0 : index
    %c0_92 = arith.constant 0 : index
    %191 = vector.load %arg22[%c0_90, %c0_91, %c0_92] : memref<2x32x32xf32, #tpu.memory_space<vmem>>, vector<2x32x32xf32>
    %c0_93 = arith.constant 0 : index
    %c0_94 = arith.constant 0 : index
    %192 = vector.load %arg23[%c0_93, %c0_94] : memref<32x32xbf16, #tpu.memory_space<vmem>>, vector<32x32xbf16>
    %c0_95 = arith.constant 0 : index
    %c0_96 = arith.constant 0 : index
    %193 = vector.load %arg24[%c0_95, %c0_96] : memref<1x32xf32, #tpu.memory_space<vmem>>, vector<1x32xf32>
    %c0_97 = arith.constant 0 : index
    %c0_98 = arith.constant 0 : index
    %194 = vector.load %arg25[%c0_97, %c0_98] : memref<1x32xf32, #tpu.memory_space<vmem>>, vector<1x32xf32>
    %c0_99 = arith.constant 0 : index
    %c0_100 = arith.constant 0 : index
    %195 = vector.load %arg26[%c0_99, %c0_100] : memref<1x32xf32, #tpu.memory_space<vmem>>, vector<1x32xf32>
    %c0_101 = arith.constant 0 : index
    %c0_102 = arith.constant 0 : index
    %196 = vector.load %arg27[%c0_101, %c0_102] : memref<32x128xbf16, #tpu.memory_space<vmem>>, vector<32x128xbf16>
    %c0_103 = arith.constant 0 : index
    %c0_104 = arith.constant 0 : index
    %197 = vector.load %arg28[%c0_103, %c0_104] : memref<1x128xf32, #tpu.memory_space<vmem>>, vector<1x128xf32>
    %c0_105 = arith.constant 0 : index
    %c0_106 = arith.constant 0 : index
    %198 = vector.load %arg29[%c0_105, %c0_106] : memref<128x32xbf16, #tpu.memory_space<vmem>>, vector<128x32xbf16>
    %c0_107 = arith.constant 0 : index
    %c0_108 = arith.constant 0 : index
    %199 = vector.load %arg30[%c0_107, %c0_108] : memref<1x32xf32, #tpu.memory_space<vmem>>, vector<1x32xf32>
    %cst_109 = arith.constant dense<0.000000e+00> : vector<32xf32>
    %200 = vector.multi_reduction <add>, %186, %cst_109 [1] : vector<32x32xf32> to vector<32xf32>
    %201 = vector.shape_cast %200 : vector<32xf32> to vector<32x1xf32>
    %cst_110 = arith.constant 3.200000e+01 : f32
    %202 = vector.broadcast %cst_110 : f32 to vector<32x1xf32>
    %203 = arith.divf %201, %202 : vector<32x1xf32>
    %204 = vector.broadcast %203 : vector<32x1xf32> to vector<32x32xf32>
    %205 = arith.subf %186, %204 : vector<32x32xf32>
    %206 = arith.mulf %205, %205 : vector<32x32xf32>
    %cst_111 = arith.constant dense<0.000000e+00> : vector<32xf32>
    %207 = vector.multi_reduction <add>, %206, %cst_111 [1] : vector<32x32xf32> to vector<32xf32>
    %208 = vector.shape_cast %207 : vector<32xf32> to vector<32x1xf32>
    %cst_112 = arith.constant 3.200000e+01 : f32
    %209 = vector.broadcast %cst_112 : f32 to vector<32x1xf32>
    %210 = arith.divf %208, %209 : vector<32x1xf32>
    %cst_113 = arith.constant 9.99999974E-6 : f32
    %211 = vector.broadcast %cst_113 : f32 to vector<32x1xf32>
    %212 = arith.addf %210, %211 : vector<32x1xf32>
    %213 = math.rsqrt %212 : vector<32x1xf32>
    %214 = vector.broadcast %213 : vector<32x1xf32> to vector<32x32xf32>
    %215 = arith.mulf %205, %214 : vector<32x32xf32>
    %216 = vector.broadcast %187 : vector<1x32xf32> to vector<32x32xf32>
    %217 = arith.mulf %215, %216 : vector<32x32xf32>
    %218 = vector.broadcast %188 : vector<1x32xf32> to vector<32x32xf32>
    %219 = arith.addf %217, %218 : vector<32x32xf32>
    %220 = arith.truncf %219 : vector<32x32xf32> to vector<32x32xbf16>
    %cst_114 = arith.constant dense<0.000000e+00> : vector<32x128xf32>
    %221 = tpu.matmul %220, %189, %cst_114 {dimension_numbers = #tpu.dot_dimension_numbers<[1], [0], [0], [1], [0, 0, 1, 1], [], []>} : vector<32x32xbf16>, vector<32x128xbf16>, vector<32x128xf32> -> vector<32x128xf32>
    %222 = vector.broadcast %190 : vector<1x128xf32> to vector<32x128xf32>
    %223 = arith.addf %221, %222 : vector<32x128xf32>
    %cst_115 = arith.constant 0.000000e+00 : f32
    %224 = vector.broadcast %cst_115 : f32 to vector<32x32xf32>
    %225 = vector.extract_strided_slice %223 {offsets = [0, 0], sizes = [32, 16], strides = [1, 1]} : vector<32x128xf32> to vector<32x16xf32>
    %cst_116 = arith.constant 2.500000e-01 : f32
    %226 = vector.broadcast %cst_116 : f32 to vector<32x16xf32>
    %227 = arith.mulf %225, %226 : vector<32x16xf32>
    %228 = vector.extract_strided_slice %223 {offsets = [0, 32], sizes = [32, 16], strides = [1, 1]} : vector<32x128xf32> to vector<32x16xf32>
    %229 = vector.extract_strided_slice %223 {offsets = [0, 64], sizes = [32, 16], strides = [1, 1]} : vector<32x128xf32> to vector<32x16xf32>
    %cst_117 = arith.constant dense<0.000000e+00> : vector<32x32xf32>
    %230 = tpu.matmul %227, %228, %cst_117 {dimension_numbers = #tpu.dot_dimension_numbers<[1], [1], [0], [0], [0, 0, 1, 0], [], []>} : vector<32x16xf32>, vector<32x16xf32>, vector<32x32xf32> -> vector<32x32xf32>
    %231 = vector.extract_strided_slice %191 {offsets = [0, 0, 0], sizes = [1, 32, 32], strides = [1, 1, 1]} : vector<2x32x32xf32> to vector<1x32x32xf32>
    %232 = vector.shape_cast %231 : vector<1x32x32xf32> to vector<32x32xf32>
    %233 = arith.addf %230, %232 : vector<32x32xf32>
    %cst_118 = arith.constant dense<0xFF800000> : vector<32xf32>
    %234 = vector.multi_reduction <maximumf>, %233, %cst_118 [1] : vector<32x32xf32> to vector<32xf32>
    %235 = vector.shape_cast %234 : vector<32xf32> to vector<32x1xf32>
    %236 = vector.broadcast %235 : vector<32x1xf32> to vector<32x32xf32>
    %237 = arith.subf %233, %236 : vector<32x32xf32>
    %238 = math.exp %237 : vector<32x32xf32>
    %cst_119 = arith.constant dense<0.000000e+00> : vector<32xf32>
    %239 = vector.multi_reduction <add>, %238, %cst_119 [1] : vector<32x32xf32> to vector<32xf32>
    %240 = vector.shape_cast %239 : vector<32xf32> to vector<32x1xf32>
    %241 = tpu.reciprocal %240 {approx = true} : vector<32x1xf32> -> vector<32x1xf32>
    %242 = vector.broadcast %241 : vector<32x1xf32> to vector<32x32xf32>
    %243 = arith.mulf %238, %242 : vector<32x32xf32>
    %cst_120 = arith.constant dense<0.000000e+00> : vector<32x16xf32>
    %244 = tpu.matmul %243, %229, %cst_120 {dimension_numbers = #tpu.dot_dimension_numbers<[1], [0], [0], [1], [0, 0, 1, 1], [], []>} : vector<32x32xf32>, vector<32x16xf32>, vector<32x16xf32> -> vector<32x16xf32>
    %245 = arith.truncf %244 : vector<32x16xf32> to vector<32x16xbf16>
    %246 = vector.extract_strided_slice %192 {offsets = [0, 0], sizes = [16, 32], strides = [1, 1]} : vector<32x32xbf16> to vector<16x32xbf16>
    %cst_121 = arith.constant dense<0.000000e+00> : vector<32x32xf32>
    %247 = tpu.matmul %245, %246, %cst_121 {dimension_numbers = #tpu.dot_dimension_numbers<[1], [0], [0], [1], [0, 0, 1, 1], [], []>} : vector<32x16xbf16>, vector<16x32xbf16>, vector<32x32xf32> -> vector<32x32xf32>
    %248 = arith.addf %224, %247 : vector<32x32xf32>
    %249 = vector.extract_strided_slice %223 {offsets = [0, 16], sizes = [32, 16], strides = [1, 1]} : vector<32x128xf32> to vector<32x16xf32>
    %cst_122 = arith.constant 2.500000e-01 : f32
    %250 = vector.broadcast %cst_122 : f32 to vector<32x16xf32>
    %251 = arith.mulf %249, %250 : vector<32x16xf32>
    %252 = vector.extract_strided_slice %223 {offsets = [0, 48], sizes = [32, 16], strides = [1, 1]} : vector<32x128xf32> to vector<32x16xf32>
    %253 = vector.extract_strided_slice %223 {offsets = [0, 80], sizes = [32, 16], strides = [1, 1]} : vector<32x128xf32> to vector<32x16xf32>
    %cst_123 = arith.constant dense<0.000000e+00> : vector<32x32xf32>
    %254 = tpu.matmul %251, %252, %cst_123 {dimension_numbers = #tpu.dot_dimension_numbers<[1], [1], [0], [0], [0, 0, 1, 0], [], []>} : vector<32x16xf32>, vector<32x16xf32>, vector<32x32xf32> -> vector<32x32xf32>
    %255 = vector.extract_strided_slice %191 {offsets = [1, 0, 0], sizes = [1, 32, 32], strides = [1, 1, 1]} : vector<2x32x32xf32> to vector<1x32x32xf32>
    %256 = vector.shape_cast %255 : vector<1x32x32xf32> to vector<32x32xf32>
    %257 = arith.addf %254, %256 : vector<32x32xf32>
    %cst_124 = arith.constant dense<0xFF800000> : vector<32xf32>
    %258 = vector.multi_reduction <maximumf>, %257, %cst_124 [1] : vector<32x32xf32> to vector<32xf32>
    %259 = vector.shape_cast %258 : vector<32xf32> to vector<32x1xf32>
    %260 = vector.broadcast %259 : vector<32x1xf32> to vector<32x32xf32>
    %261 = arith.subf %257, %260 : vector<32x32xf32>
    %262 = math.exp %261 : vector<32x32xf32>
    %cst_125 = arith.constant dense<0.000000e+00> : vector<32xf32>
    %263 = vector.multi_reduction <add>, %262, %cst_125 [1] : vector<32x32xf32> to vector<32xf32>
    %264 = vector.shape_cast %263 : vector<32xf32> to vector<32x1xf32>
    %265 = tpu.reciprocal %264 {approx = true} : vector<32x1xf32> -> vector<32x1xf32>
    %266 = vector.broadcast %265 : vector<32x1xf32> to vector<32x32xf32>
    %267 = arith.mulf %262, %266 : vector<32x32xf32>
    %cst_126 = arith.constant dense<0.000000e+00> : vector<32x16xf32>
    %268 = tpu.matmul %267, %253, %cst_126 {dimension_numbers = #tpu.dot_dimension_numbers<[1], [0], [0], [1], [0, 0, 1, 1], [], []>} : vector<32x32xf32>, vector<32x16xf32>, vector<32x16xf32> -> vector<32x16xf32>
    %269 = arith.truncf %268 : vector<32x16xf32> to vector<32x16xbf16>
    %270 = vector.extract_strided_slice %192 {offsets = [16, 0], sizes = [16, 32], strides = [1, 1]} : vector<32x32xbf16> to vector<16x32xbf16>
    %cst_127 = arith.constant dense<0.000000e+00> : vector<32x32xf32>
    %271 = tpu.matmul %269, %270, %cst_127 {dimension_numbers = #tpu.dot_dimension_numbers<[1], [0], [0], [1], [0, 0, 1, 1], [], []>} : vector<32x16xbf16>, vector<16x32xbf16>, vector<32x32xf32> -> vector<32x32xf32>
    %272 = arith.addf %248, %271 : vector<32x32xf32>
    %273 = arith.addf %186, %272 : vector<32x32xf32>
    %274 = vector.broadcast %193 : vector<1x32xf32> to vector<32x32xf32>
    %275 = arith.addf %273, %274 : vector<32x32xf32>
    %cst_128 = arith.constant dense<0.000000e+00> : vector<32xf32>
    %276 = vector.multi_reduction <add>, %275, %cst_128 [1] : vector<32x32xf32> to vector<32xf32>
    %277 = vector.shape_cast %276 : vector<32xf32> to vector<32x1xf32>
    %cst_129 = arith.constant 3.200000e+01 : f32
    %278 = vector.broadcast %cst_129 : f32 to vector<32x1xf32>
    %279 = arith.divf %277, %278 : vector<32x1xf32>
    %280 = vector.broadcast %279 : vector<32x1xf32> to vector<32x32xf32>
    %281 = arith.subf %275, %280 : vector<32x32xf32>
    %282 = arith.mulf %281, %281 : vector<32x32xf32>
    %cst_130 = arith.constant dense<0.000000e+00> : vector<32xf32>
    %283 = vector.multi_reduction <add>, %282, %cst_130 [1] : vector<32x32xf32> to vector<32xf32>
    %284 = vector.shape_cast %283 : vector<32xf32> to vector<32x1xf32>
    %cst_131 = arith.constant 3.200000e+01 : f32
    %285 = vector.broadcast %cst_131 : f32 to vector<32x1xf32>
    %286 = arith.divf %284, %285 : vector<32x1xf32>
    %cst_132 = arith.constant 9.99999974E-6 : f32
    %287 = vector.broadcast %cst_132 : f32 to vector<32x1xf32>
    %288 = arith.addf %286, %287 : vector<32x1xf32>
    %289 = math.rsqrt %288 : vector<32x1xf32>
    %290 = vector.broadcast %289 : vector<32x1xf32> to vector<32x32xf32>
    %291 = arith.mulf %281, %290 : vector<32x32xf32>
    %292 = vector.broadcast %194 : vector<1x32xf32> to vector<32x32xf32>
    %293 = arith.mulf %291, %292 : vector<32x32xf32>
    %294 = vector.broadcast %195 : vector<1x32xf32> to vector<32x32xf32>
    %295 = arith.addf %293, %294 : vector<32x32xf32>
    %296 = arith.truncf %295 : vector<32x32xf32> to vector<32x32xbf16>
    %cst_133 = arith.constant dense<0.000000e+00> : vector<32x128xf32>
    %297 = tpu.matmul %296, %196, %cst_133 {dimension_numbers = #tpu.dot_dimension_numbers<[1], [0], [0], [1], [0, 0, 1, 1], [], []>} : vector<32x32xbf16>, vector<32x128xbf16>, vector<32x128xf32> -> vector<32x128xf32>
    %298 = vector.broadcast %197 : vector<1x128xf32> to vector<32x128xf32>
    %299 = arith.addf %297, %298 : vector<32x128xf32>
    %cst_134 = arith.constant 0.707106769 : f32
    %300 = vector.broadcast %cst_134 : f32 to vector<32x128xf32>
    %301 = arith.mulf %299, %300 : vector<32x128xf32>
    %302 = math.absf %301 : vector<32x128xf32>
    %cst_135 = arith.constant 0.327591091 : f32
    %303 = vector.broadcast %cst_135 : f32 to vector<32x128xf32>
    %304 = arith.mulf %303, %302 : vector<32x128xf32>
    %cst_136 = arith.constant 1.000000e+00 : f32
    %305 = vector.broadcast %cst_136 : f32 to vector<32x128xf32>
    %306 = arith.addf %305, %304 : vector<32x128xf32>
    %cst_137 = arith.constant 1.000000e+00 : f32
    %307 = vector.broadcast %cst_137 : f32 to vector<32x128xf32>
    %308 = arith.divf %307, %306 : vector<32x128xf32>
    %cst_138 = arith.constant 1.06140542 : f32
    %309 = vector.broadcast %cst_138 : f32 to vector<32x128xf32>
    %310 = arith.mulf %308, %309 : vector<32x128xf32>
    %cst_139 = arith.constant -1.45315206 : f32
    %311 = vector.broadcast %cst_139 : f32 to vector<32x128xf32>
    %312 = arith.addf %311, %310 : vector<32x128xf32>
    %313 = arith.mulf %308, %312 : vector<32x128xf32>
    %cst_140 = arith.constant 1.42141378 : f32
    %314 = vector.broadcast %cst_140 : f32 to vector<32x128xf32>
    %315 = arith.addf %314, %313 : vector<32x128xf32>
    %316 = arith.mulf %308, %315 : vector<32x128xf32>
    %cst_141 = arith.constant -0.284496725 : f32
    %317 = vector.broadcast %cst_141 : f32 to vector<32x128xf32>
    %318 = arith.addf %317, %316 : vector<32x128xf32>
    %319 = arith.mulf %308, %318 : vector<32x128xf32>
    %cst_142 = arith.constant 0.254829586 : f32
    %320 = vector.broadcast %cst_142 : f32 to vector<32x128xf32>
    %321 = arith.addf %320, %319 : vector<32x128xf32>
    %322 = arith.mulf %308, %321 : vector<32x128xf32>
    %cst_143 = arith.constant 0.000000e+00 : f32
    %323 = vector.broadcast %cst_143 : f32 to vector<32x128xf32>
    %324 = arith.subf %323, %302 : vector<32x128xf32>
    %325 = arith.mulf %324, %302 : vector<32x128xf32>
    %326 = math.exp %325 : vector<32x128xf32>
    %327 = arith.mulf %322, %326 : vector<32x128xf32>
    %cst_144 = arith.constant 1.000000e+00 : f32
    %328 = vector.broadcast %cst_144 : f32 to vector<32x128xf32>
    %329 = arith.subf %328, %327 : vector<32x128xf32>
    %cst_145 = arith.constant 0.000000e+00 : f32
    %330 = vector.broadcast %cst_145 : f32 to vector<32x128xf32>
    %331 = arith.cmpf oge, %301, %330 : vector<32x128xf32>
    %cst_146 = arith.constant 0.000000e+00 : f32
    %332 = vector.broadcast %cst_146 : f32 to vector<32x128xf32>
    %333 = arith.subf %332, %329 : vector<32x128xf32>
    %334 = arith.select %331, %329, %333 : vector<32x128xi1>, vector<32x128xf32>
    %cst_147 = arith.constant 5.000000e-01 : f32
    %335 = vector.broadcast %cst_147 : f32 to vector<32x128xf32>
    %336 = arith.mulf %335, %299 : vector<32x128xf32>
    %cst_148 = arith.constant 1.000000e+00 : f32
    %337 = vector.broadcast %cst_148 : f32 to vector<32x128xf32>
    %338 = arith.addf %337, %334 : vector<32x128xf32>
    %339 = arith.mulf %336, %338 : vector<32x128xf32>
    %340 = arith.truncf %339 : vector<32x128xf32> to vector<32x128xbf16>
    %cst_149 = arith.constant dense<0.000000e+00> : vector<32x32xf32>
    %341 = tpu.matmul %340, %198, %cst_149 {dimension_numbers = #tpu.dot_dimension_numbers<[1], [0], [0], [1], [0, 0, 1, 1], [], []>} : vector<32x128xbf16>, vector<128x32xbf16>, vector<32x32xf32> -> vector<32x32xf32>
    %342 = vector.broadcast %199 : vector<1x32xf32> to vector<32x32xf32>
    %343 = arith.addf %341, %342 : vector<32x32xf32>
    %344 = arith.addf %275, %343 : vector<32x32xf32>
    %c0_150 = arith.constant 0 : index
    %c0_151 = arith.constant 0 : index
    %c0_152 = arith.constant 0 : index
    %345 = vector.load %arg31[%c0_150, %c0_151, %c0_152] : memref<4x8x32xf32, #tpu.memory_space<vmem>>, vector<4x8x32xf32>
    %c0_153 = arith.constant 0 : index
    %c0_154 = arith.constant 0 : index
    %346 = vector.load %arg32[%c0_153, %c0_154] : memref<1x128xf32, #tpu.memory_space<vmem>>, vector<1x128xf32>
    %c0_155 = arith.constant 0 : index
    %c0_156 = arith.constant 0 : index
    %347 = vector.load %arg33[%c0_155, %c0_156] : memref<1x128xf32, #tpu.memory_space<vmem>>, vector<1x128xf32>
    %c0_157 = arith.constant 0 : index
    %c0_158 = arith.constant 0 : index
    %348 = vector.load %arg34[%c0_157, %c0_158] : memref<128x64xbf16, #tpu.memory_space<vmem>>, vector<128x64xbf16>
    %349 = vector.extract_strided_slice %345 {offsets = [0, 0, 0], sizes = [1, 8, 32], strides = [1, 1, 1]} : vector<4x8x32xf32> to vector<1x8x32xf32>
    %350 = vector.shape_cast %349 : vector<1x8x32xf32> to vector<8x32xf32>
    %cst_159 = arith.constant dense<0.000000e+00> : vector<8x32xf32>
    %351 = tpu.matmul %350, %344, %cst_159 {dimension_numbers = #tpu.dot_dimension_numbers<[1], [0], [0], [1], [0, 0, 1, 1], [], []>} : vector<8x32xf32>, vector<32x32xf32>, vector<8x32xf32> -> vector<8x32xf32>
    %352 = vector.extract_strided_slice %345 {offsets = [1, 0, 0], sizes = [1, 8, 32], strides = [1, 1, 1]} : vector<4x8x32xf32> to vector<1x8x32xf32>
    %353 = vector.shape_cast %352 : vector<1x8x32xf32> to vector<8x32xf32>
    %cst_160 = arith.constant dense<0.000000e+00> : vector<8x32xf32>
    %354 = tpu.matmul %353, %344, %cst_160 {dimension_numbers = #tpu.dot_dimension_numbers<[1], [0], [0], [1], [0, 0, 1, 1], [], []>} : vector<8x32xf32>, vector<32x32xf32>, vector<8x32xf32> -> vector<8x32xf32>
    %355 = vector.extract_strided_slice %345 {offsets = [2, 0, 0], sizes = [1, 8, 32], strides = [1, 1, 1]} : vector<4x8x32xf32> to vector<1x8x32xf32>
    %356 = vector.shape_cast %355 : vector<1x8x32xf32> to vector<8x32xf32>
    %cst_161 = arith.constant dense<0.000000e+00> : vector<8x32xf32>
    %357 = tpu.matmul %356, %344, %cst_161 {dimension_numbers = #tpu.dot_dimension_numbers<[1], [0], [0], [1], [0, 0, 1, 1], [], []>} : vector<8x32xf32>, vector<32x32xf32>, vector<8x32xf32> -> vector<8x32xf32>
    %358 = vector.extract_strided_slice %345 {offsets = [3, 0, 0], sizes = [1, 8, 32], strides = [1, 1, 1]} : vector<4x8x32xf32> to vector<1x8x32xf32>
    %359 = vector.shape_cast %358 : vector<1x8x32xf32> to vector<8x32xf32>
    %cst_162 = arith.constant dense<0.000000e+00> : vector<8x32xf32>
    %360 = tpu.matmul %359, %344, %cst_162 {dimension_numbers = #tpu.dot_dimension_numbers<[1], [0], [0], [1], [0, 0, 1, 1], [], []>} : vector<8x32xf32>, vector<32x32xf32>, vector<8x32xf32> -> vector<8x32xf32>
    %361 = tpu.concatenate %351, %354, %357, %360 in 1 : vector<8x32xf32>, vector<8x32xf32>, vector<8x32xf32>, vector<8x32xf32> -> vector<8x128xf32>
    %cst_163 = arith.constant dense<0.000000e+00> : vector<8xf32>
    %362 = vector.multi_reduction <add>, %361, %cst_163 [1] : vector<8x128xf32> to vector<8xf32>
    %363 = vector.shape_cast %362 : vector<8xf32> to vector<8x1xf32>
    %cst_164 = arith.constant 1.280000e+02 : f32
    %364 = vector.broadcast %cst_164 : f32 to vector<8x1xf32>
    %365 = arith.divf %363, %364 : vector<8x1xf32>
    %366 = vector.broadcast %365 : vector<8x1xf32> to vector<8x128xf32>
    %367 = arith.subf %361, %366 : vector<8x128xf32>
    %368 = arith.mulf %367, %367 : vector<8x128xf32>
    %cst_165 = arith.constant dense<0.000000e+00> : vector<8xf32>
    %369 = vector.multi_reduction <add>, %368, %cst_165 [1] : vector<8x128xf32> to vector<8xf32>
    %370 = vector.shape_cast %369 : vector<8xf32> to vector<8x1xf32>
    %cst_166 = arith.constant 1.280000e+02 : f32
    %371 = vector.broadcast %cst_166 : f32 to vector<8x1xf32>
    %372 = arith.divf %370, %371 : vector<8x1xf32>
    %cst_167 = arith.constant 9.99999974E-6 : f32
    %373 = vector.broadcast %cst_167 : f32 to vector<8x1xf32>
    %374 = arith.addf %372, %373 : vector<8x1xf32>
    %375 = math.rsqrt %374 : vector<8x1xf32>
    %376 = vector.broadcast %375 : vector<8x1xf32> to vector<8x128xf32>
    %377 = arith.mulf %367, %376 : vector<8x128xf32>
    %378 = vector.broadcast %346 : vector<1x128xf32> to vector<8x128xf32>
    %379 = arith.mulf %377, %378 : vector<8x128xf32>
    %380 = vector.broadcast %347 : vector<1x128xf32> to vector<8x128xf32>
    %381 = arith.addf %379, %380 : vector<8x128xf32>
    %382 = arith.truncf %381 : vector<8x128xf32> to vector<8x128xbf16>
    %cst_168 = arith.constant dense<0.000000e+00> : vector<8x64xf32>
    %383 = tpu.matmul %382, %348, %cst_168 {dimension_numbers = #tpu.dot_dimension_numbers<[1], [0], [0], [1], [0, 0, 1, 1], [], []>} : vector<8x128xbf16>, vector<128x64xbf16>, vector<8x64xf32> -> vector<8x64xf32>
    %c0_169 = arith.constant 0 : index
    %c0_170 = arith.constant 0 : index
    %384 = vector.load %arg35[%c0_169, %c0_170] : memref<1x64xf32, #tpu.memory_space<vmem>>, vector<1x64xf32>
    %c0_171 = arith.constant 0 : index
    %c0_172 = arith.constant 0 : index
    %385 = vector.load %arg36[%c0_171, %c0_172] : memref<1x64xf32, #tpu.memory_space<vmem>>, vector<1x64xf32>
    %c0_173 = arith.constant 0 : index
    %c0_174 = arith.constant 0 : index
    %386 = vector.load %arg37[%c0_173, %c0_174] : memref<64x256xbf16, #tpu.memory_space<vmem>>, vector<64x256xbf16>
    %c0_175 = arith.constant 0 : index
    %c0_176 = arith.constant 0 : index
    %387 = vector.load %arg38[%c0_175, %c0_176] : memref<1x256xf32, #tpu.memory_space<vmem>>, vector<1x256xf32>
    %c0_177 = arith.constant 0 : index
    %c0_178 = arith.constant 0 : index
    %c0_179 = arith.constant 0 : index
    %388 = vector.load %arg39[%c0_177, %c0_178, %c0_179] : memref<4x8x8xf32, #tpu.memory_space<vmem>>, vector<4x8x8xf32>
    %c0_180 = arith.constant 0 : index
    %c0_181 = arith.constant 0 : index
    %389 = vector.load %arg40[%c0_180, %c0_181] : memref<64x64xbf16, #tpu.memory_space<vmem>>, vector<64x64xbf16>
    %c0_182 = arith.constant 0 : index
    %c0_183 = arith.constant 0 : index
    %390 = vector.load %arg41[%c0_182, %c0_183] : memref<1x64xf32, #tpu.memory_space<vmem>>, vector<1x64xf32>
    %c0_184 = arith.constant 0 : index
    %c0_185 = arith.constant 0 : index
    %391 = vector.load %arg42[%c0_184, %c0_185] : memref<1x64xf32, #tpu.memory_space<vmem>>, vector<1x64xf32>
    %c0_186 = arith.constant 0 : index
    %c0_187 = arith.constant 0 : index
    %392 = vector.load %arg43[%c0_186, %c0_187] : memref<1x64xf32, #tpu.memory_space<vmem>>, vector<1x64xf32>
    %c0_188 = arith.constant 0 : index
    %c0_189 = arith.constant 0 : index
    %393 = vector.load %arg44[%c0_188, %c0_189] : memref<64x256xbf16, #tpu.memory_space<vmem>>, vector<64x256xbf16>
    %c0_190 = arith.constant 0 : index
    %c0_191 = arith.constant 0 : index
    %394 = vector.load %arg45[%c0_190, %c0_191] : memref<1x256xf32, #tpu.memory_space<vmem>>, vector<1x256xf32>
    %c0_192 = arith.constant 0 : index
    %c0_193 = arith.constant 0 : index
    %395 = vector.load %arg46[%c0_192, %c0_193] : memref<256x64xbf16, #tpu.memory_space<vmem>>, vector<256x64xbf16>
    %c0_194 = arith.constant 0 : index
    %c0_195 = arith.constant 0 : index
    %396 = vector.load %arg47[%c0_194, %c0_195] : memref<1x64xf32, #tpu.memory_space<vmem>>, vector<1x64xf32>
    %cst_196 = arith.constant dense<0.000000e+00> : vector<8xf32>
    %397 = vector.multi_reduction <add>, %383, %cst_196 [1] : vector<8x64xf32> to vector<8xf32>
    %398 = vector.shape_cast %397 : vector<8xf32> to vector<8x1xf32>
    %cst_197 = arith.constant 6.400000e+01 : f32
    %399 = vector.broadcast %cst_197 : f32 to vector<8x1xf32>
    %400 = arith.divf %398, %399 : vector<8x1xf32>
    %401 = vector.broadcast %400 : vector<8x1xf32> to vector<8x64xf32>
    %402 = arith.subf %383, %401 : vector<8x64xf32>
    %403 = arith.mulf %402, %402 : vector<8x64xf32>
    %cst_198 = arith.constant dense<0.000000e+00> : vector<8xf32>
    %404 = vector.multi_reduction <add>, %403, %cst_198 [1] : vector<8x64xf32> to vector<8xf32>
    %405 = vector.shape_cast %404 : vector<8xf32> to vector<8x1xf32>
    %cst_199 = arith.constant 6.400000e+01 : f32
    %406 = vector.broadcast %cst_199 : f32 to vector<8x1xf32>
    %407 = arith.divf %405, %406 : vector<8x1xf32>
    %cst_200 = arith.constant 9.99999974E-6 : f32
    %408 = vector.broadcast %cst_200 : f32 to vector<8x1xf32>
    %409 = arith.addf %407, %408 : vector<8x1xf32>
    %410 = math.rsqrt %409 : vector<8x1xf32>
    %411 = vector.broadcast %410 : vector<8x1xf32> to vector<8x64xf32>
    %412 = arith.mulf %402, %411 : vector<8x64xf32>
    %413 = vector.broadcast %384 : vector<1x64xf32> to vector<8x64xf32>
    %414 = arith.mulf %412, %413 : vector<8x64xf32>
    %415 = vector.broadcast %385 : vector<1x64xf32> to vector<8x64xf32>
    %416 = arith.addf %414, %415 : vector<8x64xf32>
    %417 = arith.truncf %416 : vector<8x64xf32> to vector<8x64xbf16>
    %cst_201 = arith.constant dense<0.000000e+00> : vector<8x256xf32>
    %418 = tpu.matmul %417, %386, %cst_201 {dimension_numbers = #tpu.dot_dimension_numbers<[1], [0], [0], [1], [0, 0, 1, 1], [], []>} : vector<8x64xbf16>, vector<64x256xbf16>, vector<8x256xf32> -> vector<8x256xf32>
    %419 = vector.broadcast %387 : vector<1x256xf32> to vector<8x256xf32>
    %420 = arith.addf %418, %419 : vector<8x256xf32>
    %cst_202 = arith.constant 0.000000e+00 : f32
    %421 = vector.broadcast %cst_202 : f32 to vector<8x64xf32>
    %422 = vector.extract_strided_slice %420 {offsets = [0, 0], sizes = [8, 16], strides = [1, 1]} : vector<8x256xf32> to vector<8x16xf32>
    %cst_203 = arith.constant 2.500000e-01 : f32
    %423 = vector.broadcast %cst_203 : f32 to vector<8x16xf32>
    %424 = arith.mulf %422, %423 : vector<8x16xf32>
    %425 = vector.extract_strided_slice %420 {offsets = [0, 64], sizes = [8, 16], strides = [1, 1]} : vector<8x256xf32> to vector<8x16xf32>
    %426 = vector.extract_strided_slice %420 {offsets = [0, 128], sizes = [8, 16], strides = [1, 1]} : vector<8x256xf32> to vector<8x16xf32>
    %cst_204 = arith.constant dense<0.000000e+00> : vector<8x8xf32>
    %427 = tpu.matmul %424, %425, %cst_204 {dimension_numbers = #tpu.dot_dimension_numbers<[1], [1], [0], [0], [0, 0, 1, 0], [], []>} : vector<8x16xf32>, vector<8x16xf32>, vector<8x8xf32> -> vector<8x8xf32>
    %428 = vector.extract_strided_slice %388 {offsets = [0, 0, 0], sizes = [1, 8, 8], strides = [1, 1, 1]} : vector<4x8x8xf32> to vector<1x8x8xf32>
    %429 = vector.shape_cast %428 : vector<1x8x8xf32> to vector<8x8xf32>
    %430 = arith.addf %427, %429 : vector<8x8xf32>
    %cst_205 = arith.constant dense<0xFF800000> : vector<8xf32>
    %431 = vector.multi_reduction <maximumf>, %430, %cst_205 [1] : vector<8x8xf32> to vector<8xf32>
    %432 = vector.shape_cast %431 : vector<8xf32> to vector<8x1xf32>
    %433 = vector.broadcast %432 : vector<8x1xf32> to vector<8x8xf32>
    %434 = arith.subf %430, %433 : vector<8x8xf32>
    %435 = math.exp %434 : vector<8x8xf32>
    %cst_206 = arith.constant dense<0.000000e+00> : vector<8xf32>
    %436 = vector.multi_reduction <add>, %435, %cst_206 [1] : vector<8x8xf32> to vector<8xf32>
    %437 = vector.shape_cast %436 : vector<8xf32> to vector<8x1xf32>
    %438 = tpu.reciprocal %437 {approx = true} : vector<8x1xf32> -> vector<8x1xf32>
    %439 = vector.broadcast %438 : vector<8x1xf32> to vector<8x8xf32>
    %440 = arith.mulf %435, %439 : vector<8x8xf32>
    %cst_207 = arith.constant dense<0.000000e+00> : vector<8x16xf32>
    %441 = tpu.matmul %440, %426, %cst_207 {dimension_numbers = #tpu.dot_dimension_numbers<[1], [0], [0], [1], [0, 0, 1, 1], [], []>} : vector<8x8xf32>, vector<8x16xf32>, vector<8x16xf32> -> vector<8x16xf32>
    %442 = arith.truncf %441 : vector<8x16xf32> to vector<8x16xbf16>
    %443 = vector.extract_strided_slice %389 {offsets = [0, 0], sizes = [16, 64], strides = [1, 1]} : vector<64x64xbf16> to vector<16x64xbf16>
    %cst_208 = arith.constant dense<0.000000e+00> : vector<8x64xf32>
    %444 = tpu.matmul %442, %443, %cst_208 {dimension_numbers = #tpu.dot_dimension_numbers<[1], [0], [0], [1], [0, 0, 1, 1], [], []>} : vector<8x16xbf16>, vector<16x64xbf16>, vector<8x64xf32> -> vector<8x64xf32>
    %445 = arith.addf %421, %444 : vector<8x64xf32>
    %446 = vector.extract_strided_slice %420 {offsets = [0, 16], sizes = [8, 16], strides = [1, 1]} : vector<8x256xf32> to vector<8x16xf32>
    %cst_209 = arith.constant 2.500000e-01 : f32
    %447 = vector.broadcast %cst_209 : f32 to vector<8x16xf32>
    %448 = arith.mulf %446, %447 : vector<8x16xf32>
    %449 = vector.extract_strided_slice %420 {offsets = [0, 80], sizes = [8, 16], strides = [1, 1]} : vector<8x256xf32> to vector<8x16xf32>
    %450 = vector.extract_strided_slice %420 {offsets = [0, 144], sizes = [8, 16], strides = [1, 1]} : vector<8x256xf32> to vector<8x16xf32>
    %cst_210 = arith.constant dense<0.000000e+00> : vector<8x8xf32>
    %451 = tpu.matmul %448, %449, %cst_210 {dimension_numbers = #tpu.dot_dimension_numbers<[1], [1], [0], [0], [0, 0, 1, 0], [], []>} : vector<8x16xf32>, vector<8x16xf32>, vector<8x8xf32> -> vector<8x8xf32>
    %452 = vector.extract_strided_slice %388 {offsets = [1, 0, 0], sizes = [1, 8, 8], strides = [1, 1, 1]} : vector<4x8x8xf32> to vector<1x8x8xf32>
    %453 = vector.shape_cast %452 : vector<1x8x8xf32> to vector<8x8xf32>
    %454 = arith.addf %451, %453 : vector<8x8xf32>
    %cst_211 = arith.constant dense<0xFF800000> : vector<8xf32>
    %455 = vector.multi_reduction <maximumf>, %454, %cst_211 [1] : vector<8x8xf32> to vector<8xf32>
    %456 = vector.shape_cast %455 : vector<8xf32> to vector<8x1xf32>
    %457 = vector.broadcast %456 : vector<8x1xf32> to vector<8x8xf32>
    %458 = arith.subf %454, %457 : vector<8x8xf32>
    %459 = math.exp %458 : vector<8x8xf32>
    %cst_212 = arith.constant dense<0.000000e+00> : vector<8xf32>
    %460 = vector.multi_reduction <add>, %459, %cst_212 [1] : vector<8x8xf32> to vector<8xf32>
    %461 = vector.shape_cast %460 : vector<8xf32> to vector<8x1xf32>
    %462 = tpu.reciprocal %461 {approx = true} : vector<8x1xf32> -> vector<8x1xf32>
    %463 = vector.broadcast %462 : vector<8x1xf32> to vector<8x8xf32>
    %464 = arith.mulf %459, %463 : vector<8x8xf32>
    %cst_213 = arith.constant dense<0.000000e+00> : vector<8x16xf32>
    %465 = tpu.matmul %464, %450, %cst_213 {dimension_numbers = #tpu.dot_dimension_numbers<[1], [0], [0], [1], [0, 0, 1, 1], [], []>} : vector<8x8xf32>, vector<8x16xf32>, vector<8x16xf32> -> vector<8x16xf32>
    %466 = arith.truncf %465 : vector<8x16xf32> to vector<8x16xbf16>
    %467 = vector.extract_strided_slice %389 {offsets = [16, 0], sizes = [16, 64], strides = [1, 1]} : vector<64x64xbf16> to vector<16x64xbf16>
    %cst_214 = arith.constant dense<0.000000e+00> : vector<8x64xf32>
    %468 = tpu.matmul %466, %467, %cst_214 {dimension_numbers = #tpu.dot_dimension_numbers<[1], [0], [0], [1], [0, 0, 1, 1], [], []>} : vector<8x16xbf16>, vector<16x64xbf16>, vector<8x64xf32> -> vector<8x64xf32>
    %469 = arith.addf %445, %468 : vector<8x64xf32>
    %470 = vector.extract_strided_slice %420 {offsets = [0, 32], sizes = [8, 16], strides = [1, 1]} : vector<8x256xf32> to vector<8x16xf32>
    %cst_215 = arith.constant 2.500000e-01 : f32
    %471 = vector.broadcast %cst_215 : f32 to vector<8x16xf32>
    %472 = arith.mulf %470, %471 : vector<8x16xf32>
    %473 = vector.extract_strided_slice %420 {offsets = [0, 96], sizes = [8, 16], strides = [1, 1]} : vector<8x256xf32> to vector<8x16xf32>
    %474 = vector.extract_strided_slice %420 {offsets = [0, 160], sizes = [8, 16], strides = [1, 1]} : vector<8x256xf32> to vector<8x16xf32>
    %cst_216 = arith.constant dense<0.000000e+00> : vector<8x8xf32>
    %475 = tpu.matmul %472, %473, %cst_216 {dimension_numbers = #tpu.dot_dimension_numbers<[1], [1], [0], [0], [0, 0, 1, 0], [], []>} : vector<8x16xf32>, vector<8x16xf32>, vector<8x8xf32> -> vector<8x8xf32>
    %476 = vector.extract_strided_slice %388 {offsets = [2, 0, 0], sizes = [1, 8, 8], strides = [1, 1, 1]} : vector<4x8x8xf32> to vector<1x8x8xf32>
    %477 = vector.shape_cast %476 : vector<1x8x8xf32> to vector<8x8xf32>
    %478 = arith.addf %475, %477 : vector<8x8xf32>
    %cst_217 = arith.constant dense<0xFF800000> : vector<8xf32>
    %479 = vector.multi_reduction <maximumf>, %478, %cst_217 [1] : vector<8x8xf32> to vector<8xf32>
    %480 = vector.shape_cast %479 : vector<8xf32> to vector<8x1xf32>
    %481 = vector.broadcast %480 : vector<8x1xf32> to vector<8x8xf32>
    %482 = arith.subf %478, %481 : vector<8x8xf32>
    %483 = math.exp %482 : vector<8x8xf32>
    %cst_218 = arith.constant dense<0.000000e+00> : vector<8xf32>
    %484 = vector.multi_reduction <add>, %483, %cst_218 [1] : vector<8x8xf32> to vector<8xf32>
    %485 = vector.shape_cast %484 : vector<8xf32> to vector<8x1xf32>
    %486 = tpu.reciprocal %485 {approx = true} : vector<8x1xf32> -> vector<8x1xf32>
    %487 = vector.broadcast %486 : vector<8x1xf32> to vector<8x8xf32>
    %488 = arith.mulf %483, %487 : vector<8x8xf32>
    %cst_219 = arith.constant dense<0.000000e+00> : vector<8x16xf32>
    %489 = tpu.matmul %488, %474, %cst_219 {dimension_numbers = #tpu.dot_dimension_numbers<[1], [0], [0], [1], [0, 0, 1, 1], [], []>} : vector<8x8xf32>, vector<8x16xf32>, vector<8x16xf32> -> vector<8x16xf32>
    %490 = arith.truncf %489 : vector<8x16xf32> to vector<8x16xbf16>
    %491 = vector.extract_strided_slice %389 {offsets = [32, 0], sizes = [16, 64], strides = [1, 1]} : vector<64x64xbf16> to vector<16x64xbf16>
    %cst_220 = arith.constant dense<0.000000e+00> : vector<8x64xf32>
    %492 = tpu.matmul %490, %491, %cst_220 {dimension_numbers = #tpu.dot_dimension_numbers<[1], [0], [0], [1], [0, 0, 1, 1], [], []>} : vector<8x16xbf16>, vector<16x64xbf16>, vector<8x64xf32> -> vector<8x64xf32>
    %493 = arith.addf %469, %492 : vector<8x64xf32>
    %494 = vector.extract_strided_slice %420 {offsets = [0, 48], sizes = [8, 16], strides = [1, 1]} : vector<8x256xf32> to vector<8x16xf32>
    %cst_221 = arith.constant 2.500000e-01 : f32
    %495 = vector.broadcast %cst_221 : f32 to vector<8x16xf32>
    %496 = arith.mulf %494, %495 : vector<8x16xf32>
    %497 = vector.extract_strided_slice %420 {offsets = [0, 112], sizes = [8, 16], strides = [1, 1]} : vector<8x256xf32> to vector<8x16xf32>
    %498 = vector.extract_strided_slice %420 {offsets = [0, 176], sizes = [8, 16], strides = [1, 1]} : vector<8x256xf32> to vector<8x16xf32>
    %cst_222 = arith.constant dense<0.000000e+00> : vector<8x8xf32>
    %499 = tpu.matmul %496, %497, %cst_222 {dimension_numbers = #tpu.dot_dimension_numbers<[1], [1], [0], [0], [0, 0, 1, 0], [], []>} : vector<8x16xf32>, vector<8x16xf32>, vector<8x8xf32> -> vector<8x8xf32>
    %500 = vector.extract_strided_slice %388 {offsets = [3, 0, 0], sizes = [1, 8, 8], strides = [1, 1, 1]} : vector<4x8x8xf32> to vector<1x8x8xf32>
    %501 = vector.shape_cast %500 : vector<1x8x8xf32> to vector<8x8xf32>
    %502 = arith.addf %499, %501 : vector<8x8xf32>
    %cst_223 = arith.constant dense<0xFF800000> : vector<8xf32>
    %503 = vector.multi_reduction <maximumf>, %502, %cst_223 [1] : vector<8x8xf32> to vector<8xf32>
    %504 = vector.shape_cast %503 : vector<8xf32> to vector<8x1xf32>
    %505 = vector.broadcast %504 : vector<8x1xf32> to vector<8x8xf32>
    %506 = arith.subf %502, %505 : vector<8x8xf32>
    %507 = math.exp %506 : vector<8x8xf32>
    %cst_224 = arith.constant dense<0.000000e+00> : vector<8xf32>
    %508 = vector.multi_reduction <add>, %507, %cst_224 [1] : vector<8x8xf32> to vector<8xf32>
    %509 = vector.shape_cast %508 : vector<8xf32> to vector<8x1xf32>
    %510 = tpu.reciprocal %509 {approx = true} : vector<8x1xf32> -> vector<8x1xf32>
    %511 = vector.broadcast %510 : vector<8x1xf32> to vector<8x8xf32>
    %512 = arith.mulf %507, %511 : vector<8x8xf32>
    %cst_225 = arith.constant dense<0.000000e+00> : vector<8x16xf32>
    %513 = tpu.matmul %512, %498, %cst_225 {dimension_numbers = #tpu.dot_dimension_numbers<[1], [0], [0], [1], [0, 0, 1, 1], [], []>} : vector<8x8xf32>, vector<8x16xf32>, vector<8x16xf32> -> vector<8x16xf32>
    %514 = arith.truncf %513 : vector<8x16xf32> to vector<8x16xbf16>
    %515 = vector.extract_strided_slice %389 {offsets = [48, 0], sizes = [16, 64], strides = [1, 1]} : vector<64x64xbf16> to vector<16x64xbf16>
    %cst_226 = arith.constant dense<0.000000e+00> : vector<8x64xf32>
    %516 = tpu.matmul %514, %515, %cst_226 {dimension_numbers = #tpu.dot_dimension_numbers<[1], [0], [0], [1], [0, 0, 1, 1], [], []>} : vector<8x16xbf16>, vector<16x64xbf16>, vector<8x64xf32> -> vector<8x64xf32>
    %517 = arith.addf %493, %516 : vector<8x64xf32>
    %518 = arith.addf %383, %517 : vector<8x64xf32>
    %519 = vector.broadcast %390 : vector<1x64xf32> to vector<8x64xf32>
    %520 = arith.addf %518, %519 : vector<8x64xf32>
    %cst_227 = arith.constant dense<0.000000e+00> : vector<8xf32>
    %521 = vector.multi_reduction <add>, %520, %cst_227 [1] : vector<8x64xf32> to vector<8xf32>
    %522 = vector.shape_cast %521 : vector<8xf32> to vector<8x1xf32>
    %cst_228 = arith.constant 6.400000e+01 : f32
    %523 = vector.broadcast %cst_228 : f32 to vector<8x1xf32>
    %524 = arith.divf %522, %523 : vector<8x1xf32>
    %525 = vector.broadcast %524 : vector<8x1xf32> to vector<8x64xf32>
    %526 = arith.subf %520, %525 : vector<8x64xf32>
    %527 = arith.mulf %526, %526 : vector<8x64xf32>
    %cst_229 = arith.constant dense<0.000000e+00> : vector<8xf32>
    %528 = vector.multi_reduction <add>, %527, %cst_229 [1] : vector<8x64xf32> to vector<8xf32>
    %529 = vector.shape_cast %528 : vector<8xf32> to vector<8x1xf32>
    %cst_230 = arith.constant 6.400000e+01 : f32
    %530 = vector.broadcast %cst_230 : f32 to vector<8x1xf32>
    %531 = arith.divf %529, %530 : vector<8x1xf32>
    %cst_231 = arith.constant 9.99999974E-6 : f32
    %532 = vector.broadcast %cst_231 : f32 to vector<8x1xf32>
    %533 = arith.addf %531, %532 : vector<8x1xf32>
    %534 = math.rsqrt %533 : vector<8x1xf32>
    %535 = vector.broadcast %534 : vector<8x1xf32> to vector<8x64xf32>
    %536 = arith.mulf %526, %535 : vector<8x64xf32>
    %537 = vector.broadcast %391 : vector<1x64xf32> to vector<8x64xf32>
    %538 = arith.mulf %536, %537 : vector<8x64xf32>
    %539 = vector.broadcast %392 : vector<1x64xf32> to vector<8x64xf32>
    %540 = arith.addf %538, %539 : vector<8x64xf32>
    %541 = arith.truncf %540 : vector<8x64xf32> to vector<8x64xbf16>
    %cst_232 = arith.constant dense<0.000000e+00> : vector<8x256xf32>
    %542 = tpu.matmul %541, %393, %cst_232 {dimension_numbers = #tpu.dot_dimension_numbers<[1], [0], [0], [1], [0, 0, 1, 1], [], []>} : vector<8x64xbf16>, vector<64x256xbf16>, vector<8x256xf32> -> vector<8x256xf32>
    %543 = vector.broadcast %394 : vector<1x256xf32> to vector<8x256xf32>
    %544 = arith.addf %542, %543 : vector<8x256xf32>
    %cst_233 = arith.constant 0.707106769 : f32
    %545 = vector.broadcast %cst_233 : f32 to vector<8x256xf32>
    %546 = arith.mulf %544, %545 : vector<8x256xf32>
    %547 = math.absf %546 : vector<8x256xf32>
    %cst_234 = arith.constant 0.327591091 : f32
    %548 = vector.broadcast %cst_234 : f32 to vector<8x256xf32>
    %549 = arith.mulf %548, %547 : vector<8x256xf32>
    %cst_235 = arith.constant 1.000000e+00 : f32
    %550 = vector.broadcast %cst_235 : f32 to vector<8x256xf32>
    %551 = arith.addf %550, %549 : vector<8x256xf32>
    %cst_236 = arith.constant 1.000000e+00 : f32
    %552 = vector.broadcast %cst_236 : f32 to vector<8x256xf32>
    %553 = arith.divf %552, %551 : vector<8x256xf32>
    %cst_237 = arith.constant 1.06140542 : f32
    %554 = vector.broadcast %cst_237 : f32 to vector<8x256xf32>
    %555 = arith.mulf %553, %554 : vector<8x256xf32>
    %cst_238 = arith.constant -1.45315206 : f32
    %556 = vector.broadcast %cst_238 : f32 to vector<8x256xf32>
    %557 = arith.addf %556, %555 : vector<8x256xf32>
    %558 = arith.mulf %553, %557 : vector<8x256xf32>
    %cst_239 = arith.constant 1.42141378 : f32
    %559 = vector.broadcast %cst_239 : f32 to vector<8x256xf32>
    %560 = arith.addf %559, %558 : vector<8x256xf32>
    %561 = arith.mulf %553, %560 : vector<8x256xf32>
    %cst_240 = arith.constant -0.284496725 : f32
    %562 = vector.broadcast %cst_240 : f32 to vector<8x256xf32>
    %563 = arith.addf %562, %561 : vector<8x256xf32>
    %564 = arith.mulf %553, %563 : vector<8x256xf32>
    %cst_241 = arith.constant 0.254829586 : f32
    %565 = vector.broadcast %cst_241 : f32 to vector<8x256xf32>
    %566 = arith.addf %565, %564 : vector<8x256xf32>
    %567 = arith.mulf %553, %566 : vector<8x256xf32>
    %cst_242 = arith.constant 0.000000e+00 : f32
    %568 = vector.broadcast %cst_242 : f32 to vector<8x256xf32>
    %569 = arith.subf %568, %547 : vector<8x256xf32>
    %570 = arith.mulf %569, %547 : vector<8x256xf32>
    %571 = math.exp %570 : vector<8x256xf32>
    %572 = arith.mulf %567, %571 : vector<8x256xf32>
    %cst_243 = arith.constant 1.000000e+00 : f32
    %573 = vector.broadcast %cst_243 : f32 to vector<8x256xf32>
    %574 = arith.subf %573, %572 : vector<8x256xf32>
    %cst_244 = arith.constant 0.000000e+00 : f32
    %575 = vector.broadcast %cst_244 : f32 to vector<8x256xf32>
    %576 = arith.cmpf oge, %546, %575 : vector<8x256xf32>
    %cst_245 = arith.constant 0.000000e+00 : f32
    %577 = vector.broadcast %cst_245 : f32 to vector<8x256xf32>
    %578 = arith.subf %577, %574 : vector<8x256xf32>
    %579 = arith.select %576, %574, %578 : vector<8x256xi1>, vector<8x256xf32>
    %cst_246 = arith.constant 5.000000e-01 : f32
    %580 = vector.broadcast %cst_246 : f32 to vector<8x256xf32>
    %581 = arith.mulf %580, %544 : vector<8x256xf32>
    %cst_247 = arith.constant 1.000000e+00 : f32
    %582 = vector.broadcast %cst_247 : f32 to vector<8x256xf32>
    %583 = arith.addf %582, %579 : vector<8x256xf32>
    %584 = arith.mulf %581, %583 : vector<8x256xf32>
    %585 = arith.truncf %584 : vector<8x256xf32> to vector<8x256xbf16>
    %cst_248 = arith.constant dense<0.000000e+00> : vector<8x64xf32>
    %586 = tpu.matmul %585, %395, %cst_248 {dimension_numbers = #tpu.dot_dimension_numbers<[1], [0], [0], [1], [0, 0, 1, 1], [], []>} : vector<8x256xbf16>, vector<256x64xbf16>, vector<8x64xf32> -> vector<8x64xf32>
    %587 = vector.broadcast %396 : vector<1x64xf32> to vector<8x64xf32>
    %588 = arith.addf %586, %587 : vector<8x64xf32>
    %589 = arith.addf %520, %588 : vector<8x64xf32>
    %c0_249 = arith.constant 0 : index
    %c0_250 = arith.constant 0 : index
    %590 = vector.load %arg48[%c0_249, %c0_250] : memref<1x64xf32, #tpu.memory_space<vmem>>, vector<1x64xf32>
    %c0_251 = arith.constant 0 : index
    %c0_252 = arith.constant 0 : index
    %591 = vector.load %arg49[%c0_251, %c0_252] : memref<1x64xf32, #tpu.memory_space<vmem>>, vector<1x64xf32>
    %c0_253 = arith.constant 0 : index
    %c0_254 = arith.constant 0 : index
    %592 = vector.load %arg50[%c0_253, %c0_254] : memref<64x256xbf16, #tpu.memory_space<vmem>>, vector<64x256xbf16>
    %c0_255 = arith.constant 0 : index
    %c0_256 = arith.constant 0 : index
    %593 = vector.load %arg51[%c0_255, %c0_256] : memref<1x256xf32, #tpu.memory_space<vmem>>, vector<1x256xf32>
    %c0_257 = arith.constant 0 : index
    %c0_258 = arith.constant 0 : index
    %c0_259 = arith.constant 0 : index
    %594 = vector.load %arg52[%c0_257, %c0_258, %c0_259] : memref<4x8x8xf32, #tpu.memory_space<vmem>>, vector<4x8x8xf32>
    %c0_260 = arith.constant 0 : index
    %c0_261 = arith.constant 0 : index
    %595 = vector.load %arg53[%c0_260, %c0_261] : memref<64x64xbf16, #tpu.memory_space<vmem>>, vector<64x64xbf16>
    %c0_262 = arith.constant 0 : index
    %c0_263 = arith.constant 0 : index
    %596 = vector.load %arg54[%c0_262, %c0_263] : memref<1x64xf32, #tpu.memory_space<vmem>>, vector<1x64xf32>
    %c0_264 = arith.constant 0 : index
    %c0_265 = arith.constant 0 : index
    %597 = vector.load %arg55[%c0_264, %c0_265] : memref<1x64xf32, #tpu.memory_space<vmem>>, vector<1x64xf32>
    %c0_266 = arith.constant 0 : index
    %c0_267 = arith.constant 0 : index
    %598 = vector.load %arg56[%c0_266, %c0_267] : memref<1x64xf32, #tpu.memory_space<vmem>>, vector<1x64xf32>
    %c0_268 = arith.constant 0 : index
    %c0_269 = arith.constant 0 : index
    %599 = vector.load %arg57[%c0_268, %c0_269] : memref<64x256xbf16, #tpu.memory_space<vmem>>, vector<64x256xbf16>
    %c0_270 = arith.constant 0 : index
    %c0_271 = arith.constant 0 : index
    %600 = vector.load %arg58[%c0_270, %c0_271] : memref<1x256xf32, #tpu.memory_space<vmem>>, vector<1x256xf32>
    %c0_272 = arith.constant 0 : index
    %c0_273 = arith.constant 0 : index
    %601 = vector.load %arg59[%c0_272, %c0_273] : memref<256x64xbf16, #tpu.memory_space<vmem>>, vector<256x64xbf16>
    %c0_274 = arith.constant 0 : index
    %c0_275 = arith.constant 0 : index
    %602 = vector.load %arg60[%c0_274, %c0_275] : memref<1x64xf32, #tpu.memory_space<vmem>>, vector<1x64xf32>
    %cst_276 = arith.constant dense<0.000000e+00> : vector<8xf32>
    %603 = vector.multi_reduction <add>, %589, %cst_276 [1] : vector<8x64xf32> to vector<8xf32>
    %604 = vector.shape_cast %603 : vector<8xf32> to vector<8x1xf32>
    %cst_277 = arith.constant 6.400000e+01 : f32
    %605 = vector.broadcast %cst_277 : f32 to vector<8x1xf32>
    %606 = arith.divf %604, %605 : vector<8x1xf32>
    %607 = vector.broadcast %606 : vector<8x1xf32> to vector<8x64xf32>
    %608 = arith.subf %589, %607 : vector<8x64xf32>
    %609 = arith.mulf %608, %608 : vector<8x64xf32>
    %cst_278 = arith.constant dense<0.000000e+00> : vector<8xf32>
    %610 = vector.multi_reduction <add>, %609, %cst_278 [1] : vector<8x64xf32> to vector<8xf32>
    %611 = vector.shape_cast %610 : vector<8xf32> to vector<8x1xf32>
    %cst_279 = arith.constant 6.400000e+01 : f32
    %612 = vector.broadcast %cst_279 : f32 to vector<8x1xf32>
    %613 = arith.divf %611, %612 : vector<8x1xf32>
    %cst_280 = arith.constant 9.99999974E-6 : f32
    %614 = vector.broadcast %cst_280 : f32 to vector<8x1xf32>
    %615 = arith.addf %613, %614 : vector<8x1xf32>
    %616 = math.rsqrt %615 : vector<8x1xf32>
    %617 = vector.broadcast %616 : vector<8x1xf32> to vector<8x64xf32>
    %618 = arith.mulf %608, %617 : vector<8x64xf32>
    %619 = vector.broadcast %590 : vector<1x64xf32> to vector<8x64xf32>
    %620 = arith.mulf %618, %619 : vector<8x64xf32>
    %621 = vector.broadcast %591 : vector<1x64xf32> to vector<8x64xf32>
    %622 = arith.addf %620, %621 : vector<8x64xf32>
    %623 = arith.truncf %622 : vector<8x64xf32> to vector<8x64xbf16>
    %cst_281 = arith.constant dense<0.000000e+00> : vector<8x256xf32>
    %624 = tpu.matmul %623, %592, %cst_281 {dimension_numbers = #tpu.dot_dimension_numbers<[1], [0], [0], [1], [0, 0, 1, 1], [], []>} : vector<8x64xbf16>, vector<64x256xbf16>, vector<8x256xf32> -> vector<8x256xf32>
    %625 = vector.broadcast %593 : vector<1x256xf32> to vector<8x256xf32>
    %626 = arith.addf %624, %625 : vector<8x256xf32>
    %cst_282 = arith.constant 0.000000e+00 : f32
    %627 = vector.broadcast %cst_282 : f32 to vector<8x64xf32>
    %628 = vector.extract_strided_slice %626 {offsets = [0, 0], sizes = [8, 16], strides = [1, 1]} : vector<8x256xf32> to vector<8x16xf32>
    %cst_283 = arith.constant 2.500000e-01 : f32
    %629 = vector.broadcast %cst_283 : f32 to vector<8x16xf32>
    %630 = arith.mulf %628, %629 : vector<8x16xf32>
    %631 = vector.extract_strided_slice %626 {offsets = [0, 64], sizes = [8, 16], strides = [1, 1]} : vector<8x256xf32> to vector<8x16xf32>
    %632 = vector.extract_strided_slice %626 {offsets = [0, 128], sizes = [8, 16], strides = [1, 1]} : vector<8x256xf32> to vector<8x16xf32>
    %cst_284 = arith.constant dense<0.000000e+00> : vector<8x8xf32>
    %633 = tpu.matmul %630, %631, %cst_284 {dimension_numbers = #tpu.dot_dimension_numbers<[1], [1], [0], [0], [0, 0, 1, 0], [], []>} : vector<8x16xf32>, vector<8x16xf32>, vector<8x8xf32> -> vector<8x8xf32>
    %634 = vector.extract_strided_slice %594 {offsets = [0, 0, 0], sizes = [1, 8, 8], strides = [1, 1, 1]} : vector<4x8x8xf32> to vector<1x8x8xf32>
    %635 = vector.shape_cast %634 : vector<1x8x8xf32> to vector<8x8xf32>
    %636 = arith.addf %633, %635 : vector<8x8xf32>
    %cst_285 = arith.constant dense<0xFF800000> : vector<8xf32>
    %637 = vector.multi_reduction <maximumf>, %636, %cst_285 [1] : vector<8x8xf32> to vector<8xf32>
    %638 = vector.shape_cast %637 : vector<8xf32> to vector<8x1xf32>
    %639 = vector.broadcast %638 : vector<8x1xf32> to vector<8x8xf32>
    %640 = arith.subf %636, %639 : vector<8x8xf32>
    %641 = math.exp %640 : vector<8x8xf32>
    %cst_286 = arith.constant dense<0.000000e+00> : vector<8xf32>
    %642 = vector.multi_reduction <add>, %641, %cst_286 [1] : vector<8x8xf32> to vector<8xf32>
    %643 = vector.shape_cast %642 : vector<8xf32> to vector<8x1xf32>
    %644 = tpu.reciprocal %643 {approx = true} : vector<8x1xf32> -> vector<8x1xf32>
    %645 = vector.broadcast %644 : vector<8x1xf32> to vector<8x8xf32>
    %646 = arith.mulf %641, %645 : vector<8x8xf32>
    %cst_287 = arith.constant dense<0.000000e+00> : vector<8x16xf32>
    %647 = tpu.matmul %646, %632, %cst_287 {dimension_numbers = #tpu.dot_dimension_numbers<[1], [0], [0], [1], [0, 0, 1, 1], [], []>} : vector<8x8xf32>, vector<8x16xf32>, vector<8x16xf32> -> vector<8x16xf32>
    %648 = arith.truncf %647 : vector<8x16xf32> to vector<8x16xbf16>
    %649 = vector.extract_strided_slice %595 {offsets = [0, 0], sizes = [16, 64], strides = [1, 1]} : vector<64x64xbf16> to vector<16x64xbf16>
    %cst_288 = arith.constant dense<0.000000e+00> : vector<8x64xf32>
    %650 = tpu.matmul %648, %649, %cst_288 {dimension_numbers = #tpu.dot_dimension_numbers<[1], [0], [0], [1], [0, 0, 1, 1], [], []>} : vector<8x16xbf16>, vector<16x64xbf16>, vector<8x64xf32> -> vector<8x64xf32>
    %651 = arith.addf %627, %650 : vector<8x64xf32>
    %652 = vector.extract_strided_slice %626 {offsets = [0, 16], sizes = [8, 16], strides = [1, 1]} : vector<8x256xf32> to vector<8x16xf32>
    %cst_289 = arith.constant 2.500000e-01 : f32
    %653 = vector.broadcast %cst_289 : f32 to vector<8x16xf32>
    %654 = arith.mulf %652, %653 : vector<8x16xf32>
    %655 = vector.extract_strided_slice %626 {offsets = [0, 80], sizes = [8, 16], strides = [1, 1]} : vector<8x256xf32> to vector<8x16xf32>
    %656 = vector.extract_strided_slice %626 {offsets = [0, 144], sizes = [8, 16], strides = [1, 1]} : vector<8x256xf32> to vector<8x16xf32>
    %cst_290 = arith.constant dense<0.000000e+00> : vector<8x8xf32>
    %657 = tpu.matmul %654, %655, %cst_290 {dimension_numbers = #tpu.dot_dimension_numbers<[1], [1], [0], [0], [0, 0, 1, 0], [], []>} : vector<8x16xf32>, vector<8x16xf32>, vector<8x8xf32> -> vector<8x8xf32>
    %658 = vector.extract_strided_slice %594 {offsets = [1, 0, 0], sizes = [1, 8, 8], strides = [1, 1, 1]} : vector<4x8x8xf32> to vector<1x8x8xf32>
    %659 = vector.shape_cast %658 : vector<1x8x8xf32> to vector<8x8xf32>
    %660 = arith.addf %657, %659 : vector<8x8xf32>
    %cst_291 = arith.constant dense<0xFF800000> : vector<8xf32>
    %661 = vector.multi_reduction <maximumf>, %660, %cst_291 [1] : vector<8x8xf32> to vector<8xf32>
    %662 = vector.shape_cast %661 : vector<8xf32> to vector<8x1xf32>
    %663 = vector.broadcast %662 : vector<8x1xf32> to vector<8x8xf32>
    %664 = arith.subf %660, %663 : vector<8x8xf32>
    %665 = math.exp %664 : vector<8x8xf32>
    %cst_292 = arith.constant dense<0.000000e+00> : vector<8xf32>
    %666 = vector.multi_reduction <add>, %665, %cst_292 [1] : vector<8x8xf32> to vector<8xf32>
    %667 = vector.shape_cast %666 : vector<8xf32> to vector<8x1xf32>
    %668 = tpu.reciprocal %667 {approx = true} : vector<8x1xf32> -> vector<8x1xf32>
    %669 = vector.broadcast %668 : vector<8x1xf32> to vector<8x8xf32>
    %670 = arith.mulf %665, %669 : vector<8x8xf32>
    %cst_293 = arith.constant dense<0.000000e+00> : vector<8x16xf32>
    %671 = tpu.matmul %670, %656, %cst_293 {dimension_numbers = #tpu.dot_dimension_numbers<[1], [0], [0], [1], [0, 0, 1, 1], [], []>} : vector<8x8xf32>, vector<8x16xf32>, vector<8x16xf32> -> vector<8x16xf32>
    %672 = arith.truncf %671 : vector<8x16xf32> to vector<8x16xbf16>
    %673 = vector.extract_strided_slice %595 {offsets = [16, 0], sizes = [16, 64], strides = [1, 1]} : vector<64x64xbf16> to vector<16x64xbf16>
    %cst_294 = arith.constant dense<0.000000e+00> : vector<8x64xf32>
    %674 = tpu.matmul %672, %673, %cst_294 {dimension_numbers = #tpu.dot_dimension_numbers<[1], [0], [0], [1], [0, 0, 1, 1], [], []>} : vector<8x16xbf16>, vector<16x64xbf16>, vector<8x64xf32> -> vector<8x64xf32>
    %675 = arith.addf %651, %674 : vector<8x64xf32>
    %676 = vector.extract_strided_slice %626 {offsets = [0, 32], sizes = [8, 16], strides = [1, 1]} : vector<8x256xf32> to vector<8x16xf32>
    %cst_295 = arith.constant 2.500000e-01 : f32
    %677 = vector.broadcast %cst_295 : f32 to vector<8x16xf32>
    %678 = arith.mulf %676, %677 : vector<8x16xf32>
    %679 = vector.extract_strided_slice %626 {offsets = [0, 96], sizes = [8, 16], strides = [1, 1]} : vector<8x256xf32> to vector<8x16xf32>
    %680 = vector.extract_strided_slice %626 {offsets = [0, 160], sizes = [8, 16], strides = [1, 1]} : vector<8x256xf32> to vector<8x16xf32>
    %cst_296 = arith.constant dense<0.000000e+00> : vector<8x8xf32>
    %681 = tpu.matmul %678, %679, %cst_296 {dimension_numbers = #tpu.dot_dimension_numbers<[1], [1], [0], [0], [0, 0, 1, 0], [], []>} : vector<8x16xf32>, vector<8x16xf32>, vector<8x8xf32> -> vector<8x8xf32>
    %682 = vector.extract_strided_slice %594 {offsets = [2, 0, 0], sizes = [1, 8, 8], strides = [1, 1, 1]} : vector<4x8x8xf32> to vector<1x8x8xf32>
    %683 = vector.shape_cast %682 : vector<1x8x8xf32> to vector<8x8xf32>
    %684 = arith.addf %681, %683 : vector<8x8xf32>
    %cst_297 = arith.constant dense<0xFF800000> : vector<8xf32>
    %685 = vector.multi_reduction <maximumf>, %684, %cst_297 [1] : vector<8x8xf32> to vector<8xf32>
    %686 = vector.shape_cast %685 : vector<8xf32> to vector<8x1xf32>
    %687 = vector.broadcast %686 : vector<8x1xf32> to vector<8x8xf32>
    %688 = arith.subf %684, %687 : vector<8x8xf32>
    %689 = math.exp %688 : vector<8x8xf32>
    %cst_298 = arith.constant dense<0.000000e+00> : vector<8xf32>
    %690 = vector.multi_reduction <add>, %689, %cst_298 [1] : vector<8x8xf32> to vector<8xf32>
    %691 = vector.shape_cast %690 : vector<8xf32> to vector<8x1xf32>
    %692 = tpu.reciprocal %691 {approx = true} : vector<8x1xf32> -> vector<8x1xf32>
    %693 = vector.broadcast %692 : vector<8x1xf32> to vector<8x8xf32>
    %694 = arith.mulf %689, %693 : vector<8x8xf32>
    %cst_299 = arith.constant dense<0.000000e+00> : vector<8x16xf32>
    %695 = tpu.matmul %694, %680, %cst_299 {dimension_numbers = #tpu.dot_dimension_numbers<[1], [0], [0], [1], [0, 0, 1, 1], [], []>} : vector<8x8xf32>, vector<8x16xf32>, vector<8x16xf32> -> vector<8x16xf32>
    %696 = arith.truncf %695 : vector<8x16xf32> to vector<8x16xbf16>
    %697 = vector.extract_strided_slice %595 {offsets = [32, 0], sizes = [16, 64], strides = [1, 1]} : vector<64x64xbf16> to vector<16x64xbf16>
    %cst_300 = arith.constant dense<0.000000e+00> : vector<8x64xf32>
    %698 = tpu.matmul %696, %697, %cst_300 {dimension_numbers = #tpu.dot_dimension_numbers<[1], [0], [0], [1], [0, 0, 1, 1], [], []>} : vector<8x16xbf16>, vector<16x64xbf16>, vector<8x64xf32> -> vector<8x64xf32>
    %699 = arith.addf %675, %698 : vector<8x64xf32>
    %700 = vector.extract_strided_slice %626 {offsets = [0, 48], sizes = [8, 16], strides = [1, 1]} : vector<8x256xf32> to vector<8x16xf32>
    %cst_301 = arith.constant 2.500000e-01 : f32
    %701 = vector.broadcast %cst_301 : f32 to vector<8x16xf32>
    %702 = arith.mulf %700, %701 : vector<8x16xf32>
    %703 = vector.extract_strided_slice %626 {offsets = [0, 112], sizes = [8, 16], strides = [1, 1]} : vector<8x256xf32> to vector<8x16xf32>
    %704 = vector.extract_strided_slice %626 {offsets = [0, 176], sizes = [8, 16], strides = [1, 1]} : vector<8x256xf32> to vector<8x16xf32>
    %cst_302 = arith.constant dense<0.000000e+00> : vector<8x8xf32>
    %705 = tpu.matmul %702, %703, %cst_302 {dimension_numbers = #tpu.dot_dimension_numbers<[1], [1], [0], [0], [0, 0, 1, 0], [], []>} : vector<8x16xf32>, vector<8x16xf32>, vector<8x8xf32> -> vector<8x8xf32>
    %706 = vector.extract_strided_slice %594 {offsets = [3, 0, 0], sizes = [1, 8, 8], strides = [1, 1, 1]} : vector<4x8x8xf32> to vector<1x8x8xf32>
    %707 = vector.shape_cast %706 : vector<1x8x8xf32> to vector<8x8xf32>
    %708 = arith.addf %705, %707 : vector<8x8xf32>
    %cst_303 = arith.constant dense<0xFF800000> : vector<8xf32>
    %709 = vector.multi_reduction <maximumf>, %708, %cst_303 [1] : vector<8x8xf32> to vector<8xf32>
    %710 = vector.shape_cast %709 : vector<8xf32> to vector<8x1xf32>
    %711 = vector.broadcast %710 : vector<8x1xf32> to vector<8x8xf32>
    %712 = arith.subf %708, %711 : vector<8x8xf32>
    %713 = math.exp %712 : vector<8x8xf32>
    %cst_304 = arith.constant dense<0.000000e+00> : vector<8xf32>
    %714 = vector.multi_reduction <add>, %713, %cst_304 [1] : vector<8x8xf32> to vector<8xf32>
    %715 = vector.shape_cast %714 : vector<8xf32> to vector<8x1xf32>
    %716 = tpu.reciprocal %715 {approx = true} : vector<8x1xf32> -> vector<8x1xf32>
    %717 = vector.broadcast %716 : vector<8x1xf32> to vector<8x8xf32>
    %718 = arith.mulf %713, %717 : vector<8x8xf32>
    %cst_305 = arith.constant dense<0.000000e+00> : vector<8x16xf32>
    %719 = tpu.matmul %718, %704, %cst_305 {dimension_numbers = #tpu.dot_dimension_numbers<[1], [0], [0], [1], [0, 0, 1, 1], [], []>} : vector<8x8xf32>, vector<8x16xf32>, vector<8x16xf32> -> vector<8x16xf32>
    %720 = arith.truncf %719 : vector<8x16xf32> to vector<8x16xbf16>
    %721 = vector.extract_strided_slice %595 {offsets = [48, 0], sizes = [16, 64], strides = [1, 1]} : vector<64x64xbf16> to vector<16x64xbf16>
    %cst_306 = arith.constant dense<0.000000e+00> : vector<8x64xf32>
    %722 = tpu.matmul %720, %721, %cst_306 {dimension_numbers = #tpu.dot_dimension_numbers<[1], [0], [0], [1], [0, 0, 1, 1], [], []>} : vector<8x16xbf16>, vector<16x64xbf16>, vector<8x64xf32> -> vector<8x64xf32>
    %723 = arith.addf %699, %722 : vector<8x64xf32>
    %724 = arith.addf %589, %723 : vector<8x64xf32>
    %725 = vector.broadcast %596 : vector<1x64xf32> to vector<8x64xf32>
    %726 = arith.addf %724, %725 : vector<8x64xf32>
    %cst_307 = arith.constant dense<0.000000e+00> : vector<8xf32>
    %727 = vector.multi_reduction <add>, %726, %cst_307 [1] : vector<8x64xf32> to vector<8xf32>
    %728 = vector.shape_cast %727 : vector<8xf32> to vector<8x1xf32>
    %cst_308 = arith.constant 6.400000e+01 : f32
    %729 = vector.broadcast %cst_308 : f32 to vector<8x1xf32>
    %730 = arith.divf %728, %729 : vector<8x1xf32>
    %731 = vector.broadcast %730 : vector<8x1xf32> to vector<8x64xf32>
    %732 = arith.subf %726, %731 : vector<8x64xf32>
    %733 = arith.mulf %732, %732 : vector<8x64xf32>
    %cst_309 = arith.constant dense<0.000000e+00> : vector<8xf32>
    %734 = vector.multi_reduction <add>, %733, %cst_309 [1] : vector<8x64xf32> to vector<8xf32>
    %735 = vector.shape_cast %734 : vector<8xf32> to vector<8x1xf32>
    %cst_310 = arith.constant 6.400000e+01 : f32
    %736 = vector.broadcast %cst_310 : f32 to vector<8x1xf32>
    %737 = arith.divf %735, %736 : vector<8x1xf32>
    %cst_311 = arith.constant 9.99999974E-6 : f32
    %738 = vector.broadcast %cst_311 : f32 to vector<8x1xf32>
    %739 = arith.addf %737, %738 : vector<8x1xf32>
    %740 = math.rsqrt %739 : vector<8x1xf32>
    %741 = vector.broadcast %740 : vector<8x1xf32> to vector<8x64xf32>
    %742 = arith.mulf %732, %741 : vector<8x64xf32>
    %743 = vector.broadcast %597 : vector<1x64xf32> to vector<8x64xf32>
    %744 = arith.mulf %742, %743 : vector<8x64xf32>
    %745 = vector.broadcast %598 : vector<1x64xf32> to vector<8x64xf32>
    %746 = arith.addf %744, %745 : vector<8x64xf32>
    %747 = arith.truncf %746 : vector<8x64xf32> to vector<8x64xbf16>
    %cst_312 = arith.constant dense<0.000000e+00> : vector<8x256xf32>
    %748 = tpu.matmul %747, %599, %cst_312 {dimension_numbers = #tpu.dot_dimension_numbers<[1], [0], [0], [1], [0, 0, 1, 1], [], []>} : vector<8x64xbf16>, vector<64x256xbf16>, vector<8x256xf32> -> vector<8x256xf32>
    %749 = vector.broadcast %600 : vector<1x256xf32> to vector<8x256xf32>
    %750 = arith.addf %748, %749 : vector<8x256xf32>
    %cst_313 = arith.constant 0.707106769 : f32
    %751 = vector.broadcast %cst_313 : f32 to vector<8x256xf32>
    %752 = arith.mulf %750, %751 : vector<8x256xf32>
    %753 = math.absf %752 : vector<8x256xf32>
    %cst_314 = arith.constant 0.327591091 : f32
    %754 = vector.broadcast %cst_314 : f32 to vector<8x256xf32>
    %755 = arith.mulf %754, %753 : vector<8x256xf32>
    %cst_315 = arith.constant 1.000000e+00 : f32
    %756 = vector.broadcast %cst_315 : f32 to vector<8x256xf32>
    %757 = arith.addf %756, %755 : vector<8x256xf32>
    %cst_316 = arith.constant 1.000000e+00 : f32
    %758 = vector.broadcast %cst_316 : f32 to vector<8x256xf32>
    %759 = arith.divf %758, %757 : vector<8x256xf32>
    %cst_317 = arith.constant 1.06140542 : f32
    %760 = vector.broadcast %cst_317 : f32 to vector<8x256xf32>
    %761 = arith.mulf %759, %760 : vector<8x256xf32>
    %cst_318 = arith.constant -1.45315206 : f32
    %762 = vector.broadcast %cst_318 : f32 to vector<8x256xf32>
    %763 = arith.addf %762, %761 : vector<8x256xf32>
    %764 = arith.mulf %759, %763 : vector<8x256xf32>
    %cst_319 = arith.constant 1.42141378 : f32
    %765 = vector.broadcast %cst_319 : f32 to vector<8x256xf32>
    %766 = arith.addf %765, %764 : vector<8x256xf32>
    %767 = arith.mulf %759, %766 : vector<8x256xf32>
    %cst_320 = arith.constant -0.284496725 : f32
    %768 = vector.broadcast %cst_320 : f32 to vector<8x256xf32>
    %769 = arith.addf %768, %767 : vector<8x256xf32>
    %770 = arith.mulf %759, %769 : vector<8x256xf32>
    %cst_321 = arith.constant 0.254829586 : f32
    %771 = vector.broadcast %cst_321 : f32 to vector<8x256xf32>
    %772 = arith.addf %771, %770 : vector<8x256xf32>
    %773 = arith.mulf %759, %772 : vector<8x256xf32>
    %cst_322 = arith.constant 0.000000e+00 : f32
    %774 = vector.broadcast %cst_322 : f32 to vector<8x256xf32>
    %775 = arith.subf %774, %753 : vector<8x256xf32>
    %776 = arith.mulf %775, %753 : vector<8x256xf32>
    %777 = math.exp %776 : vector<8x256xf32>
    %778 = arith.mulf %773, %777 : vector<8x256xf32>
    %cst_323 = arith.constant 1.000000e+00 : f32
    %779 = vector.broadcast %cst_323 : f32 to vector<8x256xf32>
    %780 = arith.subf %779, %778 : vector<8x256xf32>
    %cst_324 = arith.constant 0.000000e+00 : f32
    %781 = vector.broadcast %cst_324 : f32 to vector<8x256xf32>
    %782 = arith.cmpf oge, %752, %781 : vector<8x256xf32>
    %cst_325 = arith.constant 0.000000e+00 : f32
    %783 = vector.broadcast %cst_325 : f32 to vector<8x256xf32>
    %784 = arith.subf %783, %780 : vector<8x256xf32>
    %785 = arith.select %782, %780, %784 : vector<8x256xi1>, vector<8x256xf32>
    %cst_326 = arith.constant 5.000000e-01 : f32
    %786 = vector.broadcast %cst_326 : f32 to vector<8x256xf32>
    %787 = arith.mulf %786, %750 : vector<8x256xf32>
    %cst_327 = arith.constant 1.000000e+00 : f32
    %788 = vector.broadcast %cst_327 : f32 to vector<8x256xf32>
    %789 = arith.addf %788, %785 : vector<8x256xf32>
    %790 = arith.mulf %787, %789 : vector<8x256xf32>
    %791 = arith.truncf %790 : vector<8x256xf32> to vector<8x256xbf16>
    %cst_328 = arith.constant dense<0.000000e+00> : vector<8x64xf32>
    %792 = tpu.matmul %791, %601, %cst_328 {dimension_numbers = #tpu.dot_dimension_numbers<[1], [0], [0], [1], [0, 0, 1, 1], [], []>} : vector<8x256xbf16>, vector<256x64xbf16>, vector<8x64xf32> -> vector<8x64xf32>
    %793 = vector.broadcast %602 : vector<1x64xf32> to vector<8x64xf32>
    %794 = arith.addf %792, %793 : vector<8x64xf32>
    %795 = arith.addf %726, %794 : vector<8x64xf32>
    %c0_329 = arith.constant 0 : index
    %c0_330 = arith.constant 0 : index
    %796 = vector.load %arg61[%c0_329, %c0_330] : memref<1x64xf32, #tpu.memory_space<vmem>>, vector<1x64xf32>
    %c0_331 = arith.constant 0 : index
    %c0_332 = arith.constant 0 : index
    %797 = vector.load %arg62[%c0_331, %c0_332] : memref<1x64xf32, #tpu.memory_space<vmem>>, vector<1x64xf32>
    %cst_333 = arith.constant dense<0.000000e+00> : vector<8xf32>
    %798 = vector.multi_reduction <add>, %795, %cst_333 [1] : vector<8x64xf32> to vector<8xf32>
    %799 = vector.shape_cast %798 : vector<8xf32> to vector<8x1xf32>
    %cst_334 = arith.constant 6.400000e+01 : f32
    %800 = vector.broadcast %cst_334 : f32 to vector<8x1xf32>
    %801 = arith.divf %799, %800 : vector<8x1xf32>
    %802 = vector.broadcast %801 : vector<8x1xf32> to vector<8x64xf32>
    %803 = arith.subf %795, %802 : vector<8x64xf32>
    %804 = arith.mulf %803, %803 : vector<8x64xf32>
    %cst_335 = arith.constant dense<0.000000e+00> : vector<8xf32>
    %805 = vector.multi_reduction <add>, %804, %cst_335 [1] : vector<8x64xf32> to vector<8xf32>
    %806 = vector.shape_cast %805 : vector<8xf32> to vector<8x1xf32>
    %cst_336 = arith.constant 6.400000e+01 : f32
    %807 = vector.broadcast %cst_336 : f32 to vector<8x1xf32>
    %808 = arith.divf %806, %807 : vector<8x1xf32>
    %cst_337 = arith.constant 9.99999974E-6 : f32
    %809 = vector.broadcast %cst_337 : f32 to vector<8x1xf32>
    %810 = arith.addf %808, %809 : vector<8x1xf32>
    %811 = math.rsqrt %810 : vector<8x1xf32>
    %812 = vector.broadcast %811 : vector<8x1xf32> to vector<8x64xf32>
    %813 = arith.mulf %803, %812 : vector<8x64xf32>
    %814 = vector.broadcast %796 : vector<1x64xf32> to vector<8x64xf32>
    %815 = arith.mulf %813, %814 : vector<8x64xf32>
    %816 = vector.broadcast %797 : vector<1x64xf32> to vector<8x64xf32>
    %817 = arith.addf %815, %816 : vector<8x64xf32>
    %c0_338 = arith.constant 0 : index
    %c0_339 = arith.constant 0 : index
    %818 = vector.load %arg63[%c0_338, %c0_339] : memref<8x64xf32, #tpu.memory_space<vmem>>, vector<8x64xf32>
    tpu.vector_store %arg63[%c0_338, %c0_339], %817 {strides = array<i32>} : memref<8x64xf32, #tpu.memory_space<vmem>>, vector<8x64xf32>,
    return
  }
}

</mosaic_0001>

<bundles_post_ra>
// kernel: _lambda_.1
= control target key start
LH: loop header
LB: loop body
LE: loop exit
PB: predicated region body
PF: predicated region fallthrough
CT: control target
= control target key end

     0   :  { %s7546_s6 = smov 1   ;;  %s7547_s10 = smov 2   ;;  %s8823_s0 = inlined_call_operand.smem [shape: u32[64], index: -1, kind: input, shape index: {}] }
   0x1   :  { %s7628_s5 = sld [smem:[%s8823_s0]]   ;;  %s7548_s14 = smov 3  }
   0x2   :  { %s7633_s9 = sld [smem:[%s8823_s0 + %s7546_s6]]   ;;  %s7549_s18 = smov 4  }
   0x3   :  { %s7638_s13 = sld [smem:[%s8823_s0 + %s7547_s10]]   ;;  %s7550_s22 = smov 5  }
   0x4   :  { %s7643_s17 = sld [smem:[%s8823_s0 + %s7548_s14]]   ;;  %s7551_s26 = smov 6  }
   0x5   :  { %s7648_s21 = sld [smem:[%s8823_s0 + %s7549_s18]]   ;;  %s7552_s30 = smov 7  }
   0x6   :  { %s7653_s25 = sld [smem:[%s8823_s0 + %s7550_s22]]   ;;  %s7553_s4 = smov 8  }
   0x7   :  { %s7658_s29 = sld [smem:[%s8823_s0 + %s7551_s26]]   ;;  %s7554_s10 = smov 9  }
   0x8   :  { %s7663_s3 = sld [smem:[%s8823_s0 + %s7552_s30]]   ;;  %s7555_s15 = smov 10  }
   0x9   :  { %s7668_s8 = sld [smem:[%s8823_s0 + %s7553_s4]]   ;;  %s7556_s20 = smov 11  }
   0xa   :  { %s7673_s14 = sld [smem:[%s8823_s0 + %s7554_s10]]   ;;  %s7557_s26 = smov 12  }
   0xb   :  { %s7678_s19 = sld [smem:[%s8823_s0 + %s7555_s15]]   ;;  %s7558_s1 = smov 13  }
   0xc   :  { %s7683_s24 = sld [smem:[%s8823_s0 + %s7556_s20]]   ;;  %s7559_s7 = smov 14  }
   0xd   :  { %s7688_s30 = sld [smem:[%s8823_s0 + %s7557_s26]]   ;;  %s7560_s15 = smov 15  }
   0xe   :  { %s7693_s6 = sld [smem:[%s8823_s0 + %s7558_s1]]   ;;  %s7561_s22 = smov 16  }
   0xf   :  { %s7698_s12 = sld [smem:[%s8823_s0 + %s7559_s7]]   ;;  %s7562_s28 = smov 17  }
  0x10   :  { %s7703_s20 = sld [smem:[%s8823_s0 + %s7560_s15]]   ;;  %s7563_s7 = smov 18  }
  0x11   :  { %s7708_s27 = sld [smem:[%s8823_s0 + %s7561_s22]]   ;;  %s7564_s15 = smov 19  }
  0x12   :  { %s7713_s4 = sld [smem:[%s8823_s0 + %s7562_s28]]   ;;  %s7565_s22 = smov 20  }
  0x13   :  { %s7566_s28 = smov 21  }
  0x14   :  { %8842 = sst [smem:[#allocation5_spill]] %s7693_s6 }
  0x15   :  { %s7718_s6 = sld [smem:[%s8823_s0 + %s7563_s7]]   ;;  %s7567_s7 = smov 22  }
  0x16   :  { %8843 = sst [smem:[#allocation6_spill]] %s7703_s20 }
  0x17   :  { %8844 = sst [smem:[#allocation7_spill]] %s7708_s27 }
  0x18   :  { %8845 = sst [smem:[#allocation8_spill]] %s7713_s4 }
  0x19   :  { %s7723_s20 = sld [smem:[%s8823_s0 + %s7564_s15]]   ;;  %s7568_s15 = smov 23  }
  0x1a   :  { %s7728_s27 = sld [smem:[%s8823_s0 + %s7565_s22]]   ;;  %s7569_s22 = smov 24  }
  0x1b   :  { %8846 = sst [smem:[#allocation9_spill]] %s7718_s6 }
  0x1c   :  { %s7733_s4 = sld [smem:[%s8823_s0 + %s7566_s28]]   ;;  %s7570_s28 = smov 25  }
  0x1d   :  { %s7738_s6 = sld [smem:[%s8823_s0 + %s7567_s7]]   ;;  %s7571_s7 = smov 26  }
  0x1f   :  { %8847 = sst [smem:[#allocation10_spill]] %s7723_s20 }
  0x20   :  { %8848 = sst [smem:[#allocation11_spill]] %s7728_s27 }
  0x21   :  { %s7743_s20 = sld [smem:[%s8823_s0 + %s7568_s15]]   ;;  %s7572_s15 = smov 27  }
  0x22   :  { %8849 = sst [smem:[#allocation12_spill]] %s7733_s4 }
  0x23   :  { %8850 = sst [smem:[#allocation13_spill]] %s7738_s6 }
  0x24   :  { %s7748_s27 = sld [smem:[%s8823_s0 + %s7569_s22]]   ;;  %s7573_s22 = smov 28  }
  0x25   :  { %s7753_s4 = sld [smem:[%s8823_s0 + %s7570_s28]]   ;;  %s7574_s28 = smov 29  }
  0x26   :  { %s7758_s6 = sld [smem:[%s8823_s0 + %s7571_s7]]   ;;  %s7575_s7 = smov 30  }
  0x27   :  { %8851 = sst [smem:[#allocation14_spill]] %s7743_s20 }
  0x28   :  { %s7763_s20 = sld [smem:[%s8823_s0 + %s7572_s15]]   ;;  %s7576_s15 = smov 31  }
  0x2a   :  { %8852 = sst [smem:[#allocation15_spill]] %s7748_s27 }
  0x2b   :  { %8853 = sst [smem:[#allocation16_spill]] %s7753_s4 }
  0x2c   :  { %8854 = sst [smem:[#allocation17_spill]] %s7758_s6 }
  0x2d   :  { %s7768_s27 = sld [smem:[%s8823_s0 + %s7573_s22]]   ;;  %s7577_s22 = smov 32  }
  0x2e   :  { %8855 = sst [smem:[#allocation18_spill]] %s7763_s20 }
  0x2f   :  { %s7773_s4 = sld [smem:[%s8823_s0 + %s7574_s28]]   ;;  %s7578_s28 = smov 33  }
  0x30   :  { %s7778_s6 = sld [smem:[%s8823_s0 + %s7575_s7]]   ;;  %s7579_s7 = smov 34  }
  0x31   :  { %s7783_s20 = sld [smem:[%s8823_s0 + %s7576_s15]]   ;;  %s7580_s15 = smov 35  }
  0x33   :  { %8856 = sst [smem:[#allocation19_spill]] %s7768_s27 }
  0x34   :  { %s7788_s27 = sld [smem:[%s8823_s0 + %s7577_s22]]   ;;  %s7581_s22 = smov 36  }
  0x35   :  { %8857 = sst [smem:[#allocation20_spill]] %s7773_s4 }
  0x36   :  { %8858 = sst [smem:[#allocation21_spill]] %s7778_s6 }
  0x37   :  { %8859 = sst [smem:[#allocation22_spill]] %s7783_s20 }
  0x38   :  { %s7793_s4 = sld [smem:[%s8823_s0 + %s7578_s28]]   ;;  %s7582_s28 = smov 37  }
  0x39   :  { %s7798_s6 = sld [smem:[%s8823_s0 + %s7579_s7]]   ;;  %s7583_s7 = smov 38  }
  0x3a   :  { %8860 = sst [smem:[#allocation23_spill]] %s7788_s27 }
  0x3b   :  { %s7803_s20 = sld [smem:[%s8823_s0 + %s7580_s15]]   ;;  %s7584_s15 = smov 39  }
  0x3c   :  { %s7808_s27 = sld [smem:[%s8823_s0 + %s7581_s22]]   ;;  %s7585_s22 = smov 40  }
  0x3e   :  { %8861 = sst [smem:[#allocation24_spill]] %s7793_s4 }
  0x3f   :  { %8862 = sst [smem:[#allocation25_spill]] %s7798_s6 }
  0x40   :  { %s7813_s4 = sld [smem:[%s8823_s0 + %s7582_s28]]   ;;  %s7586_s28 = smov 41  }
  0x41   :  { %8863 = sst [smem:[#allocation26_spill]] %s7803_s20 }
  0x42   :  { %8864 = sst [smem:[#allocation27_spill]] %s7808_s27 }
  0x43   :  { %s7818_s6 = sld [smem:[%s8823_s0 + %s7583_s7]]   ;;  %s7587_s7 = smov 42  }
  0x44   :  { %s7823_s20 = sld [smem:[%s8823_s0 + %s7584_s15]]   ;;  %s7588_s15 = smov 43  }
  0x45   :  { %s7828_s27 = sld [smem:[%s8823_s0 + %s7585_s22]]   ;;  %s7589_s22 = smov 44  }
  0x46   :  { %8865 = sst [smem:[#allocation28_spill]] %s7813_s4 }
  0x47   :  { %s7833_s4 = sld [smem:[%s8823_s0 + %s7586_s28]]   ;;  %s7590_s28 = smov 45  }
  0x49   :  { %8866 = sst [smem:[#allocation29_spill]] %s7818_s6 }
  0x4a   :  { %8867 = sst [smem:[#allocation30_spill]] %s7823_s20 }
  0x4b   :  { %8868 = sst [smem:[#allocation31_spill]] %s7828_s27 }
  0x4c   :  { %s7838_s6 = sld [smem:[%s8823_s0 + %s7587_s7]]   ;;  %s7591_s7 = smov 46  }
  0x4d   :  { %8869 = sst [smem:[#allocation32_spill]] %s7833_s4 }
  0x4e   :  { %s7843_s20 = sld [smem:[%s8823_s0 + %s7588_s15]]   ;;  %s7592_s15 = smov 47  }
  0x4f   :  { %s7848_s27 = sld [smem:[%s8823_s0 + %s7589_s22]]   ;;  %s7593_s22 = smov 48  }
  0x50   :  { %s7853_s4 = sld [smem:[%s8823_s0 + %s7590_s28]]   ;;  %s7594_s28 = smov 49  }
  0x52   :  { %8870 = sst [smem:[#allocation33_spill]] %s7838_s6 }
  0x53   :  { %s7858_s6 = sld [smem:[%s8823_s0 + %s7591_s7]]   ;;  %s7595_s7 = smov 50  }
  0x54   :  { %8871 = sst [smem:[#allocation34_spill]] %s7843_s20 }
  0x55   :  { %8872 = sst [smem:[#allocation35_spill]] %s7848_s27 }
  0x56   :  { %8873 = sst [smem:[#allocation36_spill]] %s7853_s4 }
  0x57   :  { %s7863_s20 = sld [smem:[%s8823_s0 + %s7592_s15]]   ;;  %s7596_s15 = smov 51  }
  0x58   :  { %s7868_s27 = sld [smem:[%s8823_s0 + %s7593_s22]]   ;;  %s7597_s22 = smov 52  }
  0x59   :  { %8874 = sst [smem:[#allocation37_spill]] %s7858_s6 }
  0x5a   :  { %s7873_s4 = sld [smem:[%s8823_s0 + %s7594_s28]]   ;;  %s7598_s28 = smov 53  }
  0x5b   :  { %s7878_s6 = sld [smem:[%s8823_s0 + %s7595_s7]]   ;;  %s7599_s7 = smov 54  }
  0x5d   :  { %8875 = sst [smem:[#allocation38_spill]] %s7863_s20 }
  0x5e   :  { %8876 = sst [smem:[#allocation39_spill]] %s7868_s27 }
  0x5f   :  { %s7883_s20 = sld [smem:[%s8823_s0 + %s7596_s15]]   ;;  %s7600_s15 = smov 55  }
  0x60   :  { %8877 = sst [smem:[#allocation40_spill]] %s7873_s4 }
  0x61   :  { %8878 = sst [smem:[#allocation41_spill]] %s7878_s6 }
  0x62   :  { %s7888_s27 = sld [smem:[%s8823_s0 + %s7597_s22]]   ;;  %s7601_s22 = smov 56  }
  0x63   :  { %s7893_s4 = sld [smem:[%s8823_s0 + %s7598_s28]]   ;;  %s7602_s28 = smov 57  }
  0x64   :  { %s7898_s6 = sld [smem:[%s8823_s0 + %s7599_s7]]   ;;  %s7603_s7 = smov 58  }
  0x65   :  { %8879 = sst [smem:[#allocation42_spill]] %s7883_s20 }
  0x66   :  { %s7903_s20 = sld [smem:[%s8823_s0 + %s7600_s15]]   ;;  %s7604_s15 = smov 59  }
  0x68   :  { %8880 = sst [smem:[#allocation43_spill]] %s7888_s27 }
  0x69   :  { %8881 = sst [smem:[#allocation44_spill]] %s7893_s4 }
  0x6a   :  { %8882 = sst [smem:[#allocation45_spill]] %s7898_s6 }
  0x6b   :  { %s7908_s27 = sld [smem:[%s8823_s0 + %s7601_s22]]   ;;  %s7605_s22 = smov 60  }
  0x6c   :  { %8883 = sst [smem:[#allocation46_spill]] %s7903_s20 }
  0x6d   :  { %s7913_s4 = sld [smem:[%s8823_s0 + %s7602_s28]]   ;;  %s7606_s28 = smov 61  }
  0x6e   :  { %s7918_s6 = sld [smem:[%s8823_s0 + %s7603_s7]]   ;;  %s7607_s7 = smov 62  }
  0x6f   :  { %s7923_s20 = sld [smem:[%s8823_s0 + %s7604_s15]]   ;;  %s7608_s15 = smov 63  }
  0x71   :  { %8884 = sst [smem:[#allocation47_spill]] %s7908_s27 }
  0x72   :  { %s7928_s27 = sld [smem:[%s8823_s0 + %s7605_s22]]  }
  0x73   :  { %8885 = sst [smem:[#allocation48_spill]] %s7913_s4 }
  0x74   :  { %8886 = sst [smem:[#allocation49_spill]] %s7918_s6 }
  0x75   :  { %8887 = sst [smem:[#allocation50_spill]] %s7923_s20 }
  0x76   :  { %s7933_s4 = sld [smem:[%s8823_s0 + %s7606_s28]]  }
  0x77   :  { %s7938_s6 = sld [smem:[%s8823_s0 + %s7607_s7]]  }
  0x78   :  { %s7943_s20 = sld [smem:[%s8823_s0 + %s7608_s15]]  }
  0x79   :  { %v7201_v0 = vld [vmem:[%s7633_s9 + $0x10] sm:$0xff]   ;;  %v7202_v1 = vld [vmem:[%s7633_s9 + $0x8] sm:$0xff]   ;;  %v260_v2 = vld [vmem:[%s7628_s5] sm:$0xff]  ;;  %vm299_vm0 = vcmask 392192  }
  0x7a   :  { %6717 = vmatprep.subr.bf16.mxu1 %v7201_v0  ;;  %v261_v3 = vld [vmem:[%s7628_s5 + $0x8] sm:$0xff]  ;;  %v7203_v4 = vld [vmem:[%s7633_s9] sm:$0xff]   ;;  %v262_v6 = vld [vmem:[%s7628_s5 + $0x10] sm:$0xff] }
  0x7b   :  { %6718 = vmatpush3.bf16.msra.mxu1 %v7201_v0  ;;  %v273_v5 = vpack.c.bf16 %v261_v3, %v260_v2  ;;  %v263_v7 = vld [vmem:[%s7628_s5 + $0x18] sm:$0xff] }
  0x7c   :  { %6719 = vmatprep.subr.bf16.mxu1 %v7202_v1  ;;  %v274_v8 = vpack.c.bf16 %v263_v7, %v262_v6 }
  0x7d   :  { %6723 = vmatprep.mubr.msk.bf16.mxu1 %vm299_vm0, %v273_v5 }
  0x7f   :  { %6720 = vmatpush3.bf16.msra.mxu1 %v7202_v1 }
  0x80   :  { %6721 = vmatprep.subr.bf16.mxu1 %v7203_v4 }
  0x83   :  { %6722 = vmatpush3.bf16.msra.mxu1 %v7203_v4 }
  0x86   :  { %6724 = vmatmul.mubr.msk.bf16.vlgmr.msra.gmra.mxu1 %vm299_vm0, %v274_v8 }
  0x87   :  { %132 = vsyncpa [#allocation3], 0  ;;  %v6227_v9 = vld [vmem:[%s7638_s13] ss:$0 sm:$0xff]  ;;  %vm355_vm1 = vcmask 261120   ;;  %s7609_s0 = smov 96  }
  0x88   :  { %v6233_v55 = vld [vmem:[%s7643_s17] ss:$0 sm:$0xff]  ;;  %vm636_vm2 = vcmask 130048   ;;  %s7610_s5 = smov 64   ;;  %s7611_s9 = smov 80   ;;  %vm7615_vm11 = vmmov 0  }
  0x89   :  { %v6234_v57 = vld [vmem:[%s7648_s21] ss:$0 sm:$0xff]  ;;  %s7612_s13 = smov 112   ;;  %s7613_s17 = smov 48   ;;  %vm3235_vm12 = vcmask 523264   ;;  %vm3237_vm13 = vcmask 785408  }
  0x8a   :  { %s8888_s21 = sld [smem:[#allocation5_spill]]  ;;  %s7616_s11 = smov 32   ;;  %vm3625_vm14 = vcmask 64512  }
  0x8b   :  { %s8898_s22 = sld [smem:[#allocation15_spill]] }
  0x8c   :  { %s8899_s23 = sld [smem:[#allocation18_spill]] }
  0x8d   :  { %s8900_s26 = sld [smem:[#allocation16_spill]] }
  0x8e   :  { %s8901_s28 = sld [smem:[#allocation17_spill]] }
  0x8f   :  { %s8902_s1 = sld [smem:[#allocation20_spill]] }
  0x90   :  { %s8903_s2 = sld [smem:[#allocation19_spill]] }
  0x91   :  { %s8904_s7 = sld [smem:[#allocation21_spill]] }
  0x92   :  { %s8905_s10 = sld [smem:[#allocation22_spill]] }
  0x93   :  { %s8906_s15 = sld [smem:[#allocation25_spill]] }
  0x94   :  { %s8907_s16 = sld [smem:[#allocation23_spill]] }
  0x95   :  { %s8908_s18 = sld [smem:[#allocation24_spill]] }
 0x146   :  { %v6725_v10 = vpop.f32.mrf.mxu1 }
 0x147   :  { %v349_v11 = vadd.f32 %v6725_v10, %v6227_v9 }
 0x148   :  { %v340_v12 = vpop.f32.mrf.mxu1 }
 0x149   :  { %v341_v13 = vadd.f32 %v6227_v9, %v340_v12  ;;  %v362_v14 = vsel %vm355_vm1, %v349_v11, 0.0 }
 0x14a   :  { %363 = vadd.xlane.f32.xlu1 %v362_v14  ;;  %v6726_v15 = vpop.f32.mrf.mxu1 }
 0x14b   :  { %v352_v16 = vadd.f32 %v6726_v15, %v6227_v9  ;;  %v356_v17 = vsel %vm355_vm1, %v341_v13, 0.0 }
 0x14c   :  { %v343_v18 = vpop.f32.mrf.mxu1  ;;  %357 = vadd.xlane.f32.xlu0 %v356_v17 }
 0x14d   :  { %v344_v19 = vadd.f32 %v6227_v9, %v343_v18  ;;  %v365_v20 = vsel %vm355_vm1, %v352_v16, 0.0 }
 0x14e   :  { %366 = vadd.xlane.f32.xlu1 %v365_v20 }
 0x14f   :  { %v359_v21 = vsel %vm355_vm1, %v344_v19, 0.0 }
 0x150   :  { %360 = vadd.xlane.f32.xlu0 %v359_v21 }
 0x1d3   :  { %v364_v22 = vpop.xlane.xlu1 %363 }
 0x1d4   :  { %v371_v23 = vmul.f32 0.03125, %v364_v22 }
 0x1d5   :  { %v358_v24 = vpop.xlane.xlu0 %357 }
 0x1d6   :  { %v369_v25 = vmul.f32 0.03125, %v358_v24  ;;  %v375_v27 = vsub.f32 %v349_v11, %v371_v23 }
 0x1d7   :  { %v367_v26 = vpop.xlane.xlu1 %366 }
 0x1d8   :  { %v373_v28 = vsub.f32 %v341_v13, %v369_v25  ;;  %v372_v29 = vmul.f32 0.03125, %v367_v26  ;;  %v379_v36 = vmul.f32 %v375_v27, %v375_v27 }
 0x1d9   :  { %v361_v30 = vpop.xlane.xlu0 %360 }
 0x1da   :  { %v370_v31 = vmul.f32 0.03125, %v361_v30  ;;  %v377_v32 = vmul.f32 %v373_v28, %v373_v28  ;;  %v376_v33 = vsub.f32 %v352_v16, %v372_v29  ;;  %v387_v38 = vsel %vm355_vm1, %v379_v36, 0.0 }
 0x1dc   :  { %v374_v34 = vsub.f32 %v344_v19, %v370_v31  ;;  %v381_v35 = vsel %vm355_vm1, %v377_v32, 0.0  ;;  %v380_v40 = vmul.f32 %v376_v33, %v376_v33  ;;  %v7204_v32 = vld [vmem:[%s7663_s3 + $0x8] sm:$0xff]  }
 0x1dd   :  { %382 = vadd.xlane.f32.xlu0 %v381_v35  ;;  %6727 = vmatprep.subr.bf16.mxu1 %v7204_v32 }
 0x1de   :  { %v378_v37 = vmul.f32 %v374_v34, %v374_v34  ;;  %v390_v41 = vsel %vm355_vm1, %v380_v40, 0.0  ;;  %6728 = vmatpush3.bf16.msra.mxu1 %v7204_v32 }
 0x1e0   :  { %v384_v39 = vsel %vm355_vm1, %v378_v37, 0.0 }
 0x1e1   :  { %388 = vadd.xlane.f32.xlu0 %v387_v38  ;;  %385 = vadd.xlane.f32.xlu1 %v384_v39 }
 0x1e5   :  { %391 = vadd.xlane.f32.xlu1 %v390_v41 }
 0x266   :  { %v383_v42 = vpop.xlane.xlu0 %382 }
 0x267   :  { %v393_v43 = vmul.f32 0.03125, %v383_v42 }
 0x269   :  { %v397_v44 = vadd.f32 1e-05, %v393_v43 }
 0x26a   :  { %v386_v45 = vpop.xlane.xlu1 %385  ;;  %v389_v46 = vpop.xlane.xlu0 %388 }
 0x26b   :  { %7328 = vrsqrt.f32 %v397_v44  ;;  %v394_v47 = vmul.f32 0.03125, %v386_v45  ;;  %v395_v48 = vmul.f32 0.03125, %v389_v46 }
 0x26d   :  { %v398_v49 = vadd.f32 1e-05, %v394_v47  ;;  %v399_v50 = vadd.f32 1e-05, %v395_v48  ;;  %v6235_v48 = vld [vmem:[%s7653_s25] ss:$0 sm:$0xff] }
 0x26e   :  { %v392_v51 = vpop.xlane.xlu1 %391  ;;  %s8889_s25 = sld [smem:[#allocation7_spill]] }
 0x26f   :  { %7330 = vrsqrt.f32 %v398_v49  ;;  %v396_v52 = vmul.f32 0.03125, %v392_v51 }
 0x270   :  { %7332 = vrsqrt.f32 %v399_v50 }
 0x271   :  { %v400_v53 = vadd.f32 1e-05, %v396_v52 }
 0x273   :  { %7334 = vrsqrt.f32 %v400_v53 }
 0x278   :  { %v7329_v54 = vpop.eup %7328 }
 0x279   :  { %v405_v56 = vmul.f32 %v7329_v54, %v373_v28  ;;  %v6236_v54 = vld [vmem:[%s7658_s29] ss:$0 sm:$0xff]  ;;  %s8890_s29 = sld [smem:[#allocation6_spill]] }
 0x27b   :  { %v415_v58 = vmul.f32 %v6233_v55, %v405_v56 }
 0x27c   :  { %v7331_v59 = vpop.eup %7330 }
 0x27d   :  { %v7333_v60 = vpop.eup %7332  ;;  %v7963_v61 = vadd.f32 %v6234_v57, %v415_v58  ;;  %v406_v62 = vmul.f32 %v7331_v59, %v374_v34 }
 0x27e   :  { %v407_v63 = vmul.f32 %v7333_v60, %v375_v27 }
 0x27f   :  { %v473_v0 = vsel %vm355_vm1, %v7963_v61, 0.0  ;;  %v416_v1 = vmul.f32 %v6233_v55, %v406_v62 }
 0x280   :  { %v7335_v2 = vpop.eup %7334  ;;  %474 = vadd.xlane.f32.xlu0 %v473_v0  ;;  %v417_v3 = vmul.f32 %v6233_v55, %v407_v63 }
 0x281   :  { %v7967_v4 = vadd.f32 %v6234_v57, %v416_v1  ;;  %v408_v5 = vmul.f32 %v7335_v2, %v376_v33  ;;  %v7205_v33 = vld [vmem:[%s7663_s3] sm:$0xff]   ;;  %s8891_s3 = sld [smem:[#allocation8_spill]] }
 0x282   :  { %v7969_v6 = vadd.f32 %v6234_v57, %v417_v3  ;;  %6729 = vmatprep.subr.bf16.mxu1 %v7205_v33  ;;  %v6237_v3 = vld [vmem:[%s7668_s8] ss:$0 sm:$0xff]  ;;  %s8892_s8 = sld [smem:[#allocation11_spill]] }
 0x283   :  { %v476_v7 = vsel %vm355_vm1, %v7967_v4, 0.0  ;;  %v418_v8 = vmul.f32 %v6233_v55, %v408_v5  ;;  %6730 = vmatpush3.bf16.msra.mxu1 %v7205_v33 }
 0x284   :  { %477 = vadd.xlane.f32.xlu1 %v476_v7  ;;  %v479_v9 = vsel %vm355_vm1, %v7969_v6, 0.0 }
 0x285   :  { %480 = vadd.xlane.f32.xlu0 %v479_v9  ;;  %v7975_v10 = vadd.f32 %v6234_v57, %v418_v8 }
 0x287   :  { %v482_v11 = vsel %vm355_vm1, %v7975_v10, 0.0 }
 0x288   :  { %483 = vadd.xlane.f32.xlu1 %v482_v11 }
 0x309   :  { %v475_v12 = vpop.xlane.xlu0 %474 }
 0x30a   :  { %v485_v13 = vmul.f32 0.03125, %v475_v12 }
 0x30c   :  { %v489_v14 = vsub.f32 %v7963_v61, %v485_v13 }
 0x30d   :  { %v478_v15 = vpop.xlane.xlu1 %477 }
 0x30e   :  { %v486_v16 = vmul.f32 0.03125, %v478_v15  ;;  %v481_v17 = vpop.xlane.xlu0 %480  ;;  %v493_v18 = vmul.f32 %v489_v14, %v489_v14 }
 0x30f   :  { %v487_v19 = vmul.f32 0.03125, %v481_v17 }
 0x310   :  { %v490_v20 = vsub.f32 %v7967_v4, %v486_v16  ;;  %v497_v21 = vsel %vm355_vm1, %v493_v18, 0.0 }
 0x311   :  { %v491_v22 = vsub.f32 %v7969_v6, %v487_v19  ;;  %v484_v23 = vpop.xlane.xlu1 %483  ;;  %498 = vadd.xlane.f32.xlu0 %v497_v21 }
 0x312   :  { %v488_v24 = vmul.f32 0.03125, %v484_v23  ;;  %v494_v25 = vmul.f32 %v490_v20, %v490_v20  ;;  %v437_v23 = vld [vmem:[%s7673_s14 + $0x8] sm:$0xff] }
 0x313   :  { %v495_v26 = vmul.f32 %v491_v22, %v491_v22 }
 0x314   :  { %v492_v27 = vsub.f32 %v7975_v10, %v488_v24  ;;  %v500_v28 = vsel %vm355_vm1, %v494_v25, 0.0  ;;  %v436_v25 = vld [vmem:[%s7673_s14] sm:$0xff] }
 0x315   :  { %501 = vadd.xlane.f32.xlu1 %v500_v28  ;;  %v503_v29 = vsel %vm355_vm1, %v495_v26, 0.0  ;;  %v439_v28 = vld [vmem:[%s7673_s14 + $0x18] sm:$0xff] }
 0x316   :  { %504 = vadd.xlane.f32.xlu0 %v503_v29  ;;  %v496_v30 = vmul.f32 %v492_v27, %v492_v27 }
 0x318   :  { %v506_v31 = vsel %vm355_vm1, %v496_v30, 0.0 }
 0x319   :  { %507 = vadd.xlane.f32.xlu1 %v506_v31 }
 0x39a   :  { %v499_v34 = vpop.xlane.xlu0 %498 }
 0x39b   :  { %v509_v35 = vmul.f32 0.03125, %v499_v34 }
 0x39d   :  { %v513_v36 = vadd.f32 1e-05, %v509_v35  ;;  %v438_v35 = vld [vmem:[%s7673_s14 + $0x10] sm:$0xff] }
 0x39e   :  { %v502_v37 = vpop.xlane.xlu1 %501 }
 0x39f   :  { %7336 = vrsqrt.f32 %v513_v36  ;;  %v510_v38 = vmul.f32 0.03125, %v502_v37  ;;  %v505_v39 = vpop.xlane.xlu0 %504 }
 0x3a0   :  { %v511_v40 = vmul.f32 0.03125, %v505_v39 }
 0x3a1   :  { %v514_v41 = vadd.f32 1e-05, %v510_v38 }
 0x3a2   :  { %v515_v42 = vadd.f32 1e-05, %v511_v40  ;;  %v508_v43 = vpop.xlane.xlu1 %507 }
 0x3a3   :  { %7338 = vrsqrt.f32 %v514_v41  ;;  %v512_v44 = vmul.f32 0.03125, %v508_v43 }
 0x3a4   :  { %7340 = vrsqrt.f32 %v515_v42 }
 0x3a5   :  { %v516_v45 = vadd.f32 1e-05, %v512_v44 }
 0x3a7   :  { %7342 = vrsqrt.f32 %v516_v45 }
 0x3ac   :  { %v7337_v46 = vpop.eup %7336 }
 0x3ad   :  { %v521_v47 = vmul.f32 %v7337_v46, %v489_v14 }
 0x3af   :  { %v531_v52 = vmul.f32 %v6235_v48, %v521_v47 }
 0x3b0   :  { %v7339_v49 = vpop.eup %7338 }
 0x3b1   :  { %v7341_v50 = vpop.eup %7340  ;;  %v522_v51 = vmul.f32 %v7339_v49, %v490_v20  ;;  %v541_v58 = vadd.f32 %v6236_v54, %v531_v52 }
 0x3b2   :  { %v523_v53 = vmul.f32 %v7341_v50, %v491_v22 }
 0x3b3   :  { %v532_v55 = vmul.f32 %v6235_v48, %v522_v51 }
 0x3b4   :  { %v7343_v56 = vpop.eup %7342  ;;  %v533_v60 = vmul.f32 %v6235_v48, %v523_v53 }
 0x3b5   :  { %v524_v57 = vmul.f32 %v7343_v56, %v492_v27  ;;  %v542_v59 = vadd.f32 %v6236_v54, %v532_v55 }
 0x3b6   :  { %v543_v0 = vadd.f32 %v6236_v54, %v533_v60 }
 0x3b7   :  { %v545_v62 = vpack.c.bf16 %v542_v59, %v541_v58  ;;  %v534_v63 = vmul.f32 %v6235_v48, %v524_v57 }
 0x3b9   :  { %6731 = vmatprep.mubr.msk.bf16.mxu1 %vm355_vm1, %v545_v62  ;;  %v544_v1 = vadd.f32 %v6236_v54, %v534_v63 }
 0x3bb   :  { %v546_v2 = vpack.c.bf16 %v544_v1, %v543_v0 }
 0x3bd   :  { %6732 = vmatmul.mubr.msk.bf16.vlgmr.msra.gmra.mxu1 %vm355_vm1, %v546_v2 }
 0x47d   :  { %v6733_v5 = vpop.f32.mrf.mxu1 }
 0x47e   :  { %v7994_v7 = vadd.f32 %v6733_v5, %v6237_v3 }
 0x47f   :  { %v605_v8 = vpop.f32.mrf.mxu1 }
 0x480   :  { %v7996_v9 = vadd.f32 %v6237_v3, %v605_v8  ;;  %632 = vrot.lane.b32.xlu1 %v7994_v7, %s7609_s0  ;;  %v8027_v21 = vmul.f32 0.25, %v7994_v7 }
 0x481   :  { %v6734_v11 = vpop.f32.mrf.mxu1 }
 0x482   :  { %v8000_v12 = vadd.f32 %v6734_v11, %v6237_v3  ;;  %v8003_v13 = vmul.f32 0.25, %v7996_v9 }
 0x483   :  { %v608_v14 = vpop.f32.mrf.mxu1 }
 0x484   :  { %v8005_v15 = vadd.f32 %v6237_v3, %v608_v14  ;;  %634 = vrot.lane.b32.xlu0 %v8000_v12, %s7609_s0  ;;  %6743 = vmatprep.mubr.msk.f32.mxu1 %vm636_vm2, %v8003_v13  ;;  %v8034_v22 = vmul.f32 0.25, %v8000_v12 }
 0x486   :  { %630 = vrot.lane.b32.xlu1 %v8005_v15, %s7609_s0  ;;  %v8024_v20 = vmul.f32 0.25, %v8005_v15 }
 0x48a   :  { %628 = vrot.lane.b32.xlu1 %v7996_v9, %s7609_s0 }
 0x4f2   :  { %v633_v16 = vpop.permute.xlu1 %632 }
 0x4f6   :  { %v635_v17 = vpop.permute.xlu0 %634 }
 0x4f7   :  { %6735 = vmatprep.subr.msk.mxu1 %vm636_vm2, %v635_v17 }
 0x4f8   :  { %6736 = vmatpush3.xpose.msk.msra.mxu1 %vm636_vm2, %v635_v17  ;;  %v631_v18 = vpop.permute.xlu1 %630 }
 0x4f9   :  { %6737 = vmatprep.subr.msk.mxu1 %vm636_vm2, %v633_v16 }
 0x4fc   :  { %6738 = vmatpush3.xpose.msk.msra.mxu1 %vm636_vm2, %v633_v16  ;;  %v629_v19 = vpop.permute.xlu1 %628 }
 0x4fd   :  { %6739 = vmatprep.subr.msk.mxu1 %vm636_vm2, %v631_v18 }
 0x500   :  { %6740 = vmatpush3.xpose.msk.msra.mxu1 %vm636_vm2, %v631_v18 }
 0x501   :  { %6741 = vmatprep.subr.msk.mxu1 %vm636_vm2, %v629_v19 }
 0x504   :  { %6742 = vmatpush3.xpose.msk.msra.mxu1 %vm636_vm2, %v629_v19 }
 0x507   :  { %6744 = vmatmul.mubr.msk.f32.vlgmr.msra.gmra.mxu1 %vm636_vm2, %v8024_v20 }
 0x508   :  { %6746 = vmatprep.mubr.msk.f32.mxu1 %vm636_vm2, %v8027_v21 }
 0x50b   :  { %6747 = vmatmul.mubr.msk.f32.gmra.mxu1 %vm636_vm2, %v8034_v22 }
 0x5c7   :  { %v6745_v24 = vpop.f32.mrf.mxu1 }
 0x5c8   :  { %v729_v26 = vadd.f32 %v6745_v24, %v437_v23 }
 0x5c9   :  { %v723_v27 = vpop.f32.mrf.mxu1 }
 0x5ca   :  { %v724_v29 = vadd.f32 %v723_v27, %v436_v25  ;;  %v745_v30 = vsel %vm355_vm1, %v729_v26, -inf  ;;  %v7206_v27 = vld [vmem:[%s7678_s19] sm:$0xff]  }
 0x5cb   :  { %746 = vmax.xlane.f32.xlu1 %v745_v30  ;;  %v6748_v31 = vpop.f32.mrf.mxu1 }
 0x5cc   :  { %v739_v32 = vadd.f32 %v6748_v31, %v439_v28  ;;  %v742_v33 = vsel %vm355_vm1, %v724_v29, -inf }
 0x5cd   :  { %v733_v34 = vpop.f32.mrf.mxu1  ;;  %743 = vmax.xlane.f32.xlu0 %v742_v33  ;;  %v441_v33 = vld [vmem:[%s7673_s14 + $0x28] sm:$0xff] }
 0x5ce   :  { %v734_v36 = vadd.f32 %v733_v34, %v438_v35  ;;  %v751_v37 = vsel %vm355_vm1, %v739_v32, -inf }
 0x5d0   :  { %v748_v38 = vsel %vm355_vm1, %v734_v36, -inf }
 0x5d1   :  { %752 = vmax.xlane.f32.xlu0 %v751_v37 }
 0x5d5   :  { %749 = vmax.xlane.f32.xlu0 %v748_v38 }
 0x5dc   :  { %790 = vrot.lane.b32.xlu1 %v7994_v7, %s7610_s5 }
 0x5e0   :  { %788 = vrot.lane.b32.xlu1 %v8005_v15, %s7610_s5 }
 0x5e4   :  { %786 = vrot.lane.b32.xlu1 %v7996_v9, %s7610_s5 }
 0x5eb   :  { %792 = vrot.lane.b32.xlu0 %v8000_v12, %s7610_s5 }
 0x654   :  { %v747_v39 = vpop.xlane.xlu1 %746 }
 0x655   :  { %v755_v40 = vsub.f32 %v729_v26, %v747_v39 }
 0x656   :  { %v744_v41 = vpop.xlane.xlu0 %743 }
 0x657   :  { %v760_v42 = vmul.f32 1.442695, %v755_v40  ;;  %v754_v43 = vsub.f32 %v724_v29, %v744_v41 }
 0x658   :  { %v791_v46 = vpop.permute.xlu1 %790 }
 0x659   :  { %7344 = vpow2.f32 %v760_v42  ;;  %v758_v44 = vmul.f32 1.442695, %v754_v43  ;;  %v442_v42 = vld [vmem:[%s7673_s14 + $0x30] sm:$0xff] }
 0x65a   :  { %v753_v45 = vpop.xlane.xlu0 %752 }
 0x65b   :  { %7346 = vpow2.f32 %v758_v44  ;;  %v757_v55 = vsub.f32 %v739_v32, %v753_v45  ;;  %v443_v44 = vld [vmem:[%s7673_s14 + $0x38] sm:$0xff] }
 0x65c   :  { %v789_v48 = vpop.permute.xlu1 %788 }
 0x65d   :  { %v764_v57 = vmul.f32 1.442695, %v757_v55 }
 0x65e   :  { %v750_v47 = vpop.xlane.xlu0 %749 }
 0x65f   :  { %v756_v56 = vsub.f32 %v734_v36, %v750_v47  ;;  %7348 = vpow2.f32 %v764_v57  ;;  %v440_v36 = vld [vmem:[%s7673_s14 + $0x20] sm:$0xff]  ;;  %s8893_s14 = sld [smem:[#allocation9_spill]] }
 0x660   :  { %v787_v53 = vpop.permute.xlu1 %786 }
 0x661   :  { %v762_v58 = vmul.f32 1.442695, %v756_v56 }
 0x662   :  { %v793_v49 = vpop.permute.xlu0 %792 }
 0x663   :  { %6749 = vmatprep.subr.mxu0 %v793_v49  ;;  %7350 = vpow2.f32 %v762_v58 }
 0x664   :  { %6750 = vmatpush3.msra.mxu0 %v793_v49 }
 0x665   :  { %6751 = vmatprep.subr.mxu0 %v791_v46 }
 0x666   :  { %v7345_v50 = vpop.eup %7344  ;;  %6752 = vmatpush3.msra.mxu0 %v791_v46 }
 0x667   :  { %6753 = vmatprep.subr.mxu0 %v789_v48  ;;  %v769_v51 = vsel %vm355_vm1, %v7345_v50, 0.0 }
 0x668   :  { %v7347_v52 = vpop.eup %7346  ;;  %770 = vadd.xlane.f32.xlu1 %v769_v51  ;;  %6754 = vmatpush3.msra.mxu0 %v789_v48 }
 0x669   :  { %6755 = vmatprep.subr.mxu0 %v787_v53  ;;  %v766_v54 = vsel %vm355_vm1, %v7347_v52, 0.0 }
 0x66a   :  { %767 = vadd.xlane.f32.xlu0 %v766_v54  ;;  %6756 = vmatpush3.msra.mxu0 %v787_v53 }
 0x66c   :  { %v7349_v59 = vpop.eup %7348 }
 0x66d   :  { %v775_v62 = vsel %vm355_vm1, %v7349_v59, 0.0 }
 0x670   :  { %v7351_v60 = vpop.eup %7350 }
 0x671   :  { %v772_v63 = vsel %vm355_vm1, %v7351_v60, 0.0 }
 0x679   :  { %909 = vrot.lane.b32.xlu1 %v7994_v7, %s7611_s9 }
 0x680   :  { %911 = vrot.lane.b32.xlu0 %v8000_v12, %s7611_s9 }
 0x69d   :  { %776 = vadd.xlane.f32.xlu1 %v775_v62 }
 0x69f   :  { %773 = vadd.xlane.f32.xlu0 %v772_v63 }
 0x6ae   :  { %905 = vrot.lane.b32.xlu1 %v7996_v9, %s7611_s9 }
 0x6b2   :  { %899 = vrot.lane.b32.xlu1 %v8024_v20, %s7612_s13 }
 0x6b5   :  { %907 = vrot.lane.b32.xlu0 %v8005_v15, %s7611_s9 }
 0x6b6   :  { %903 = vrot.lane.b32.xlu1 %v8034_v22, %s7612_s13 }
 0x6b9   :  { %897 = vrot.lane.b32.xlu0 %v8003_v13, %s7612_s13 }
 0x6bd   :  { %901 = vrot.lane.b32.xlu0 %v8027_v21, %s7612_s13 }
 0x6f1   :  { %v771_v0 = vpop.xlane.xlu1 %770 }
 0x6f2   :  { %7352 = vrcp.f32 %v771_v0 }
 0x6f3   :  { %v768_v1 = vpop.xlane.xlu0 %767 }
 0x6f4   :  { %7354 = vrcp.f32 %v768_v1 }
 0x6f5   :  { %v910_v14 = vpop.permute.xlu1 %909 }
 0x6f7   :  { %v912_v2 = vpop.permute.xlu0 %911 }
 0x6f8   :  { %6763 = vmatprep.subr.msk.mxu0 %vm636_vm2, %v912_v2 }
 0x6ff   :  { %v7353_v3 = vpop.eup %7352 }
 0x700   :  { %v783_v11 = vmul.f32 %v7353_v3, %v7345_v50 }
 0x701   :  { %v7355_v5 = vpop.eup %7354 }
 0x702   :  { %v782_v8 = vmul.f32 %v7355_v5, %v7347_v52 }
 0x704   :  { %6757 = vmatprep.mubr.msk.f32.mxu0 %vm355_vm1, %v782_v8 }
 0x705   :  { %6758 = vmatmul.mubr.msk.f32.vlgmr.msra.gmra.mxu0 %vm355_vm1, %v783_v11 }
 0x706   :  { %6764 = vmatpush3.xpose.msk.msra.mxu0 %vm636_vm2, %v912_v2 }
 0x707   :  { %6765 = vmatprep.subr.msk.mxu0 %vm636_vm2, %v910_v14 }
 0x70a   :  { %6766 = vmatpush3.xpose.msk.msra.mxu0 %vm636_vm2, %v910_v14 }
 0x726   :  { %v777_v13 = vpop.xlane.xlu1 %776 }
 0x727   :  { %7356 = vrcp.f32 %v777_v13 }
 0x728   :  { %v774_v16 = vpop.xlane.xlu0 %773 }
 0x729   :  { %7358 = vrcp.f32 %v774_v16 }
 0x72a   :  { %v906_v18 = vpop.permute.xlu1 %905 }
 0x72c   :  { %v908_v17 = vpop.permute.xlu0 %907 }
 0x72d   :  { %6767 = vmatprep.subr.msk.mxu0 %vm636_vm2, %v908_v17 }
 0x72e   :  { %6768 = vmatpush3.xpose.msk.msra.mxu0 %vm636_vm2, %v908_v17  ;;  %v900_v24 = vpop.permute.xlu1 %899 }
 0x72f   :  { %6769 = vmatprep.subr.msk.mxu0 %vm636_vm2, %v906_v18 }
 0x730   :  { %v898_v22 = vpop.permute.xlu0 %897 }
 0x732   :  { %6770 = vmatpush3.xpose.msk.msra.mxu0 %vm636_vm2, %v906_v18  ;;  %v904_v26 = vpop.permute.xlu1 %903 }
 0x733   :  { %6797 = vmatprep.subr.bf16.mxu0 %v7206_v27 }
 0x734   :  { %v7357_v19 = vpop.eup %7356  ;;  %v902_v25 = vpop.permute.xlu0 %901 }
 0x735   :  { %v785_v23 = vmul.f32 %v7357_v19, %v7349_v59 }
 0x736   :  { %v7359_v20 = vpop.eup %7358 }
 0x737   :  { %v784_v21 = vmul.f32 %v7359_v20, %v7351_v60 }
 0x739   :  { %6760 = vmatprep.mubr.msk.f32.mxu0 %vm355_vm1, %v784_v21 }
 0x73a   :  { %6761 = vmatmul.mubr.msk.f32.gmra.mxu0 %vm355_vm1, %v785_v23 }
 0x73b   :  { %6771 = vmatprep.mubr.msk.f32.mxu0 %vm636_vm2, %v898_v22 }
 0x73e   :  { %6772 = vmatmul.mubr.msk.f32.vlgmr.msra.gmra.mxu0 %vm636_vm2, %v900_v24 }
 0x73f   :  { %6774 = vmatprep.mubr.msk.f32.mxu0 %vm636_vm2, %v902_v25  ;;  %6798 = vmatpush3.bf16.msra.mxu0 %v7206_v27 }
 0x742   :  { %6775 = vmatmul.mubr.msk.f32.gmra.mxu0 %vm636_vm2, %v904_v26  ;;  %v7207_v26 = vld [vmem:[%s7678_s19 + $0x8] sm:$0xff]   ;;  %s8894_s19 = sld [smem:[#allocation10_spill]] }
 0x7c5   :  { %v6759_v28 = vpop.f32.mrf.mxu0 }
 0x7c7   :  { %v876_v29 = vpop.f32.mrf.mxu0 }
 0x7c8   :  { %v895_v30 = vpack.c.bf16 %v6759_v28, %v876_v29 }
 0x7ca   :  { %6799 = vmatprep.mubr.msk.bf16.mxu0 %vm636_vm2, %v895_v30 }
 0x7fa   :  { %v6762_v31 = vpop.f32.mrf.mxu0 }
 0x7fc   :  { %v886_v32 = vpop.f32.mrf.mxu0 }
 0x7fd   :  { %v896_v34 = vpack.c.bf16 %v6762_v31, %v886_v32 }
 0x7fe   :  { %v6773_v35 = vpop.f32.mrf.mxu0 }
 0x7ff   :  { %v1001_v37 = vadd.f32 %v6773_v35, %v441_v33  ;;  %6800 = vmatmul.mubr.msk.bf16.vlgmr.msra.gmra.mxu0 %vm636_vm2, %v896_v34 }
 0x800   :  { %v995_v38 = vpop.f32.mrf.mxu0 }
 0x801   :  { %v996_v39 = vadd.f32 %v995_v38, %v440_v36  ;;  %v1017_v40 = vsel %vm355_vm1, %v1001_v37, -inf }
 0x802   :  { %1018 = vmax.xlane.f32.xlu1 %v1017_v40  ;;  %v6776_v41 = vpop.f32.mrf.mxu0 }
 0x803   :  { %v1014_v43 = vsel %vm355_vm1, %v996_v39, -inf  ;;  %v1011_v47 = vadd.f32 %v6776_v41, %v443_v44 }
 0x804   :  { %1015 = vmax.xlane.f32.xlu0 %v1014_v43  ;;  %v1005_v45 = vpop.f32.mrf.mxu0 }
 0x805   :  { %v1006_v46 = vadd.f32 %v1005_v45, %v442_v42  ;;  %v1023_v49 = vsel %vm355_vm1, %v1011_v47, -inf  ;;  %v6272_v45 = vld [vmem:[%s7683_s24] ss:$0 sm:$0xff]  ;;  %s8895_s24 = sld [smem:[#allocation12_spill]] }
 0x807   :  { %v1020_v48 = vsel %vm355_vm1, %v1006_v46, -inf }
 0x808   :  { %1021 = vmax.xlane.f32.xlu0 %v1020_v48 }
 0x80c   :  { %1024 = vmax.xlane.f32.xlu0 %v1023_v49 }
 0x88b   :  { %v1019_v50 = vpop.xlane.xlu1 %1018 }
 0x88c   :  { %v1027_v51 = vsub.f32 %v1001_v37, %v1019_v50 }
 0x88d   :  { %v1016_v52 = vpop.xlane.xlu0 %1015 }
 0x88e   :  { %v1032_v53 = vmul.f32 1.442695, %v1027_v51  ;;  %v1026_v54 = vsub.f32 %v996_v39, %v1016_v52 }
 0x890   :  { %7360 = vpow2.f32 %v1032_v53  ;;  %v1030_v55 = vmul.f32 1.442695, %v1026_v54 }
 0x891   :  { %v1022_v56 = vpop.xlane.xlu0 %1021 }
 0x892   :  { %7362 = vpow2.f32 %v1030_v55  ;;  %v1028_v57 = vsub.f32 %v1006_v46, %v1022_v56 }
 0x894   :  { %v1034_v58 = vmul.f32 1.442695, %v1028_v57 }
 0x895   :  { %v1025_v59 = vpop.xlane.xlu0 %1024 }
 0x896   :  { %7364 = vpow2.f32 %v1034_v58  ;;  %v1029_v60 = vsub.f32 %v1011_v47, %v1025_v59 }
 0x898   :  { %v1036_v62 = vmul.f32 1.442695, %v1029_v60 }
 0x89a   :  { %7366 = vpow2.f32 %v1036_v62 }
 0x89d   :  { %v7361_v63 = vpop.eup %7360 }
 0x89e   :  { %v1041_v0 = vsel %vm355_vm1, %v7361_v63, 0.0 }
 0x89f   :  { %v7363_v1 = vpop.eup %7362  ;;  %1042 = vadd.xlane.f32.xlu1 %v1041_v0 }
 0x8a0   :  { %v1038_v2 = vsel %vm355_vm1, %v7363_v1, 0.0 }
 0x8a1   :  { %1039 = vadd.xlane.f32.xlu0 %v1038_v2 }
 0x8a3   :  { %v7365_v3 = vpop.eup %7364 }
 0x8a4   :  { %v1044_v5 = vsel %vm355_vm1, %v7365_v3, 0.0 }
 0x8a5   :  { %1045 = vadd.xlane.f32.xlu0 %v1044_v5 }
 0x8a7   :  { %v7367_v8 = vpop.eup %7366 }
 0x8a8   :  { %v1047_v11 = vsel %vm355_vm1, %v7367_v8, 0.0 }
 0x8a9   :  { %1048 = vadd.xlane.f32.xlu1 %v1047_v11 }
 0x8ba   :  { %1062 = vrot.lane.b32.xlu1 %v7994_v7, %s7613_s17 }
 0x8bb   :  { %1064 = vrot.lane.b32.xlu0 %v8000_v12, %s7613_s17 }
 0x8be   :  { %1060 = vrot.lane.b32.xlu1 %v8005_v15, %s7613_s17 }
 0x8bf   :  { %v6801_v33 = vpop.f32.mrf.mxu0 }
 0x8c1   :  { %v1276_v34 = vpop.f32.mrf.mxu0 }
 0x8c2   :  { %1058 = vrot.lane.b32.xlu1 %v7996_v9, %s7613_s17 }
 0x8c3   :  { %v6802_v37 = vpop.f32.mrf.mxu0 }
 0x8c5   :  { %v1279_v44 = vpop.f32.mrf.mxu0 }
 0x928   :  { %v1043_v13 = vpop.xlane.xlu1 %1042 }
 0x92a   :  { %v1040_v14 = vpop.xlane.xlu0 %1039 }
 0x92b   :  { %7368 = vrcp.f32 %v1040_v14 }
 0x92c   :  { %7370 = vrcp.f32 %v1043_v13 }
 0x92e   :  { %v1046_v16 = vpop.xlane.xlu0 %1045 }
 0x92f   :  { %7372 = vrcp.f32 %v1046_v16 }
 0x932   :  { %v1049_v17 = vpop.xlane.xlu1 %1048  ;;  %v1065_v18 = vpop.permute.xlu0 %1064 }
 0x933   :  { %7374 = vrcp.f32 %v1049_v17  ;;  %6777 = vmatprep.subr.mxu1 %v1065_v18 }
 0x934   :  { %6778 = vmatpush3.msra.mxu1 %v1065_v18  ;;  %v7208_v18 = vld [vmem:[%s7698_s12 + $0x8] sm:$0xff]  }
 0x936   :  { %v1063_v7 = vpop.permute.xlu1 %1062 }
 0x937   :  { %6779 = vmatprep.subr.mxu1 %v1063_v7 }
 0x938   :  { %v7369_v12 = vpop.eup %7368  ;;  %6780 = vmatpush3.msra.mxu1 %v1063_v7  ;;  %v7209_v7 = vld [vmem:[%s7698_s12] sm:$0xff]   ;;  %s8897_s12 = sld [smem:[#allocation14_spill]] }
 0x939   :  { %v1054_v19 = vmul.f32 %v7369_v12, %v7363_v1  ;;  %v7371_v9 = vpop.eup %7370 }
 0x93a   :  { %v1061_v15 = vpop.permute.xlu1 %1060  ;;  %v1055_v22 = vmul.f32 %v7371_v9, %v7361_v63 }
 0x93b   :  { %6781 = vmatprep.subr.mxu1 %v1061_v15  ;;  %6785 = vmatprep.mubr.msk.f32.mxu1 %vm355_vm1, %v1054_v19 }
 0x93c   :  { %6782 = vmatpush3.msra.mxu1 %v1061_v15  ;;  %v7373_v20 = vpop.eup %7372 }
 0x93d   :  { %v1056_v24 = vmul.f32 %v7373_v20, %v7365_v3 }
 0x93e   :  { %v1059_v21 = vpop.permute.xlu1 %1058 }
 0x93f   :  { %6783 = vmatprep.subr.mxu1 %v1059_v21 }
 0x940   :  { %v7375_v23 = vpop.eup %7374  ;;  %6784 = vmatpush3.msra.mxu1 %v1059_v21 }
 0x941   :  { %6786 = vmatmul.mubr.msk.f32.vlgmr.msra.gmra.mxu1 %vm355_vm1, %v1055_v22  ;;  %v1057_v25 = vmul.f32 %v7375_v23, %v7367_v8  ;;  %6791 = vmatprep.subr.bf16.mxu1 %v7207_v26 }
 0x942   :  { %6788 = vmatprep.mubr.msk.f32.mxu1 %vm355_vm1, %v1056_v24  ;;  %6792 = vmatpush3.bf16.msra.mxu1 %v7207_v26 }
 0x943   :  { %6803 = vmatprep.subr.bf16.mxu1 %v7208_v18 }
 0x945   :  { %6789 = vmatmul.mubr.msk.f32.gmra.mxu1 %vm355_vm1, %v1057_v25 }
 0xa01   :  { %v6787_v27 = vpop.f32.mrf.mxu1 }
 0xa03   :  { %v1148_v28 = vpop.f32.mrf.mxu1 }
 0xa04   :  { %v1167_v29 = vpack.c.bf16 %v6787_v27, %v1148_v28 }
 0xa05   :  { %v6790_v30 = vpop.f32.mrf.mxu1 }
 0xa06   :  { %6793 = vmatprep.mubr.msk.bf16.mxu1 %vm636_vm2, %v1167_v29 }
 0xa07   :  { %v1158_v31 = vpop.f32.mrf.mxu1 }
 0xa08   :  { %v1168_v32 = vpack.c.bf16 %v6790_v30, %v1158_v31  ;;  %v6273_v30 = vld [vmem:[%s7688_s30] ss:$0 sm:$0xff]  ;;  %s8896_s30 = sld [smem:[#allocation13_spill]] }
 0xa0a   :  { %6794 = vmatmul.mubr.msk.bf16.vlgmr.msra.gmra.mxu1 %vm636_vm2, %v1168_v32 }
 0xa0b   :  { %6804 = vmatpush3.bf16.msra.mxu1 %v7208_v18 }
 0xa0c   :  { %6805 = vmatprep.subr.bf16.mxu1 %v7209_v7 }
 0xa0f   :  { %6806 = vmatpush3.bf16.msra.mxu1 %v7209_v7 }
 0xaca   :  { %v6795_v35 = vpop.f32.mrf.mxu1 }
 0xacb   :  { %v1285_v36 = vadd.f32 %v6801_v33, %v6795_v35 }
 0xacc   :  { %v1215_v38 = vpop.f32.mrf.mxu1 }
 0xacd   :  { %v1277_v39 = vadd.f32 %v1276_v34, %v1215_v38  ;;  %v1293_v41 = vadd.f32 %v1285_v36, %v7969_v6  ;;  %v6274_v36 = vld [vmem:[%s8888_s21] ss:$0 sm:$0xff]  ;;  %s8909_s21 = sld [smem:[#allocation28_spill]] }
 0xace   :  { %v6796_v40 = vpop.f32.mrf.mxu1 }
 0xacf   :  { %v1291_v42 = vadd.f32 %v1277_v39, %v7963_v61  ;;  %v1288_v43 = vadd.f32 %v6802_v37, %v6796_v40  ;;  %v8125_v49 = vadd.f32 %v6272_v45, %v1293_v41 }
 0xad0   :  { %v1218_v46 = vpop.f32.mrf.mxu1 }
 0xad1   :  { %v8123_v47 = vadd.f32 %v6272_v45, %v1291_v42  ;;  %v1280_v48 = vadd.f32 %v1279_v44, %v1218_v46  ;;  %v1294_v50 = vadd.f32 %v1288_v43, %v7975_v10  ;;  %v1311_v53 = vsel %vm355_vm1, %v8125_v49, 0.0 }
 0xad3   :  { %v1292_v51 = vadd.f32 %v1280_v48, %v7967_v4  ;;  %v1305_v52 = vsel %vm355_vm1, %v8123_v47, 0.0  ;;  %v8133_v61 = vadd.f32 %v6272_v45, %v1294_v50  ;;  %v7210_v50 = vld [vmem:[%s8889_s25 + $0x38] sm:$0xff]  }
 0xad4   :  { %1306 = vadd.xlane.f32.xlu0 %v1305_v52  ;;  %6811 = vmatprep.subr.bf16.mxu0 %v7210_v50  ;;  %v7212_v52 = vld [vmem:[%s8889_s25 + $0x28] sm:$0xff]  }
 0xad5   :  { %v8131_v6 = vadd.f32 %v6272_v45, %v1292_v51  ;;  %v1314_v10 = vsel %vm355_vm1, %v8133_v61, 0.0  ;;  %6812 = vmatpush3.bf16.msra.mxu0 %v7210_v50  ;;  %v7211_v51 = vld [vmem:[%s8889_s25 + $0x30] sm:$0xff]  }
 0xad6   :  { %6813 = vmatprep.subr.bf16.mxu0 %v7211_v51 }
 0xad7   :  { %v1308_v54 = vsel %vm355_vm1, %v8131_v6, 0.0 }
 0xad8   :  { %1312 = vadd.xlane.f32.xlu0 %v1311_v53  ;;  %1309 = vadd.xlane.f32.xlu1 %v1308_v54  ;;  %v7213_v53 = vld [vmem:[%s8889_s25 + $0x20] sm:$0xff]   ;;  %v7214_v54 = vld [vmem:[%s8889_s25 + $0x18] sm:$0xff]  }
 0xad9   :  { %6814 = vmatpush3.bf16.msra.mxu0 %v7211_v51 }
 0xada   :  { %6815 = vmatprep.subr.bf16.mxu0 %v7212_v52 }
 0xadc   :  { %1315 = vadd.xlane.f32.xlu0 %v1314_v10  ;;  %v7215_v10 = vld [vmem:[%s8889_s25 + $0x10] sm:$0xff]  }
 0xadd   :  { %6816 = vmatpush3.bf16.msra.mxu0 %v7212_v52 }
 0xade   :  { %6817 = vmatprep.subr.bf16.mxu0 %v7213_v53 }
 0xae1   :  { %6818 = vmatpush3.bf16.msra.mxu0 %v7213_v53 }
 0xae2   :  { %6819 = vmatprep.subr.bf16.mxu0 %v7214_v54 }
 0xae5   :  { %6820 = vmatpush3.bf16.msra.mxu0 %v7214_v54 }
 0xae6   :  { %6821 = vmatprep.subr.bf16.mxu0 %v7215_v10 }
 0xae9   :  { %6822 = vmatpush3.bf16.msra.mxu0 %v7215_v10 }
 0xb5d   :  { %v1307_v4 = vpop.xlane.xlu0 %1306 }
 0xb5e   :  { %v1317_v55 = vmul.f32 0.03125, %v1307_v4  ;;  %v7216_v4 = vld [vmem:[%s8889_s25 + $0x8] sm:$0xff]  }
 0xb5f   :  { %6823 = vmatprep.subr.bf16.mxu0 %v7216_v4 }
 0xb60   :  { %v1321_v56 = vsub.f32 %v8123_v47, %v1317_v55  ;;  %6824 = vmatpush3.bf16.msra.mxu0 %v7216_v4  ;;  %v7217_v55 = vld [vmem:[%s8889_s25] sm:$0xff]   ;;  %s8910_s25 = sld [smem:[#allocation26_spill]] }
 0xb61   :  { %v1313_v57 = vpop.xlane.xlu0 %1312  ;;  %v1310_v58 = vpop.xlane.xlu1 %1309  ;;  %6825 = vmatprep.subr.bf16.mxu0 %v7217_v55 }
 0xb62   :  { %v1319_v59 = vmul.f32 0.03125, %v1313_v57  ;;  %v1318_v60 = vmul.f32 0.03125, %v1310_v58  ;;  %v1325_v62 = vmul.f32 %v1321_v56, %v1321_v56 }
 0xb64   :  { %v1323_v63 = vsub.f32 %v8125_v49, %v1319_v59  ;;  %v1322_v0 = vsub.f32 %v8131_v6, %v1318_v60  ;;  %v1329_v1 = vsel %vm355_vm1, %v1325_v62, 0.0  ;;  %6826 = vmatpush3.bf16.msra.mxu0 %v7217_v55 }
 0xb65   :  { %1330 = vadd.xlane.f32.xlu0 %v1329_v1  ;;  %v1316_v2 = vpop.xlane.xlu0 %1315 }
 0xb66   :  { %v1320_v3 = vmul.f32 0.03125, %v1316_v2  ;;  %v1327_v5 = vmul.f32 %v1323_v63, %v1323_v63  ;;  %v1326_v8 = vmul.f32 %v1322_v0, %v1322_v0 }
 0xb68   :  { %v1324_v11 = vsub.f32 %v8133_v61, %v1320_v3  ;;  %v1335_v14 = vsel %vm355_vm1, %v1327_v5, 0.0  ;;  %v1332_v13 = vsel %vm355_vm1, %v1326_v8, 0.0 }
 0xb69   :  { %1336 = vadd.xlane.f32.xlu0 %v1335_v14  ;;  %1333 = vadd.xlane.f32.xlu1 %v1332_v13 }
 0xb6a   :  { %v1328_v16 = vmul.f32 %v1324_v11, %v1324_v11 }
 0xb6c   :  { %v1338_v17 = vsel %vm355_vm1, %v1328_v16, 0.0 }
 0xb6d   :  { %1339 = vadd.xlane.f32.xlu1 %v1338_v17 }
 0xbee   :  { %v1331_v12 = vpop.xlane.xlu0 %1330 }
 0xbef   :  { %v1341_v19 = vmul.f32 0.03125, %v1331_v12 }
 0xbf1   :  { %v1345_v15 = vadd.f32 1e-05, %v1341_v19 }
 0xbf2   :  { %v1337_v9 = vpop.xlane.xlu0 %1336  ;;  %v1334_v20 = vpop.xlane.xlu1 %1333 }
 0xbf3   :  { %7376 = vrsqrt.f32 %v1345_v15  ;;  %v1343_v21 = vmul.f32 0.03125, %v1337_v9  ;;  %v1342_v22 = vmul.f32 0.03125, %v1334_v20 }
 0xbf5   :  { %v1347_v23 = vadd.f32 1e-05, %v1343_v21  ;;  %v1346_v24 = vadd.f32 1e-05, %v1342_v22 }
 0xbf6   :  { %v1340_v25 = vpop.xlane.xlu1 %1339 }
 0xbf7   :  { %7378 = vrsqrt.f32 %v1347_v23  ;;  %v1344_v26 = vmul.f32 0.03125, %v1340_v25 }
 0xbf8   :  { %7380 = vrsqrt.f32 %v1346_v24 }
 0xbf9   :  { %v1348_v27 = vadd.f32 1e-05, %v1344_v26 }
 0xbfb   :  { %7382 = vrsqrt.f32 %v1348_v27 }
 0xc00   :  { %v7377_v28 = vpop.eup %7376 }
 0xc01   :  { %v1353_v29 = vmul.f32 %v7377_v28, %v1321_v56  ;;  %v6275_v56 = vld [vmem:[%s8890_s29] ss:$0 sm:$0xff]  ;;  %s8911_s29 = sld [smem:[#allocation27_spill]] }
 0xc03   :  { %v1363_v35 = vmul.f32 %v6273_v30, %v1353_v29 }
 0xc04   :  { %v7379_v31 = vpop.eup %7378 }
 0xc05   :  { %v7381_v32 = vpop.eup %7380  ;;  %v1355_v33 = vmul.f32 %v7379_v31, %v1323_v63  ;;  %v1373_v41 = vadd.f32 %v6274_v36, %v1363_v35 }
 0xc06   :  { %v1354_v34 = vmul.f32 %v7381_v32, %v1322_v0 }
 0xc07   :  { %v1365_v40 = vmul.f32 %v6273_v30, %v1355_v33 }
 0xc08   :  { %v7383_v37 = vpop.eup %7382  ;;  %v1364_v38 = vmul.f32 %v6273_v30, %v1354_v34 }
 0xc09   :  { %v1356_v39 = vmul.f32 %v7383_v37, %v1324_v11  ;;  %v1375_v45 = vadd.f32 %v6274_v36, %v1365_v40 }
 0xc0a   :  { %v1374_v42 = vadd.f32 %v6274_v36, %v1364_v38 }
 0xc0b   :  { %v1366_v43 = vmul.f32 %v6273_v30, %v1356_v39 }
 0xc0c   :  { %v1377_v44 = vpack.c.bf16 %v1374_v42, %v1373_v41 }
 0xc0d   :  { %v1376_v46 = vadd.f32 %v6274_v36, %v1366_v43 }
 0xc0e   :  { %6807 = vmatprep.mubr.msk.bf16.mxu1 %vm355_vm1, %v1377_v44 }
 0xc0f   :  { %v1378_v48 = vpack.c.bf16 %v1376_v46, %v1375_v45 }
 0xc11   :  { %6808 = vmatmul.mubr.msk.bf16.vlgmr.msra.gmra.mxu1 %vm355_vm1, %v1378_v48 }
 0xcd1   :  { %v6809_v57 = vpop.f32.mrf.mxu1 }
 0xcd2   :  { %v8164_v58 = vadd.f32 %v6809_v57, %v6275_v56 }
 0xcd3   :  { %v1437_v59 = vpop.f32.mrf.mxu1 }
 0xcd4   :  { %v8167_v60 = vmul.f32 0.70710677, %v8164_v58  ;;  %v8169_v62 = vadd.f32 %v6275_v56, %v1437_v59 }
 0xcd5   :  { %v6810_v63 = vpop.f32.mrf.mxu1 }
 0xcd6   :  { %v1458_v0 = vand.u32 2147483647, %v8167_v60  ;;  %v8173_v1 = vmul.f32 0.70710677, %v8169_v62  ;;  %v8175_v2 = vadd.f32 %v6810_v63, %v6275_v56  ;;  %vm1538_vm4 = vcmp.ge.f32.partialorder %v8167_v60, 0.0 }
 0xcd7   :  { %v1440_v3 = vpop.f32.mrf.mxu1 }
 0xcd8   :  { %v1462_v5 = vmul.f32 0.3275911, %v1458_v0  ;;  %v1456_v8 = vand.u32 2147483647, %v8173_v1  ;;  %v8179_v11 = vmul.f32 0.70710677, %v8175_v2  ;;  %v8181_v14 = vadd.f32 %v6275_v56, %v1440_v3 }
 0xcd9   :  { %v1514_v21 = vsub.f32 0.0, %v1458_v0  ;;  %vm1536_vm3 = vcmp.ge.f32.partialorder %v8173_v1, 0.0  ;;  %v1548_v1 = vmul.f32 0.5, %v8169_v62 }
 0xcda   :  { %v1466_v13 = vadd.f32 1.0, %v1462_v5  ;;  %v1460_v16 = vmul.f32 0.3275911, %v1456_v8  ;;  %v1459_v17 = vand.u32 2147483647, %v8179_v11  ;;  %v1512_v22 = vsub.f32 0.0, %v1456_v8 }
 0xcdb   :  { %v8185_v18 = vmul.f32 0.70710677, %v8181_v14  ;;  %v1518_v23 = vmul.f32 %v1514_v21, %v1458_v0  ;;  %vm1539_vm5 = vcmp.ge.f32.partialorder %v8179_v11, 0.0  ;;  %v1549_v60 = vmul.f32 0.5, %v8181_v14 }
 0xcdc   :  { %7384 = vrcp.f32 %v1466_v13  ;;  %v1464_v7 = vadd.f32 1.0, %v1460_v16  ;;  %v1463_v12 = vmul.f32 0.3275911, %v1459_v17  ;;  %v1515_v24 = vsub.f32 0.0, %v1459_v17 }
 0xcdd   :  { %v1457_v19 = vand.u32 2147483647, %v8185_v18  ;;  %v1516_v26 = vmul.f32 %v1512_v22, %v1456_v8  ;;  %v1524_v28 = vmul.f32 1.442695, %v1518_v23  ;;  %vm1537_vm6 = vcmp.ge.f32.partialorder %v8185_v18, 0.0 }
 0xcde   :  { %7386 = vrcp.f32 %v1464_v7  ;;  %v1467_v15 = vadd.f32 1.0, %v1463_v12  ;;  %v1519_v30 = vmul.f32 %v1515_v24, %v1459_v17  ;;  %v1550_v11 = vmul.f32 0.5, %v8164_v58 }
 0xcdf   :  { %v1461_v9 = vmul.f32 0.3275911, %v1457_v19  ;;  %v1513_v29 = vsub.f32 0.0, %v1457_v19  ;;  %v1520_v34 = vmul.f32 1.442695, %v1516_v26 }
 0xce0   :  { %7388 = vrcp.f32 %v1467_v15  ;;  %v1526_v40 = vmul.f32 1.442695, %v1519_v30 }
 0xce1   :  { %v1465_v20 = vadd.f32 1.0, %v1461_v9  ;;  %v1517_v37 = vmul.f32 %v1513_v29, %v1457_v19 }
 0xce3   :  { %7390 = vrcp.f32 %v1465_v20  ;;  %v1522_v48 = vmul.f32 1.442695, %v1517_v37 }
 0xce4   :  { %7392 = vpow2.f32 %v1524_v28 }
 0xce5   :  { %7394 = vpow2.f32 %v1520_v34 }
 0xce6   :  { %7396 = vpow2.f32 %v1526_v40 }
 0xce7   :  { %7398 = vpow2.f32 %v1522_v48 }
 0xce9   :  { %v7385_v25 = vpop.eup %7384 }
 0xcea   :  { %v1478_v27 = vmul.f32 1.0614054, %v7385_v25 }
 0xceb   :  { %v7387_v31 = vpop.eup %7386 }
 0xcec   :  { %v1482_v32 = vadd.f32 -1.4531521, %v1478_v27  ;;  %v1476_v33 = vmul.f32 1.0614054, %v7387_v31 }
 0xced   :  { %v7389_v35 = vpop.eup %7388 }
 0xcee   :  { %v1486_v36 = vmul.f32 %v7385_v25, %v1482_v32  ;;  %v1480_v38 = vadd.f32 -1.4531521, %v1476_v33  ;;  %v1479_v39 = vmul.f32 1.0614054, %v7389_v35 }
 0xcf0   :  { %v1490_v41 = vadd.f32 1.4214138, %v1486_v36  ;;  %v7391_v42 = vpop.eup %7390  ;;  %v1484_v43 = vmul.f32 %v7387_v31, %v1480_v38  ;;  %v1483_v44 = vadd.f32 -1.4531521, %v1479_v39 }
 0xcf1   :  { %v1477_v46 = vmul.f32 1.0614054, %v7391_v42  ;;  %v7393_v13 = vpop.eup %7392 }
 0xcf2   :  { %v1494_v45 = vmul.f32 %v7385_v25, %v1490_v41  ;;  %v1488_v50 = vadd.f32 1.4214138, %v1484_v43  ;;  %v1487_v51 = vmul.f32 %v7389_v35, %v1483_v44  ;;  %v7395_v9 = vpop.eup %7394  ;;  %v1551_v43 = vmul.f32 0.5, %v8175_v2 }
 0xcf3   :  { %v1481_v53 = vadd.f32 -1.4531521, %v1477_v46  ;;  %v7397_v24 = vpop.eup %7396 }
 0xcf4   :  { %v1498_v52 = vadd.f32 -0.28449672, %v1494_v45  ;;  %v1492_v54 = vmul.f32 %v7387_v31, %v1488_v50  ;;  %v1491_v10 = vadd.f32 1.4214138, %v1487_v51  ;;  %v7399_v30 = vpop.eup %7398 }
 0xcf5   :  { %v1485_v55 = vmul.f32 %v7391_v42, %v1481_v53 }
 0xcf6   :  { %v1502_v4 = vmul.f32 %v7385_v25, %v1498_v52  ;;  %v1496_v56 = vadd.f32 -0.28449672, %v1492_v54  ;;  %v1495_v57 = vmul.f32 %v7389_v35, %v1491_v10  ;;  %v6280_v54 = vld [vmem:[%s8891_s3] ss:$0 sm:$0xff]  ;;  %s8912_s3 = sld [smem:[#allocation29_spill]] }
 0xcf7   :  { %v1489_v63 = vadd.f32 1.4214138, %v1485_v55 }
 0xcf8   :  { %v1506_v59 = vadd.f32 0.2548296, %v1502_v4  ;;  %v1500_v0 = vmul.f32 %v7387_v31, %v1496_v56  ;;  %v1499_v3 = vadd.f32 -0.28449672, %v1495_v57 }
 0xcf9   :  { %v1493_v8 = vmul.f32 %v7391_v42, %v1489_v63 }
 0xcfa   :  { %v1510_v5 = vmul.f32 %v7385_v25, %v1506_v59  ;;  %v1504_v16 = vadd.f32 0.2548296, %v1500_v0  ;;  %v1503_v17 = vmul.f32 %v7389_v35, %v1499_v3 }
 0xcfb   :  { %v1497_v12 = vadd.f32 -0.28449672, %v1493_v8 }
 0xcfc   :  { %v1530_v7 = vmul.f32 %v7393_v13, %v1510_v5  ;;  %v1508_v19 = vmul.f32 %v7387_v31, %v1504_v16  ;;  %v1507_v15 = vadd.f32 0.2548296, %v1503_v17 }
 0xcfd   :  { %v1501_v20 = vmul.f32 %v7391_v42, %v1497_v12 }
 0xcfe   :  { %v1534_v21 = vsub.f32 1.0, %v1530_v7  ;;  %v1528_v22 = vmul.f32 %v7395_v9, %v1508_v19  ;;  %v1511_v23 = vmul.f32 %v7389_v35, %v1507_v15 }
 0xcff   :  { %v1505_v26 = vadd.f32 0.2548296, %v1501_v20 }
 0xd00   :  { %v1532_v27 = vsub.f32 1.0, %v1528_v22  ;;  %v1531_v28 = vmul.f32 %v7397_v24, %v1511_v23  ;;  %v1542_v25 = vsub.f32 0.0, %v1534_v21 }
 0xd01   :  { %v1509_v29 = vmul.f32 %v7391_v42, %v1505_v26 }
 0xd02   :  { %v1540_v32 = vsub.f32 0.0, %v1532_v27  ;;  %v1535_v33 = vsub.f32 1.0, %v1531_v28  ;;  %v1546_v35 = vsel %vm1538_vm4, %v1534_v21, %v1542_v25 }
 0xd03   :  { %v1529_v34 = vmul.f32 %v7399_v30, %v1509_v29  ;;  %v1554_v42 = vadd.f32 1.0, %v1546_v35  ;;  %v7218_v29 = vld [vmem:[%s8892_s8 + $0x8] sm:$0xff]   ;;  %v7219_v30 = vld [vmem:[%s8892_s8] sm:$0xff]   ;;  %s8913_s8 = sld [smem:[#allocation30_spill]] }
 0xd04   :  { %v1543_v36 = vsub.f32 0.0, %v1535_v33  ;;  %v1544_v31 = vsel %vm1536_vm3, %v1532_v27, %v1540_v32  ;;  %6831 = vmatprep.subr.bf16.mxu1 %v7218_v29 }
 0xd05   :  { %v1533_v37 = vsub.f32 1.0, %v1529_v34  ;;  %v1552_v41 = vadd.f32 1.0, %v1544_v31  ;;  %v1558_v51 = vmul.f32 %v1554_v42, %v1550_v11  ;;  %6832 = vmatpush3.bf16.msra.mxu1 %v7218_v29 }
 0xd06   :  { %v1547_v38 = vsel %vm1539_vm5, %v1535_v33, %v1543_v36  ;;  %6833 = vmatprep.subr.bf16.mxu1 %v7219_v30 }
 0xd07   :  { %v1555_v39 = vadd.f32 1.0, %v1547_v38  ;;  %v1541_v40 = vsub.f32 0.0, %v1533_v37  ;;  %v1556_v48 = vmul.f32 %v1552_v41, %v1548_v1 }
 0xd09   :  { %v1545_v44 = vsel %vm1537_vm6, %v1533_v37, %v1541_v40  ;;  %v1559_v46 = vmul.f32 %v1555_v39, %v1551_v43  ;;  %6834 = vmatpush3.bf16.msra.mxu1 %v7219_v30  ;;  %v1676_v30 = vld [vmem:[%s8896_s30] sm:$0xff] }
 0xd0a   :  { %v1553_v45 = vadd.f32 1.0, %v1545_v44  ;;  %v6289_v44 = vld [vmem:[%s8893_s14] ss:$0 sm:$0xff]  ;;  %s8914_s14 = sld [smem:[#allocation31_spill]] }
 0xd0b   :  { %v1561_v53 = vpack.c.bf16 %v1559_v46, %v1558_v51 }
 0xd0c   :  { %v1557_v50 = vmul.f32 %v1553_v45, %v1549_v60 }
 0xd0e   :  { %v1560_v52 = vpack.c.bf16 %v1557_v50, %v1556_v48  ;;  %v6290_v48 = vld [vmem:[%s8894_s19] ss:$0 sm:$0xff]  ;;  %s7618_s19 = smov 16  }
 0xd10   :  { %6827 = vmatprep.mubr.bf16.mxu0 %v1560_v52 }
 0xd11   :  { %6828 = vmatmul.mubr.bf16.vlgmr.msra.gmra.mxu0 %v1561_v53 }
 0xdd1   :  { %v6829_v18 = vpop.f32.mrf.mxu0 }
 0xdd2   :  { %v1659_v2 = vadd.f32 %v6829_v18, %v6280_v54 }
 0xdd3   :  { %v1650_v10 = vpop.f32.mrf.mxu0 }
 0xdd4   :  { %v1651_v4 = vadd.f32 %v6280_v54, %v1650_v10  ;;  %v8201_v58 = vadd.f32 %v1659_v2, %v8125_v49 }
 0xdd5   :  { %v6830_v55 = vpop.f32.mrf.mxu0 }
 0xdd6   :  { %v8198_v62 = vadd.f32 %v1651_v4, %v8123_v47  ;;  %v1662_v56 = vadd.f32 %v6830_v55, %v6280_v54  ;;  %v1719_v3 = vsel %vm355_vm1, %v8201_v58, 0.0 }
 0xdd7   :  { %v1653_v14 = vpop.f32.mrf.mxu0 }
 0xdd8   :  { %v1654_v57 = vadd.f32 %v6280_v54, %v1653_v14  ;;  %v1713_v59 = vsel %vm355_vm1, %v8198_v62, 0.0  ;;  %v8209_v0 = vadd.f32 %v1662_v56, %v8133_v61  ;;  %v6291_v56 = vld [vmem:[%s8895_s24] ss:$0 sm:$0xff]  ;;  %s8915_s24 = sld [smem:[#allocation32_spill]] }
 0xdd9   :  { %1714 = vadd.xlane.f32.xlu0 %v1713_v59 }
 0xdda   :  { %v8206_v63 = vadd.f32 %v1654_v57, %v8131_v6  ;;  %v1722_v49 = vsel %vm355_vm1, %v8209_v0, 0.0 }
 0xddc   :  { %v1716_v47 = vsel %vm355_vm1, %v8206_v63, 0.0 }
 0xddd   :  { %1717 = vadd.xlane.f32.xlu1 %v1716_v47  ;;  %1720 = vadd.xlane.f32.xlu0 %v1719_v3 }
 0xde1   :  { %1723 = vadd.xlane.f32.xlu1 %v1722_v49 }
 0xe62   :  { %v1715_v5 = vpop.xlane.xlu0 %1714 }
 0xe63   :  { %v1725_v8 = vmul.f32 0.03125, %v1715_v5 }
 0xe65   :  { %v1729_v6 = vsub.f32 %v8198_v62, %v1725_v8 }
 0xe66   :  { %v1718_v13 = vpop.xlane.xlu1 %1717  ;;  %v1721_v16 = vpop.xlane.xlu0 %1720 }
 0xe67   :  { %v1726_v61 = vmul.f32 0.03125, %v1718_v13  ;;  %v1727_v17 = vmul.f32 0.03125, %v1721_v16  ;;  %v1733_v7 = vmul.f32 %v1729_v6, %v1729_v6 }
 0xe69   :  { %v1730_v12 = vsub.f32 %v8206_v63, %v1726_v61  ;;  %v1731_v19 = vsub.f32 %v8201_v58, %v1727_v17  ;;  %v1737_v15 = vsel %vm355_vm1, %v1733_v7, 0.0 }
 0xe6a   :  { %v1724_v9 = vpop.xlane.xlu1 %1723  ;;  %1738 = vadd.xlane.f32.xlu0 %v1737_v15 }
 0xe6b   :  { %v1728_v20 = vmul.f32 0.03125, %v1724_v9  ;;  %v1734_v21 = vmul.f32 %v1730_v12, %v1730_v12  ;;  %v1735_v22 = vmul.f32 %v1731_v19, %v1731_v19 }
 0xe6d   :  { %v1732_v23 = vsub.f32 %v8209_v0, %v1728_v20  ;;  %v1740_v24 = vsel %vm355_vm1, %v1734_v21, 0.0  ;;  %v1743_v26 = vsel %vm355_vm1, %v1735_v22, 0.0 }
 0xe6e   :  { %1741 = vadd.xlane.f32.xlu1 %v1740_v24  ;;  %1744 = vadd.xlane.f32.xlu0 %v1743_v26 }
 0xe6f   :  { %v1736_v27 = vmul.f32 %v1732_v23, %v1732_v23 }
 0xe71   :  { %v1746_v28 = vsel %vm355_vm1, %v1736_v27, 0.0 }
 0xe72   :  { %1747 = vadd.xlane.f32.xlu1 %v1746_v28  ;;  %v1677_v28 = vld [vmem:[%s8896_s30 + $0x8] sm:$0xff] }
 0xef3   :  { %v1739_v25 = vpop.xlane.xlu0 %1738 }
 0xef4   :  { %v1749_v32 = vmul.f32 0.03125, %v1739_v25 }
 0xef6   :  { %v1753_v33 = vadd.f32 1e-05, %v1749_v32 }
 0xef7   :  { %v1742_v34 = vpop.xlane.xlu1 %1741  ;;  %v1745_v36 = vpop.xlane.xlu0 %1744 }
 0xef8   :  { %7400 = vrsqrt.f32 %v1753_v33  ;;  %v1750_v31 = vmul.f32 0.03125, %v1742_v34  ;;  %v1751_v37 = vmul.f32 0.03125, %v1745_v36  ;;  %v1681_v33 = vld [vmem:[%s8896_s30 + $0x28] sm:$0xff]  ;;  %v1679_v34 = vld [vmem:[%s8896_s30 + $0x18] sm:$0xff] }
 0xefa   :  { %v1754_v35 = vadd.f32 1e-05, %v1750_v31  ;;  %v1755_v38 = vadd.f32 1e-05, %v1751_v37 }
 0xefb   :  { %v1748_v39 = vpop.xlane.xlu1 %1747 }
 0xefc   :  { %7402 = vrsqrt.f32 %v1754_v35  ;;  %v1752_v40 = vmul.f32 0.03125, %v1748_v39 }
 0xefd   :  { %7404 = vrsqrt.f32 %v1755_v38 }
 0xefe   :  { %v1756_v41 = vadd.f32 1e-05, %v1752_v40 }
 0xf00   :  { %7406 = vrsqrt.f32 %v1756_v41 }
 0xf05   :  { %v7401_v42 = vpop.eup %7400 }
 0xf06   :  { %v1761_v43 = vmul.f32 %v7401_v42, %v1729_v6  ;;  %v1678_v42 = vld [vmem:[%s8896_s30 + $0x10] sm:$0xff] }
 0xf08   :  { %v1771_v11 = vmul.f32 %v6289_v44, %v1761_v43 }
 0xf09   :  { %v7403_v1 = vpop.eup %7402 }
 0xf0a   :  { %v7405_v60 = vpop.eup %7404  ;;  %v1762_v45 = vmul.f32 %v7403_v1, %v1730_v12  ;;  %v1781_v53 = vadd.f32 %v6290_v48, %v1771_v11 }
 0xf0b   :  { %v1763_v46 = vmul.f32 %v7405_v60, %v1731_v19 }
 0xf0c   :  { %v1772_v50 = vmul.f32 %v6289_v44, %v1762_v45 }
 0xf0d   :  { %v7407_v51 = vpop.eup %7406  ;;  %v1773_v54 = vmul.f32 %v6289_v44, %v1763_v46 }
 0xf0e   :  { %v1764_v52 = vmul.f32 %v7407_v51, %v1732_v23  ;;  %v1782_v18 = vadd.f32 %v6290_v48, %v1772_v50 }
 0xf0f   :  { %v1783_v4 = vadd.f32 %v6290_v48, %v1773_v54 }
 0xf10   :  { %v1785_v10 = vpack.c.bf16 %v1782_v18, %v1781_v53  ;;  %v1774_v2 = vmul.f32 %v6289_v44, %v1764_v52  ;;  %v1683_v44 = vld [vmem:[%s8896_s30 + $0x38] sm:$0xff]  ;;  %v1682_v18 = vld [vmem:[%s8896_s30 + $0x30] sm:$0xff] }
 0xf12   :  { %6835 = vmatprep.mubr.msk.bf16.mxu1 %vm355_vm1, %v1785_v10  ;;  %v1784_v55 = vadd.f32 %v6290_v48, %v1774_v2  ;;  %v1680_v48 = vld [vmem:[%s8896_s30 + $0x20] sm:$0xff]  ;;  %s8916_s30 = sld [smem:[#allocation35_spill]] }
 0xf14   :  { %v1786_v14 = vpack.c.bf16 %v1784_v55, %v1783_v4 }
 0xf16   :  { %6836 = vmatmul.mubr.msk.bf16.vlgmr.msra.gmra.mxu1 %vm355_vm1, %v1786_v14 }
 0xfd6   :  { %v6837_v57 = vpop.f32.mrf.mxu1 }
 0xfd7   :  { %v8232_v59 = vadd.f32 %v6837_v57, %v6291_v56 }
 0xfd8   :  { %v1845_v47 = vpop.f32.mrf.mxu1 }
 0xfd9   :  { %v8234_v3 = vadd.f32 %v6291_v56, %v1845_v47  ;;  %1872 = vrot.lane.b32.xlu1 %v8232_v59, %s7609_s0  ;;  %v1862_v61 = vmul.f32 0.25, %v8232_v59 }
 0xfda   :  { %v6838_v49 = vpop.f32.mrf.mxu1 }
 0xfdb   :  { %v8238_v5 = vadd.f32 %v6838_v49, %v6291_v56  ;;  %v1860_v8 = vmul.f32 0.25, %v8234_v3 }
 0xfdc   :  { %v1848_v6 = vpop.f32.mrf.mxu1 }
 0xfdd   :  { %2150 = vrot.lane.b32.xlu1 %v8238_v5, %s7611_s9  ;;  %1874 = vrot.lane.b32.xlu0 %v8238_v5, %s7609_s0  ;;  %v8246_v13 = vadd.f32 %v6291_v56, %v1848_v6  ;;  %v1863_v17 = vmul.f32 0.25, %v8238_v5 }
 0xfde   :  { %6847 = vmatprep.mubr.msk.f32.mxu1 %vm636_vm2, %v1860_v8 }
 0xfdf   :  { %v1861_v16 = vmul.f32 0.25, %v8246_v13 }
 0xfe1   :  { %1870 = vrot.lane.b32.xlu1 %v8246_v13, %s7609_s0  ;;  %1868 = vrot.lane.b32.xlu0 %v8234_v3, %s7609_s0 }
 0xfe5   :  { %2148 = vrot.lane.b32.xlu1 %v8232_v59, %s7611_s9  ;;  %2146 = vrot.lane.b32.xlu0 %v8246_v13, %s7611_s9 }
 0xfe9   :  { %2144 = vrot.lane.b32.xlu1 %v8234_v3, %s7611_s9  ;;  %2136 = vrot.lane.b32.xlu0 %v1860_v8, %s7612_s13 }
 0xfed   :  { %2138 = vrot.lane.b32.xlu1 %v1861_v16, %s7612_s13  ;;  %2140 = vrot.lane.b32.xlu0 %v1862_v61, %s7612_s13 }
 0xff1   :  { %2142 = vrot.lane.b32.xlu1 %v1863_v17, %s7612_s13 }
0x104b   :  { %v1873_v7 = vpop.permute.xlu1 %1872 }
0x104f   :  { %v2151_v12 = vpop.permute.xlu1 %2150  ;;  %v1875_v19 = vpop.permute.xlu0 %1874 }
0x1050   :  { %6839 = vmatprep.subr.msk.mxu1 %vm636_vm2, %v1875_v19  ;;  %6867 = vmatprep.subr.msk.mxu0 %vm636_vm2, %v2151_v12 }
0x1051   :  { %6840 = vmatpush3.xpose.msk.msra.mxu1 %vm636_vm2, %v1875_v19  ;;  %6868 = vmatpush3.xpose.msk.msra.mxu0 %vm636_vm2, %v2151_v12 }
0x1052   :  { %6841 = vmatprep.subr.msk.mxu1 %vm636_vm2, %v1873_v7 }
0x1053   :  { %v1871_v15 = vpop.permute.xlu1 %1870  ;;  %v1869_v9 = vpop.permute.xlu0 %1868 }
0x1055   :  { %6842 = vmatpush3.xpose.msk.msra.mxu1 %vm636_vm2, %v1873_v7 }
0x1056   :  { %6843 = vmatprep.subr.msk.mxu1 %vm636_vm2, %v1871_v15 }
0x1057   :  { %v2149_v20 = vpop.permute.xlu1 %2148  ;;  %v2147_v21 = vpop.permute.xlu0 %2146 }
0x1058   :  { %6869 = vmatprep.subr.msk.mxu0 %vm636_vm2, %v2149_v20 }
0x1059   :  { %6844 = vmatpush3.xpose.msk.msra.mxu1 %vm636_vm2, %v1871_v15  ;;  %6870 = vmatpush3.xpose.msk.msra.mxu0 %vm636_vm2, %v2149_v20 }
0x105a   :  { %6845 = vmatprep.subr.msk.mxu1 %vm636_vm2, %v1869_v9  ;;  %6871 = vmatprep.subr.msk.mxu0 %vm636_vm2, %v2147_v21 }
0x105b   :  { %v2145_v22 = vpop.permute.xlu1 %2144  ;;  %v2137_v23 = vpop.permute.xlu0 %2136 }
0x105c   :  { %6875 = vmatprep.mubr.msk.f32.mxu0 %vm636_vm2, %v2137_v23 }
0x105d   :  { %6846 = vmatpush3.xpose.msk.msra.mxu1 %vm636_vm2, %v1869_v9  ;;  %6872 = vmatpush3.xpose.msk.msra.mxu0 %vm636_vm2, %v2147_v21 }
0x105e   :  { %6873 = vmatprep.subr.msk.mxu0 %vm636_vm2, %v2145_v22 }
0x105f   :  { %v2139_v24 = vpop.permute.xlu1 %2138  ;;  %v2141_v26 = vpop.permute.xlu0 %2140 }
0x1060   :  { %6848 = vmatmul.mubr.msk.f32.vlgmr.msra.gmra.mxu1 %vm636_vm2, %v1861_v16 }
0x1061   :  { %6850 = vmatprep.mubr.msk.f32.mxu1 %vm636_vm2, %v1862_v61  ;;  %6874 = vmatpush3.xpose.msk.msra.mxu0 %vm636_vm2, %v2145_v22 }
0x1063   :  { %v2143_v27 = vpop.permute.xlu1 %2142 }
0x1064   :  { %6851 = vmatmul.mubr.msk.f32.gmra.mxu1 %vm636_vm2, %v1863_v17  ;;  %6876 = vmatmul.mubr.msk.f32.vlgmr.msra.gmra.mxu0 %vm636_vm2, %v2139_v24 }
0x1065   :  { %6878 = vmatprep.mubr.msk.f32.mxu0 %vm636_vm2, %v2141_v26 }
0x1068   :  { %6879 = vmatmul.mubr.msk.f32.gmra.mxu0 %vm636_vm2, %v2143_v27 }
0x1120   :  { %v6849_v29 = vpop.f32.mrf.mxu1 }
0x1121   :  { %v1968_v25 = vadd.f32 %v6849_v29, %v1677_v28 }
0x1122   :  { %v1962_v32 = vpop.f32.mrf.mxu1 }
0x1123   :  { %v1963_v36 = vadd.f32 %v1962_v32, %v1676_v30  ;;  %v1984_v31 = vsel %vm355_vm1, %v1968_v25, -inf }
0x1124   :  { %v6877_v37 = vpop.f32.mrf.mxu0  ;;  %1985 = vmax.xlane.f32.xlu1 %v1984_v31  ;;  %v6852_v35 = vpop.f32.mrf.mxu1 }
0x1125   :  { %v2240_v38 = vadd.f32 %v6877_v37, %v1681_v33  ;;  %v1978_v39 = vadd.f32 %v6852_v35, %v1679_v34  ;;  %v1981_v40 = vsel %vm355_vm1, %v1963_v36, -inf }
0x1126   :  { %v1972_v41 = vpop.f32.mrf.mxu1  ;;  %v2234_v43 = vpop.f32.mrf.mxu0  ;;  %1982 = vmax.xlane.f32.xlu0 %v1981_v40 }
0x1127   :  { %v2256_v1 = vsel %vm355_vm1, %v2240_v38, -inf  ;;  %v1973_v45 = vadd.f32 %v1972_v41, %v1678_v42  ;;  %v1990_v46 = vsel %vm355_vm1, %v1978_v39, -inf  ;;  %v2235_v51 = vadd.f32 %v2234_v43, %v1680_v48 }
0x1128   :  { %v6880_v60 = vpop.f32.mrf.mxu0  ;;  %2257 = vmax.xlane.f32.xlu1 %v2256_v1 }
0x1129   :  { %v2250_v11 = vadd.f32 %v6880_v60, %v1683_v44  ;;  %v1987_v52 = vsel %vm355_vm1, %v1973_v45, -inf  ;;  %v2253_v10 = vsel %vm355_vm1, %v2235_v51, -inf }
0x112a   :  { %1991 = vmax.xlane.f32.xlu0 %v1990_v46  ;;  %v2244_v53 = vpop.f32.mrf.mxu0 }
0x112b   :  { %v2262_v50 = vsel %vm355_vm1, %v2250_v11, -inf  ;;  %v2245_v54 = vadd.f32 %v2244_v53, %v1682_v18 }
0x112c   :  { %2263 = vmax.xlane.f32.xlu1 %v2262_v50 }
0x112d   :  { %v2259_v2 = vsel %vm355_vm1, %v2245_v54, -inf }
0x112e   :  { %1988 = vmax.xlane.f32.xlu0 %v1987_v52 }
0x1132   :  { %2254 = vmax.xlane.f32.xlu0 %v2253_v10 }
0x1136   :  { %2260 = vmax.xlane.f32.xlu0 %v2259_v2 }
0x113d   :  { %2029 = vrot.lane.b32.xlu1 %v8232_v59, %s7610_s5 }
0x1141   :  { %2027 = vrot.lane.b32.xlu1 %v8246_v13, %s7610_s5 }
0x1145   :  { %2025 = vrot.lane.b32.xlu1 %v8234_v3, %s7610_s5 }
0x1149   :  { %2301 = vrot.lane.b32.xlu1 %v8232_v59, %s7613_s17 }
0x114c   :  { %2031 = vrot.lane.b32.xlu0 %v8238_v5, %s7610_s5 }
0x1150   :  { %2303 = vrot.lane.b32.xlu0 %v8238_v5, %s7613_s17 }
0x11ad   :  { %v1986_v4 = vpop.xlane.xlu1 %1985 }
0x11ae   :  { %v1994_v55 = vsub.f32 %v1968_v25, %v1986_v4 }
0x11af   :  { %v1983_v14 = vpop.xlane.xlu0 %1982 }
0x11b0   :  { %v1999_v56 = vmul.f32 1.442695, %v1994_v55  ;;  %v1993_v57 = vsub.f32 %v1963_v36, %v1983_v14 }
0x11b1   :  { %v2258_v47 = vpop.xlane.xlu1 %2257 }
0x11b2   :  { %7408 = vpow2.f32 %v1999_v56  ;;  %v1997_v49 = vmul.f32 1.442695, %v1993_v57  ;;  %v2266_v8 = vsub.f32 %v2240_v38, %v2258_v47 }
0x11b3   :  { %v1992_v6 = vpop.xlane.xlu0 %1991 }
0x11b4   :  { %7410 = vpow2.f32 %v1997_v49  ;;  %v2271_v16 = vmul.f32 1.442695, %v2266_v8  ;;  %v1996_v61 = vsub.f32 %v1978_v39, %v1992_v6 }
0x11b5   :  { %v2264_v59 = vpop.xlane.xlu1 %2263 }
0x11b6   :  { %7412 = vpow2.f32 %v2271_v16  ;;  %v2003_v17 = vmul.f32 1.442695, %v1996_v61  ;;  %v2268_v7 = vsub.f32 %v2250_v11, %v2264_v59 }
0x11b7   :  { %v1989_v12 = vpop.xlane.xlu0 %1988 }
0x11b8   :  { %7414 = vpow2.f32 %v2003_v17  ;;  %v2275_v5 = vmul.f32 1.442695, %v2268_v7  ;;  %v1995_v19 = vsub.f32 %v1973_v45, %v1989_v12  ;;  %v7220_v17 = vld [vmem:[%s8897_s12] sm:$0xff]   ;;  %v7221_v7 = vld [vmem:[%s8897_s12 + $0x8] sm:$0xff]   ;;  %s8917_s12 = sld [smem:[#allocation33_spill]] }
0x11b9   :  { %v2030_v20 = vpop.permute.xlu1 %2029  ;;  %6901 = vmatprep.subr.bf16.mxu0 %v7220_v17 }
0x11ba   :  { %7416 = vpow2.f32 %v2275_v5  ;;  %v2001_v21 = vmul.f32 1.442695, %v1995_v19  ;;  %6902 = vmatpush3.bf16.msra.mxu0 %v7220_v17 }
0x11bb   :  { %v2255_v15 = vpop.xlane.xlu0 %2254 }
0x11bc   :  { %v2265_v9 = vsub.f32 %v2235_v51, %v2255_v15 }
0x11bd   :  { %v2028_v32 = vpop.permute.xlu1 %2027 }
0x11be   :  { %v2269_v22 = vmul.f32 1.442695, %v2265_v9 }
0x11bf   :  { %v7409_v23 = vpop.eup %7408  ;;  %v2261_v24 = vpop.xlane.xlu0 %2260 }
0x11c0   :  { %7418 = vpow2.f32 %v2269_v22  ;;  %v2267_v26 = vsub.f32 %v2245_v54, %v2261_v24  ;;  %v2008_v27 = vsel %vm355_vm1, %v7409_v23, 0.0 }
0x11c1   :  { %v7411_v28 = vpop.eup %7410  ;;  %2009 = vadd.xlane.f32.xlu1 %v2008_v27  ;;  %7420 = vpow2.f32 %v2001_v21  ;;  %v2026_v35 = vpop.permute.xlu1 %2025 }
0x11c2   :  { %v2273_v29 = vmul.f32 1.442695, %v2267_v26  ;;  %v2005_v30 = vsel %vm355_vm1, %v7411_v28, 0.0 }
0x11c3   :  { %v8318_v25 = vpop.eup %7412  ;;  %2006 = vadd.xlane.f32.xlu0 %v2005_v30  ;;  %v2032_v33 = vpop.permute.xlu0 %2031 }
0x11c4   :  { %6853 = vmatprep.subr.mxu1 %v2032_v33  ;;  %v2280_v34 = vsel %vm355_vm1, %v8318_v25, 0.0  ;;  %7422 = vpow2.f32 %v2273_v29 }
0x11c5   :  { %v8322_v36 = vpop.eup %7414  ;;  %2281 = vadd.xlane.f32.xlu1 %v2280_v34  ;;  %6854 = vmatpush3.msra.mxu1 %v2032_v33  ;;  %v2302_v60 = vpop.permute.xlu1 %2301 }
0x11c6   :  { %6855 = vmatprep.subr.mxu1 %v2030_v20  ;;  %v2014_v31 = vsel %vm355_vm1, %v8322_v36, 0.0 }
0x11c7   :  { %6856 = vmatpush3.msra.mxu1 %v2030_v20  ;;  %v8326_v37 = vpop.eup %7416  ;;  %v2304_v38 = vpop.permute.xlu0 %2303 }
0x11c8   :  { %6857 = vmatprep.subr.mxu1 %v2028_v32  ;;  %v2286_v39 = vsel %vm355_vm1, %v8326_v37, 0.0 }
0x11c9   :  { %2015 = vadd.xlane.f32.xlu1 %v2014_v31  ;;  %6858 = vmatpush3.msra.mxu1 %v2028_v32 }
0x11ca   :  { %6859 = vmatprep.subr.mxu1 %v2026_v35 }
0x11cb   :  { %6860 = vmatpush3.msra.mxu1 %v2026_v35 }
0x11cc   :  { %6881 = vmatprep.subr.mxu1 %v2304_v38 }
0x11cd   :  { %v7419_v40 = vpop.eup %7418  ;;  %2287 = vadd.xlane.f32.xlu1 %v2286_v39  ;;  %v6326_v39 = vld [vmem:[%s8898_s22] ss:$0 sm:$0xff]  ;;  %s8918_s22 = sld [smem:[#allocation34_spill]] }
0x11ce   :  { %v2277_v41 = vsel %vm355_vm1, %v7419_v40, 0.0  ;;  %v7421_v42 = vpop.eup %7420 }
0x11cf   :  { %2278 = vadd.xlane.f32.xlu0 %v2277_v41  ;;  %v2011_v43 = vsel %vm355_vm1, %v7421_v42, 0.0 }
0x11d1   :  { %v7423_v44 = vpop.eup %7422 }
0x11d2   :  { %v2283_v1 = vsel %vm355_vm1, %v7423_v44, 0.0 }
0x11d3   :  { %2012 = vadd.xlane.f32.xlu0 %v2011_v43 }
0x11d7   :  { %2284 = vadd.xlane.f32.xlu0 %v2283_v1 }
0x11de   :  { %2297 = vrot.lane.b32.xlu1 %v8234_v3, %s7613_s17 }
0x11ed   :  { %2299 = vrot.lane.b32.xlu0 %v8246_v13, %s7613_s17 }
0x124a   :  { %v2010_v45 = vpop.xlane.xlu1 %2009 }
0x124b   :  { %7424 = vrcp.f32 %v2010_v45 }
0x124c   :  { %v2007_v11 = vpop.xlane.xlu0 %2006 }
0x124d   :  { %7426 = vrcp.f32 %v2007_v11 }
0x124e   :  { %v2282_v46 = vpop.xlane.xlu1 %2281 }
0x1252   :  { %v2016_v48 = vpop.xlane.xlu1 %2015 }
0x1253   :  { %7428 = vrcp.f32 %v2016_v48 }
0x1256   :  { %v2288_v3 = vpop.xlane.xlu1 %2287 }
0x1258   :  { %v2279_v50 = vpop.xlane.xlu0 %2278  ;;  %v7425_v51 = vpop.eup %7424 }
0x1259   :  { %v2022_v18 = vmul.f32 %v7425_v51, %v7409_v23  ;;  %7430 = vrcp.f32 %v2279_v50 }
0x125a   :  { %v7427_v52 = vpop.eup %7426  ;;  %v2298_v2 = vpop.permute.xlu1 %2297 }
0x125b   :  { %v2021_v53 = vmul.f32 %v7427_v52, %v7411_v28 }
0x125c   :  { %v2013_v54 = vpop.xlane.xlu0 %2012 }
0x125d   :  { %7432 = vrcp.f32 %v2013_v54  ;;  %6861 = vmatprep.mubr.msk.f32.mxu1 %vm355_vm1, %v2021_v53 }
0x125e   :  { %6862 = vmatmul.mubr.msk.f32.vlgmr.msra.gmra.mxu1 %vm355_vm1, %v2022_v18  ;;  %7434 = vrcp.f32 %v2282_v46 }
0x125f   :  { %6882 = vmatpush3.msra.mxu1 %v2304_v38 }
0x1260   :  { %6883 = vmatprep.subr.mxu1 %v2302_v60  ;;  %v2285_v13 = vpop.xlane.xlu0 %2284  ;;  %v7429_v4 = vpop.eup %7428 }
0x1261   :  { %6884 = vmatpush3.msra.mxu1 %v2302_v60  ;;  %7436 = vrcp.f32 %v2285_v13  ;;  %v2024_v57 = vmul.f32 %v7429_v4, %v8322_v36 }
0x1262   :  { %7438 = vrcp.f32 %v2288_v3 }
0x1264   :  { %v2300_v10 = vpop.permute.xlu0 %2299 }
0x1265   :  { %6885 = vmatprep.subr.mxu1 %v2300_v10 }
0x1266   :  { %6886 = vmatpush3.msra.mxu1 %v2300_v10  ;;  %v7431_v55 = vpop.eup %7430 }
0x1267   :  { %6887 = vmatprep.subr.mxu1 %v2298_v2  ;;  %v2293_v49 = vmul.f32 %v7431_v55, %v7419_v40 }
0x1268   :  { %6888 = vmatpush3.msra.mxu1 %v2298_v2 }
0x1269   :  { %6895 = vmatprep.subr.bf16.mxu1 %v7221_v7 }
0x126a   :  { %v7433_v14 = vpop.eup %7432 }
0x126b   :  { %v2023_v56 = vmul.f32 %v7433_v14, %v7421_v42  ;;  %v7435_v47 = vpop.eup %7434 }
0x126c   :  { %v2294_v6 = vmul.f32 %v7435_v47, %v8318_v25 }
0x126d   :  { %6864 = vmatprep.mubr.msk.f32.mxu1 %vm355_vm1, %v2023_v56 }
0x126e   :  { %v7437_v8 = vpop.eup %7436  ;;  %6865 = vmatmul.mubr.msk.f32.gmra.mxu1 %vm355_vm1, %v2024_v57 }
0x126f   :  { %6889 = vmatprep.mubr.msk.f32.mxu1 %vm355_vm1, %v2293_v49  ;;  %v7439_v16 = vpop.eup %7438  ;;  %v2295_v61 = vmul.f32 %v7437_v8, %v7423_v44  ;;  %v7222_v8 = vld [vmem:[%s8899_s23 + $0x8] sm:$0xff]  }
0x1270   :  { %v2296_v59 = vmul.f32 %v7439_v16, %v8326_v37 }
0x1272   :  { %6890 = vmatmul.mubr.msk.f32.vlgmr.msra.gmra.mxu1 %vm355_vm1, %v2294_v6  ;;  %v7223_v6 = vld [vmem:[%s8899_s23] sm:$0xff]   ;;  %s8919_s23 = sld [smem:[#allocation37_spill]] }
0x1273   :  { %6892 = vmatprep.mubr.msk.f32.mxu1 %vm355_vm1, %v2295_v61  ;;  %6896 = vmatpush3.bf16.msra.mxu1 %v7221_v7 }
0x1274   :  { %6907 = vmatprep.subr.bf16.mxu1 %v7222_v8 }
0x1276   :  { %6893 = vmatmul.mubr.msk.f32.gmra.mxu1 %vm355_vm1, %v2296_v59 }
0x131e   :  { %v6863_v12 = vpop.f32.mrf.mxu1 }
0x1320   :  { %v2115_v5 = vpop.f32.mrf.mxu1 }
0x1321   :  { %v2134_v19 = vpack.c.bf16 %v6863_v12, %v2115_v5 }
0x1323   :  { %6903 = vmatprep.mubr.msk.bf16.mxu0 %vm636_vm2, %v2134_v19 }
0x132e   :  { %v6866_v15 = vpop.f32.mrf.mxu1 }
0x1330   :  { %v2125_v9 = vpop.f32.mrf.mxu1 }
0x1331   :  { %v2135_v20 = vpack.c.bf16 %v6866_v15, %v2125_v9 }
0x1332   :  { %v6891_v21 = vpop.f32.mrf.mxu1 }
0x1333   :  { %6904 = vmatmul.mubr.msk.bf16.vlgmr.msra.gmra.mxu0 %vm636_vm2, %v2135_v20 }
0x1334   :  { %v2387_v22 = vpop.f32.mrf.mxu1 }
0x1335   :  { %v2406_v23 = vpack.c.bf16 %v6891_v21, %v2387_v22 }
0x1336   :  { %v6894_v24 = vpop.f32.mrf.mxu1 }
0x1337   :  { %6897 = vmatprep.mubr.msk.bf16.mxu1 %vm636_vm2, %v2406_v23 }
0x1338   :  { %v2397_v26 = vpop.f32.mrf.mxu1 }
0x1339   :  { %v2407_v27 = vpack.c.bf16 %v6894_v24, %v2397_v26  ;;  %v6327_v24 = vld [vmem:[%s8900_s26] ss:$0 sm:$0xff]  ;;  %s8920_s26 = sld [smem:[#allocation36_spill]] }
0x133b   :  { %6898 = vmatmul.mubr.msk.bf16.vlgmr.msra.gmra.mxu1 %vm636_vm2, %v2407_v27 }
0x133c   :  { %6908 = vmatpush3.bf16.msra.mxu1 %v7222_v8 }
0x133d   :  { %6909 = vmatprep.subr.bf16.mxu1 %v7223_v6 }
0x1340   :  { %6910 = vmatpush3.bf16.msra.mxu1 %v7223_v6 }
0x13f3   :  { %v6905_v28 = vpop.f32.mrf.mxu0 }
0x13f5   :  { %v2515_v29 = vpop.f32.mrf.mxu0 }
0x13f7   :  { %v6906_v32 = vpop.f32.mrf.mxu0 }
0x13f9   :  { %v2518_v38 = vpop.f32.mrf.mxu0 }
0x13fb   :  { %v6899_v30 = vpop.f32.mrf.mxu1 }
0x13fc   :  { %v2524_v25 = vadd.f32 %v6905_v28, %v6899_v30 }
0x13fd   :  { %v2454_v33 = vpop.f32.mrf.mxu1 }
0x13fe   :  { %v2516_v34 = vadd.f32 %v2515_v29, %v2454_v33  ;;  %v2532_v31 = vadd.f32 %v2524_v25, %v8201_v58  ;;  %v6328_v25 = vld [vmem:[%s8901_s28] ss:$0 sm:$0xff]  ;;  %s8921_s28 = sld [smem:[#allocation38_spill]] }
0x13ff   :  { %v6900_v36 = vpop.f32.mrf.mxu1 }
0x1400   :  { %v2530_v37 = vadd.f32 %v2516_v34, %v8198_v62  ;;  %v2527_v35 = vadd.f32 %v6906_v32, %v6900_v36  ;;  %v8359_v43 = vadd.f32 %v6326_v39, %v2532_v31 }
0x1401   :  { %v2457_v40 = vpop.f32.mrf.mxu1 }
0x1402   :  { %v8357_v41 = vadd.f32 %v6326_v39, %v2530_v37  ;;  %v2519_v42 = vadd.f32 %v2518_v38, %v2457_v40  ;;  %v2533_v44 = vadd.f32 %v2527_v35, %v8209_v0  ;;  %v2550_v45 = vsel %vm355_vm1, %v8359_v43, 0.0 }
0x1404   :  { %v2531_v1 = vadd.f32 %v2519_v42, %v8206_v63  ;;  %v2544_v60 = vsel %vm355_vm1, %v8357_v41, 0.0  ;;  %v8367_v62 = vadd.f32 %v6326_v39, %v2533_v44  ;;  %v7224_v44 = vld [vmem:[%s8902_s1 + $0x38] sm:$0xff]  }
0x1405   :  { %2545 = vadd.xlane.f32.xlu0 %v2544_v60  ;;  %6915 = vmatprep.subr.bf16.mxu0 %v7224_v44  ;;  %v7226_v60 = vld [vmem:[%s8902_s1 + $0x28] sm:$0xff]  }
0x1406   :  { %v8365_v58 = vadd.f32 %v6326_v39, %v2531_v1  ;;  %v2553_v0 = vsel %vm355_vm1, %v8367_v62, 0.0  ;;  %6916 = vmatpush3.bf16.msra.mxu0 %v7224_v44  ;;  %v7225_v1 = vld [vmem:[%s8902_s1 + $0x30] sm:$0xff]  }
0x1407   :  { %6917 = vmatprep.subr.bf16.mxu0 %v7225_v1 }
0x1408   :  { %v2547_v11 = vsel %vm355_vm1, %v8365_v58, 0.0 }
0x1409   :  { %2551 = vadd.xlane.f32.xlu0 %v2550_v45  ;;  %2548 = vadd.xlane.f32.xlu1 %v2547_v11  ;;  %v7227_v45 = vld [vmem:[%s8902_s1 + $0x20] sm:$0xff]   ;;  %v7228_v11 = vld [vmem:[%s8902_s1 + $0x18] sm:$0xff]  }
0x140a   :  { %6918 = vmatpush3.bf16.msra.mxu0 %v7225_v1 }
0x140b   :  { %6919 = vmatprep.subr.bf16.mxu0 %v7226_v60 }
0x140d   :  { %2554 = vadd.xlane.f32.xlu0 %v2553_v0  ;;  %v7229_v0 = vld [vmem:[%s8902_s1 + $0x10] sm:$0xff]  }
0x140e   :  { %6920 = vmatpush3.bf16.msra.mxu0 %v7226_v60 }
0x140f   :  { %6921 = vmatprep.subr.bf16.mxu0 %v7227_v45 }
0x1412   :  { %6922 = vmatpush3.bf16.msra.mxu0 %v7227_v45 }
0x1413   :  { %6923 = vmatprep.subr.bf16.mxu0 %v7228_v11 }
0x1416   :  { %6924 = vmatpush3.bf16.msra.mxu0 %v7228_v11 }
0x1417   :  { %6925 = vmatprep.subr.bf16.mxu0 %v7229_v0 }
0x141a   :  { %6926 = vmatpush3.bf16.msra.mxu0 %v7229_v0 }
0x148e   :  { %v2546_v63 = vpop.xlane.xlu0 %2545 }
0x148f   :  { %v2556_v46 = vmul.f32 0.03125, %v2546_v63  ;;  %v7230_v63 = vld [vmem:[%s8902_s1 + $0x8] sm:$0xff]  }
0x1490   :  { %6927 = vmatprep.subr.bf16.mxu0 %v7230_v63 }
0x1491   :  { %v2560_v48 = vsub.f32 %v8357_v41, %v2556_v46  ;;  %6928 = vmatpush3.bf16.msra.mxu0 %v7230_v63  ;;  %v7231_v46 = vld [vmem:[%s8902_s1] sm:$0xff]   ;;  %s8922_s1 = sld [smem:[#allocation41_spill]] }
0x1492   :  { %v2552_v50 = vpop.xlane.xlu0 %2551  ;;  %v2549_v51 = vpop.xlane.xlu1 %2548  ;;  %6929 = vmatprep.subr.bf16.mxu0 %v7231_v46 }
0x1493   :  { %v2558_v52 = vmul.f32 0.03125, %v2552_v50  ;;  %v2557_v53 = vmul.f32 0.03125, %v2549_v51  ;;  %v2564_v18 = vmul.f32 %v2560_v48, %v2560_v48 }
0x1495   :  { %v2562_v54 = vsub.f32 %v8359_v43, %v2558_v52  ;;  %v2561_v3 = vsub.f32 %v8365_v58, %v2557_v53  ;;  %v2568_v13 = vsel %vm355_vm1, %v2564_v18, 0.0  ;;  %6930 = vmatpush3.bf16.msra.mxu0 %v7231_v46 }
0x1496   :  { %2569 = vadd.xlane.f32.xlu0 %v2568_v13  ;;  %v2555_v10 = vpop.xlane.xlu0 %2554 }
0x1497   :  { %v2559_v2 = vmul.f32 0.03125, %v2555_v10  ;;  %v2566_v4 = vmul.f32 %v2562_v54, %v2562_v54  ;;  %v2565_v55 = vmul.f32 %v2561_v3, %v2561_v3 }
0x1499   :  { %v2563_v14 = vsub.f32 %v8367_v62, %v2559_v2  ;;  %v2574_v56 = vsel %vm355_vm1, %v2566_v4, 0.0  ;;  %v2571_v57 = vsel %vm355_vm1, %v2565_v55, 0.0 }
0x149a   :  { %2575 = vadd.xlane.f32.xlu0 %v2574_v56  ;;  %2572 = vadd.xlane.f32.xlu1 %v2571_v57 }
0x149b   :  { %v2567_v47 = vmul.f32 %v2563_v14, %v2563_v14 }
0x149d   :  { %v2577_v49 = vsel %vm355_vm1, %v2567_v47, 0.0 }
0x149e   :  { %2578 = vadd.xlane.f32.xlu1 %v2577_v49 }
0x151f   :  { %v2570_v16 = vpop.xlane.xlu0 %2569 }
0x1520   :  { %v2580_v61 = vmul.f32 0.03125, %v2570_v16 }
0x1522   :  { %v2584_v59 = vadd.f32 1e-05, %v2580_v61 }
0x1523   :  { %v2576_v17 = vpop.xlane.xlu0 %2575  ;;  %v2573_v7 = vpop.xlane.xlu1 %2572 }
0x1524   :  { %7440 = vrsqrt.f32 %v2584_v59  ;;  %v2582_v12 = vmul.f32 0.03125, %v2576_v17  ;;  %v2581_v5 = vmul.f32 0.03125, %v2573_v7 }
0x1526   :  { %v2586_v19 = vadd.f32 1e-05, %v2582_v12  ;;  %v2585_v15 = vadd.f32 1e-05, %v2581_v5 }
0x1527   :  { %v2579_v9 = vpop.xlane.xlu1 %2578 }
0x1528   :  { %7442 = vrsqrt.f32 %v2586_v19  ;;  %v2583_v20 = vmul.f32 0.03125, %v2579_v9 }
0x1529   :  { %7444 = vrsqrt.f32 %v2585_v15 }
0x152a   :  { %v2587_v21 = vadd.f32 1e-05, %v2583_v20 }
0x152c   :  { %7446 = vrsqrt.f32 %v2587_v21 }
0x1531   :  { %v7441_v22 = vpop.eup %7440 }
0x1532   :  { %v2592_v23 = vmul.f32 %v7441_v22, %v2560_v48  ;;  %v6329_v48 = vld [vmem:[%s8903_s2] ss:$0 sm:$0xff]  ;;  %s8923_s2 = sld [smem:[#allocation39_spill]] }
0x1534   :  { %v2602_v30 = vmul.f32 %v6327_v24, %v2592_v23 }
0x1535   :  { %v7443_v26 = vpop.eup %7442 }
0x1536   :  { %v7445_v27 = vpop.eup %7444  ;;  %v2594_v28 = vmul.f32 %v7443_v26, %v2562_v54  ;;  %v2612_v31 = vadd.f32 %v6328_v25, %v2602_v30 }
0x1537   :  { %v2593_v29 = vmul.f32 %v7445_v27, %v2561_v3 }
0x1538   :  { %v2604_v36 = vmul.f32 %v6327_v24, %v2594_v28 }
0x1539   :  { %v7447_v32 = vpop.eup %7446  ;;  %v2603_v33 = vmul.f32 %v6327_v24, %v2593_v29 }
0x153a   :  { %v2595_v34 = vmul.f32 %v7447_v32, %v2563_v14  ;;  %v2614_v39 = vadd.f32 %v6328_v25, %v2604_v36 }
0x153b   :  { %v2613_v37 = vadd.f32 %v6328_v25, %v2603_v33 }
0x153c   :  { %v2605_v35 = vmul.f32 %v6327_v24, %v2595_v34 }
0x153d   :  { %v2616_v38 = vpack.c.bf16 %v2613_v37, %v2612_v31 }
0x153e   :  { %v2615_v40 = vadd.f32 %v6328_v25, %v2605_v35 }
0x153f   :  { %6911 = vmatprep.mubr.msk.bf16.mxu1 %vm355_vm1, %v2616_v38 }
0x1540   :  { %v2617_v42 = vpack.c.bf16 %v2615_v40, %v2614_v39 }
0x1542   :  { %6912 = vmatmul.mubr.msk.bf16.vlgmr.msra.gmra.mxu1 %vm355_vm1, %v2617_v42 }
0x1602   :  { %v6913_v50 = vpop.f32.mrf.mxu1 }
0x1603   :  { %v8398_v51 = vadd.f32 %v6913_v50, %v6329_v48 }
0x1604   :  { %v2676_v52 = vpop.f32.mrf.mxu1 }
0x1605   :  { %v8401_v53 = vmul.f32 0.70710677, %v8398_v51  ;;  %v8403_v18 = vadd.f32 %v6329_v48, %v2676_v52 }
0x1606   :  { %v6914_v54 = vpop.f32.mrf.mxu1 }
0x1607   :  { %v2697_v3 = vand.u32 2147483647, %v8401_v53  ;;  %v8407_v13 = vmul.f32 0.70710677, %v8403_v18  ;;  %v8409_v10 = vadd.f32 %v6914_v54, %v6329_v48  ;;  %vm2777_vm8 = vcmp.ge.f32.partialorder %v8401_v53, 0.0 }
0x1608   :  { %v2679_v2 = vpop.f32.mrf.mxu1 }
0x1609   :  { %v2701_v4 = vmul.f32 0.3275911, %v2697_v3  ;;  %v2695_v55 = vand.u32 2147483647, %v8407_v13  ;;  %v8413_v14 = vmul.f32 0.70710677, %v8409_v10  ;;  %v8415_v56 = vadd.f32 %v6329_v48, %v2679_v2 }
0x160a   :  { %v2753_v12 = vsub.f32 0.0, %v2697_v3  ;;  %vm2775_vm7 = vcmp.ge.f32.partialorder %v8407_v13, 0.0  ;;  %v2787_v13 = vmul.f32 0.5, %v8403_v18  ;;  %v6334_v18 = vld [vmem:[%s8904_s7] ss:$0 sm:$0xff]  ;;  %s8924_s7 = sld [smem:[#allocation40_spill]] }
0x160b   :  { %v2705_v57 = vadd.f32 1.0, %v2701_v4  ;;  %v2699_v47 = vmul.f32 0.3275911, %v2695_v55  ;;  %v2698_v49 = vand.u32 2147483647, %v8413_v14  ;;  %v2751_v5 = vsub.f32 0.0, %v2695_v55 }
0x160c   :  { %v8419_v8 = vmul.f32 0.70710677, %v8415_v56  ;;  %v2757_v19 = vmul.f32 %v2753_v12, %v2697_v3  ;;  %vm2778_vm9 = vcmp.ge.f32.partialorder %v8413_v14, 0.0 }
0x160d   :  { %7448 = vrcp.f32 %v2705_v57  ;;  %v2703_v6 = vadd.f32 1.0, %v2699_v47  ;;  %v2702_v16 = vmul.f32 0.3275911, %v2698_v49  ;;  %v2754_v15 = vsub.f32 0.0, %v2698_v49 }
0x160e   :  { %v2696_v61 = vand.u32 2147483647, %v8419_v8  ;;  %v2755_v20 = vmul.f32 %v2751_v5, %v2695_v55  ;;  %v2763_v22 = vmul.f32 1.442695, %v2757_v19  ;;  %vm2776_vm10 = vcmp.ge.f32.partialorder %v8419_v8, 0.0 }
0x160f   :  { %7450 = vrcp.f32 %v2703_v6  ;;  %v2706_v59 = vadd.f32 1.0, %v2702_v16  ;;  %v2758_v24 = vmul.f32 %v2754_v15, %v2698_v49  ;;  %v7614_v8 = vmov 0.0  }
0x1610   :  { %v2700_v17 = vmul.f32 0.3275911, %v2696_v61  ;;  %v2752_v23 = vsub.f32 0.0, %v2696_v61  ;;  %v2759_v29 = vmul.f32 1.442695, %v2755_v20  ;;  %6935 = vmatprep.subr.mxu1 %v7614_v8  ;;  %6979 = vmatprep.subr.bf16.mxu0 %v7614_v8 }
0x1611   :  { %7452 = vrcp.f32 %v2706_v59  ;;  %v2765_v36 = vmul.f32 1.442695, %v2758_v24  ;;  %6943 = vmatprep.mubr.msk.f32.mxu1 %vm7615_vm11, %v7614_v8 }
0x1612   :  { %v2704_v7 = vadd.f32 1.0, %v2700_v17  ;;  %v2756_v32 = vmul.f32 %v2752_v23, %v2696_v61 }
0x1614   :  { %7454 = vrcp.f32 %v2704_v7  ;;  %v2761_v42 = vmul.f32 1.442695, %v2756_v32 }
0x1615   :  { %7456 = vpow2.f32 %v2763_v22 }
0x1616   :  { %7458 = vpow2.f32 %v2759_v29 }
0x1617   :  { %7460 = vpow2.f32 %v2765_v36 }
0x1618   :  { %7462 = vpow2.f32 %v2761_v42 }
0x161a   :  { %v7449_v9 = vpop.eup %7448 }
0x161b   :  { %v2717_v21 = vmul.f32 1.0614054, %v7449_v9 }
0x161c   :  { %v7451_v26 = vpop.eup %7450 }
0x161d   :  { %v2721_v27 = vadd.f32 -1.4531521, %v2717_v21  ;;  %v2715_v28 = vmul.f32 1.0614054, %v7451_v26 }
0x161e   :  { %v7453_v30 = vpop.eup %7452 }
0x161f   :  { %v2725_v25 = vmul.f32 %v7449_v9, %v2721_v27  ;;  %v2719_v33 = vadd.f32 -1.4531521, %v2715_v28  ;;  %v2718_v34 = vmul.f32 1.0614054, %v7453_v30 }
0x1621   :  { %v2729_v31 = vadd.f32 1.4214138, %v2725_v25  ;;  %v7455_v37 = vpop.eup %7454  ;;  %v2723_v35 = vmul.f32 %v7451_v26, %v2719_v33  ;;  %v2722_v38 = vadd.f32 -1.4531521, %v2718_v34 }
0x1622   :  { %v2716_v40 = vmul.f32 1.0614054, %v7455_v37  ;;  %v7457_v57 = vpop.eup %7456 }
0x1623   :  { %v2733_v39 = vmul.f32 %v7449_v9, %v2729_v31  ;;  %v2727_v44 = vadd.f32 1.4214138, %v2723_v35  ;;  %v2726_v1 = vmul.f32 %v7453_v30, %v2722_v38  ;;  %v7459_v17 = vpop.eup %7458  ;;  %v2790_v35 = vmul.f32 0.5, %v8409_v10 }
0x1624   :  { %v2720_v45 = vadd.f32 -1.4531521, %v2716_v40  ;;  %v7461_v15 = vpop.eup %7460  ;;  %v2789_v40 = vmul.f32 0.5, %v8398_v51 }
0x1625   :  { %v2737_v60 = vadd.f32 -0.28449672, %v2733_v39  ;;  %v2731_v11 = vmul.f32 %v7451_v26, %v2727_v44  ;;  %v2730_v0 = vadd.f32 1.4214138, %v2726_v1  ;;  %v7463_v24 = vpop.eup %7462  ;;  %v2788_v39 = vmul.f32 0.5, %v8415_v56 }
0x1626   :  { %v2724_v46 = vmul.f32 %v7455_v37, %v2720_v45 }
0x1627   :  { %v2741_v63 = vmul.f32 %v7449_v9, %v2737_v60  ;;  %v2735_v48 = vadd.f32 -0.28449672, %v2731_v11  ;;  %v2734_v50 = vmul.f32 %v7453_v30, %v2730_v0 }
0x1628   :  { %v2728_v54 = vadd.f32 1.4214138, %v2724_v46 }
0x1629   :  { %v2745_v52 = vadd.f32 0.2548296, %v2741_v63  ;;  %v2739_v3 = vmul.f32 %v7451_v26, %v2735_v48  ;;  %v2738_v2 = vadd.f32 -0.28449672, %v2734_v50 }
0x162a   :  { %v2732_v55 = vmul.f32 %v7455_v37, %v2728_v54 }
0x162b   :  { %v2749_v4 = vmul.f32 %v7449_v9, %v2745_v52  ;;  %v2743_v47 = vadd.f32 0.2548296, %v2739_v3  ;;  %v2742_v49 = vmul.f32 %v7453_v30, %v2738_v2  ;;  %v2908_v2 = vld [vmem:[%s8905_s10] sm:$0xff] }
0x162c   :  { %v2736_v16 = vadd.f32 -0.28449672, %v2732_v55 }
0x162d   :  { %v2769_v6 = vmul.f32 %v7457_v57, %v2749_v4  ;;  %v2747_v61 = vmul.f32 %v7451_v26, %v2743_v47  ;;  %v2746_v59 = vadd.f32 0.2548296, %v2742_v49 }
0x162e   :  { %v2740_v7 = vmul.f32 %v7455_v37, %v2736_v16 }
0x162f   :  { %v2773_v12 = vsub.f32 1.0, %v2769_v6  ;;  %v2767_v5 = vmul.f32 %v7459_v17, %v2747_v61  ;;  %v2750_v19 = vmul.f32 %v7453_v30, %v2746_v59 }
0x1630   :  { %v2744_v20 = vadd.f32 0.2548296, %v2740_v7 }
0x1631   :  { %v2771_v21 = vsub.f32 1.0, %v2767_v5  ;;  %v2770_v22 = vmul.f32 %v7461_v15, %v2750_v19  ;;  %v2781_v9 = vsub.f32 0.0, %v2773_v12  ;;  %v7232_v19 = vld [vmem:[%s8906_s15 + $0x38] sm:$0xff]   ;;  %v7233_v15 = vld [vmem:[%s8906_s15 + $0x30] sm:$0xff]  }
0x1632   :  { %v2748_v23 = vmul.f32 %v7455_v37, %v2744_v20 }
0x1633   :  { %v2779_v27 = vsub.f32 0.0, %v2771_v21  ;;  %v2774_v28 = vsub.f32 1.0, %v2770_v22  ;;  %v2785_v30 = vsel %vm2777_vm8, %v2773_v12, %v2781_v9  ;;  %v7235_v9 = vld [vmem:[%s8906_s15 + $0x20] sm:$0xff]  }
0x1634   :  { %v2768_v29 = vmul.f32 %v7463_v24, %v2748_v23  ;;  %v2793_v37 = vadd.f32 1.0, %v2785_v30  ;;  %v7234_v24 = vld [vmem:[%s8906_s15 + $0x28] sm:$0xff]  }
0x1635   :  { %v2782_v25 = vsub.f32 0.0, %v2774_v28  ;;  %v2783_v26 = vsel %vm2775_vm7, %v2771_v21, %v2779_v27  ;;  %v7236_v27 = vld [vmem:[%s8906_s15 + $0x18] sm:$0xff]  }
0x1636   :  { %v2772_v32 = vsub.f32 1.0, %v2768_v29  ;;  %v2791_v31 = vadd.f32 1.0, %v2783_v26  ;;  %v2797_v1 = vmul.f32 %v2793_v37, %v2789_v40  ;;  %v7238_v29 = vld [vmem:[%s8906_s15 + $0x8] sm:$0xff]  }
0x1637   :  { %v2786_v33 = vsel %vm2778_vm9, %v2774_v28, %v2782_v25  ;;  %v7237_v28 = vld [vmem:[%s8906_s15 + $0x10] sm:$0xff]   ;;  %v7239_v25 = vld [vmem:[%s8906_s15] sm:$0xff]   ;;  %s8926_s15 = sld [smem:[#allocation43_spill]] }
0x1638   :  { %v2794_v34 = vadd.f32 1.0, %v2786_v33  ;;  %v2780_v36 = vsub.f32 0.0, %v2772_v32  ;;  %v2795_v42 = vmul.f32 %v2791_v31, %v2787_v13  ;;  %v6348_v31 = vld [vmem:[%s8908_s18] ss:$0 sm:$0xff] }
0x163a   :  { %v2784_v38 = vsel %vm2776_vm10, %v2772_v32, %v2780_v36  ;;  %v2798_v14 = vmul.f32 %v2794_v34, %v2790_v35  ;;  %v6347_v34 = vld [vmem:[%s8907_s16] ss:$0 sm:$0xff]  ;;  %s8933_s16 = sld [smem:[#allocation49_spill]] }
0x163b   :  { %v2792_v53 = vadd.f32 1.0, %v2784_v38 }
0x163c   :  { %v2800_v45 = vpack.c.bf16 %v2798_v14, %v2797_v1 }
0x163d   :  { %v2796_v44 = vmul.f32 %v2792_v53, %v2788_v39 }
0x163f   :  { %v2799_v60 = vpack.c.bf16 %v2796_v44, %v2795_v42 }
0x1641   :  { %6931 = vmatprep.mubr.bf16.mxu0 %v2799_v60 }
0x1642   :  { %6932 = vmatmul.mubr.bf16.vlgmr.msra.gmra.mxu0 %v2800_v45 }
0x1643   :  { %6995 = vmatprep.mubr.msk.bf16.mxu0 %vm7615_vm11, %v7614_v8  ;;  %6980 = vmatpush3.bf16.msra.mxu0 %v7232_v19 }
0x1644   :  { %6981 = vmatprep.subr.bf16.mxu0 %v7614_v8 }
0x1647   :  { %6982 = vmatpush3.bf16.msra.mxu0 %v7233_v15 }
0x1648   :  { %6983 = vmatprep.subr.bf16.mxu0 %v7614_v8 }
0x164b   :  { %6984 = vmatpush3.bf16.msra.mxu0 %v7234_v24 }
0x164c   :  { %6985 = vmatprep.subr.bf16.mxu0 %v7614_v8 }
0x164f   :  { %6986 = vmatpush3.bf16.msra.mxu0 %v7235_v9 }
0x1650   :  { %6987 = vmatprep.subr.bf16.mxu0 %v7614_v8 }
0x1653   :  { %6988 = vmatpush3.bf16.msra.mxu0 %v7236_v27 }
0x1654   :  { %6989 = vmatprep.subr.bf16.mxu0 %v7614_v8 }
0x1657   :  { %6990 = vmatpush3.bf16.msra.mxu0 %v7237_v28 }
0x1658   :  { %6991 = vmatprep.subr.bf16.mxu0 %v7614_v8 }
0x165b   :  { %6992 = vmatpush3.bf16.msra.mxu0 %v7238_v29 }
0x165c   :  { %6993 = vmatprep.subr.bf16.mxu0 %v7614_v8 }
0x165f   :  { %6994 = vmatpush3.bf16.msra.mxu0 %v7239_v25 }
0x1660   :  { %7014 = vmatprep.subr.mxu0 %v7614_v8 }
0x1702   :  { %v6933_v51 = vpop.f32.mrf.mxu0 }
0x1703   :  { %v2898_v11 = vadd.f32 %v6933_v51, %v6334_v18  ;;  %v7242_v51 = vld [vmem:[%s8909_s21 + $0x34] ss:$8 sps:$4 sm:$0xff]  }
0x1704   :  { %v2889_v10 = vpop.f32.mrf.mxu0 }
0x1705   :  { %v2906_v50 = vadd.f32 %v2898_v11, %v8359_v43  ;;  %v2890_v52 = vadd.f32 %v6334_v18, %v2889_v10  ;;  %v2910_v43 = vld [vmem:[%s8905_s10 + $0x10] sm:$0xff]  ;;  %v7245_v10 = vld [vmem:[%s8909_s21 + $0x24] ss:$8 sps:$4 sm:$0xff]  }
0x1706   :  { %v6934_v56 = vpop.f32.mrf.mxu0  ;;  %v7248_v11 = vld [vmem:[%s8909_s21 + $0x14] ss:$8 sps:$4 sm:$0xff]  }
0x1707   :  { %v2901_v0 = vadd.f32 %v6934_v56, %v6334_v18  ;;  %v2904_v3 = vadd.f32 %v2890_v52, %v8357_v41  ;;  %v2909_v41 = vld [vmem:[%s8905_s10 + $0x8] sm:$0xff] }
0x1708   :  { %v2892_v63 = vpop.f32.mrf.mxu0  ;;  %v7243_v56 = vld [vmem:[%s8909_s21 + $0x20] ss:$8 sps:$4 sm:$0xff]  }
0x1709   :  { %v2907_v46 = vadd.f32 %v2901_v0, %v8367_v62  ;;  %v2893_v48 = vadd.f32 %v6334_v18, %v2892_v63  ;;  %v7240_v18 = vld [vmem:[%s8909_s21 + $0x30] ss:$8 sps:$4 sm:$0xff]   ;;  %v7251_v63 = vld [vmem:[%s8909_s21 + $0x4] ss:$8 sps:$4 sm:$0xff]  }
0x170a   :  { %v7246_v0 = vld [vmem:[%s8909_s21 + $0x10] ss:$8 sps:$4 sm:$0xff]  }
0x170b   :  { %6936 = vmatpush3.msra.mxu1 %v2907_v46  ;;  %v2905_v54 = vadd.f32 %v2893_v48, %v8365_v58  ;;  %v2911_v58 = vld [vmem:[%s8905_s10 + $0x18] sm:$0xff]  ;;  %v7617_v48 = vmov 0   ;;  %s8925_s10 = sld [smem:[#allocation42_spill]] }
0x170c   :  { %6937 = vmatprep.subr.mxu1 %v7614_v8 }
0x170d   :  { %6938 = vmatpush3.msra.mxu1 %v2906_v50 }
0x170e   :  { %6939 = vmatprep.subr.mxu1 %v7614_v8 }
0x170f   :  { %6940 = vmatpush3.msra.mxu1 %v2905_v54 }
0x1710   :  { %6941 = vmatprep.subr.mxu1 %v7614_v8 }
0x1711   :  { %6942 = vmatpush3.msra.mxu1 %v2904_v3 }
0x1712   :  { %6944 = vmatmul.mubr.msk.f32.vlgmr.msra.gmra.mxu1 %vm355_vm1, %v2908_v2  ;;  %6946 = vmatprep.subr.mxu1 %v7614_v8  ;;  %v6357_v2 = vld [vmem:[%s8910_s25] ss:$0 sm:$0xff] }
0x1713   :  { %6947 = vmatpush3.msra.mxu1 %v2907_v46  ;;  %6954 = vmatprep.mubr.msk.f32.mxu1 %vm7615_vm11, %v7614_v8 }
0x1714   :  { %6948 = vmatprep.subr.mxu1 %v7614_v8 }
0x1715   :  { %6949 = vmatpush3.msra.mxu1 %v2906_v50 }
0x1716   :  { %6950 = vmatprep.subr.mxu1 %v7614_v8 }
0x1717   :  { %6951 = vmatpush3.msra.mxu1 %v2905_v54 }
0x1718   :  { %6952 = vmatprep.subr.mxu1 %v7614_v8 }
0x1719   :  { %6953 = vmatpush3.msra.mxu1 %v2904_v3 }
0x171a   :  { %6955 = vmatmul.mubr.msk.f32.vlgmr.msra.gmra.mxu1 %vm355_vm1, %v2909_v41  ;;  %6957 = vmatprep.subr.mxu1 %v7614_v8 }
0x171b   :  { %6958 = vmatpush3.msra.mxu1 %v2907_v46  ;;  %6965 = vmatprep.mubr.msk.f32.mxu1 %vm7615_vm11, %v7614_v8 }
0x171c   :  { %6959 = vmatprep.subr.mxu1 %v7614_v8 }
0x171d   :  { %6960 = vmatpush3.msra.mxu1 %v2906_v50 }
0x171e   :  { %6961 = vmatprep.subr.mxu1 %v7614_v8 }
0x171f   :  { %6962 = vmatpush3.msra.mxu1 %v2905_v54 }
0x1720   :  { %6963 = vmatprep.subr.mxu1 %v7614_v8 }
0x1721   :  { %6964 = vmatpush3.msra.mxu1 %v2904_v3 }
0x1722   :  { %6966 = vmatmul.mubr.msk.f32.vlgmr.msra.gmra.mxu1 %vm355_vm1, %v2910_v43  ;;  %6968 = vmatprep.subr.mxu1 %v7614_v8  ;;  %v6358_v43 = vld [vmem:[%s8911_s29] ss:$0 sm:$0xff] }
0x1723   :  { %6969 = vmatpush3.msra.mxu1 %v2907_v46  ;;  %6976 = vmatprep.mubr.msk.f32.mxu1 %vm7615_vm11, %v7614_v8  ;;  %v7249_v46 = vld [vmem:[%s8909_s21] ss:$8 sps:$4 sm:$0xff]  }
0x1724   :  { %6970 = vmatprep.subr.mxu1 %v7614_v8 }
0x1725   :  { %6971 = vmatpush3.msra.mxu1 %v2906_v50 }
0x1726   :  { %6972 = vmatprep.subr.mxu1 %v7614_v8 }
0x1727   :  { %6973 = vmatpush3.msra.mxu1 %v2905_v54 }
0x1728   :  { %6974 = vmatprep.subr.mxu1 %v7614_v8 }
0x1729   :  { %6975 = vmatpush3.msra.mxu1 %v2904_v3 }
0x172a   :  { %6977 = vmatmul.mubr.msk.f32.vlgmr.msra.gmra.mxu1 %vm355_vm1, %v2911_v58  ;;  %3513 = vmatprep.subr.bf16.mxu1 %v7242_v51  ;;  %v7253_v51 = vld [vmem:[%s8914_s14 + $0x8] sm:$0xff]  }
0x172b   :  { %3514 = vmatpush1.bf16.msra.mxu1 %v7240_v18  ;;  %3537 = vmatprep.mubr.bf16.mxu1 %v7617_v48 }
0x172c   :  { %3515 = vmatprep.subr.bf16.mxu1 %v7245_v10 }
0x172f   :  { %3516 = vmatpush1.bf16.msra.mxu1 %v7243_v56  ;;  %v7252_v56 = vld [vmem:[%s8914_s14] sm:$0xff]  }
0x1730   :  { %3517 = vmatprep.subr.bf16.mxu1 %v7248_v11 }
0x1733   :  { %3518 = vmatpush1.bf16.msra.mxu1 %v7246_v0 }
0x1734   :  { %3519 = vmatprep.subr.bf16.mxu1 %v7251_v63 }
0x1737   :  { %3520 = vmatpush1.bf16.msra.mxu1 %v7249_v46 }
0x1738   :  { %6999 = vmatprep.subr.mxu1 %v7614_v8 }
0x17d2   :  { %v2999_v62 = vpop.f32.mrf.mxu1 }
0x17d4   :  { %v6945_v4 = vpop.f32.mrf.mxu1 }
0x17da   :  { %v3072_v55 = vpop.f32.mrf.mxu1 }
0x17db   :  { %3223 = vrot.lane.b32.xlu0 %v3072_v55, %s7616_s11  ;;  %v3452_v55 = vlaneseq }
0x17dc   :  { %v6956_v57 = vpop.f32.mrf.mxu1 }
0x17dd   :  { %v3453_v57 = vshrl.u32 %v3452_v55, 7 }
0x17e2   :  { %v3145_v47 = vpop.f32.mrf.mxu1 }
0x17e3   :  { %3227 = vrot.lane.b32.xlu1 %v3145_v47, %s7610_s5  ;;  %v8516_v47 = vsub.s32 0, %v3453_v57 }
0x17e4   :  { %v6967_v49 = vpop.f32.mrf.mxu1 }
0x17e5   :  { %v3364_v49 = vld [vmem:[%s8912_s3] sm:$0x3] }
0x17ea   :  { %v3218_v6 = vpop.f32.mrf.mxu1 }
0x17eb   :  { %3231 = vrot.lane.b32.xlu1 %v3218_v6, %s7609_s0  ;;  %v3455_v6 = vrot.slane %v3364_v49, %v8516_v47 }
0x17ec   :  { %v6978_v16 = vpop.f32.mrf.mxu1 }
0x184d   :  { %v3224_v61 = vpop.permute.xlu0 %3223 }
0x184e   :  { %v3234_v17 = vsel %vm355_vm1, %v2999_v62, %v3224_v61 }
0x1855   :  { %v3228_v59 = vpop.permute.xlu1 %3227 }
0x1856   :  { %v3236_v7 = vsel %vm3235_vm12, %v3234_v17, %v3228_v59 }
0x185d   :  { %v3232_v12 = vpop.permute.xlu1 %3231 }
0x185e   :  { %v3238_v5 = vsel %vm3237_vm13, %v3236_v7, %v3232_v12 }
0x185f   :  { %3239 = vadd.xlane.f32.xlu1 %v3238_v5 }
0x18e8   :  { %v3240_v20 = vpop.xlane.xlu1 %3239 }
0x18e9   :  { %v3242_v21 = vmul.f32 0.0078125, %v3240_v20 }
0x18eb   :  { %v3243_v22 = vsub.f32 %v3238_v5, %v3242_v21  ;;  %v8529_v5 = vsub.s32 1, %v3453_v57  ;;  %v3365_v21 = vld [vmem:[%s8913_s8] sm:$0xff]  ;;  %v3367_v57 = vld [vmem:[%s8913_s8 + $0x10] sm:$0xff] }
0x18ed   :  { %v3244_v23 = vmul.f32 %v3243_v22, %v3243_v22  ;;  %v3459_v19 = vrot.slane %v3364_v49, %v8529_v5 }
0x18ef   :  { %3245 = vadd.xlane.f32.xlu0 %v3244_v23 }
0x1978   :  { %v3246_v26 = vpop.xlane.xlu0 %3245 }
0x1979   :  { %v3247_v32 = vmul.f32 0.0078125, %v3246_v26 }
0x197b   :  { %v3248_v30 = vadd.f32 1e-05, %v3247_v32 }
0x197d   :  { %7464 = vrsqrt.f32 %v3248_v30 }
0x198a   :  { %v7465_v33 = vpop.eup %7464 }
0x198b   :  { %v3250_v36 = vmul.f32 %v7465_v33, %v3243_v22 }
0x198d   :  { %v3257_v37 = vmul.f32 %v6347_v34, %v3250_v36 }
0x198f   :  { %v3264_v35 = vadd.f32 %v6348_v31, %v3257_v37 }
0x1991   :  { %v3265_v38 = vpack.c.bf16 %v3264_v35, %v3264_v35  ;;  %v3366_v35 = vld [vmem:[%s8913_s8 + $0x8] sm:$0xff] }
0x1993   :  { %6996 = vmatmul.mubr.bf16.vlgmr.msra.gmra.mxu0 %v3265_v38 }
0x1994   :  { %7016 = vmatprep.mubr.msk.f32.mxu0 %vm7615_vm11, %v7614_v8 }
0x1a53   :  { %v8495_v13 = vpop.f32.mrf.mxu0 }
0x1a54   :  { %v3422_v39 = vsel %vm3235_vm12, %v8495_v13, 0.0 }
0x1a55   :  { %3423 = vadd.xlane.f32.xlu0 %v3422_v39  ;;  %v6997_v53 = vpop.f32.mrf.mxu0 }
0x1a57   :  { %v3351_v40 = vpop.f32.mrf.mxu0 }
0x1a59   :  { %v6998_v14 = vpop.f32.mrf.mxu0 }
0x1ade   :  { %v3424_v42 = vpop.xlane.xlu0 %3423 }
0x1adf   :  { %v3426_v44 = vmul.f32 0.015625, %v3424_v42 }
0x1ae1   :  { %v3427_v1 = vsub.f32 %v8495_v13, %v3426_v44 }
0x1ae3   :  { %v3428_v60 = vmul.f32 %v3427_v1, %v3427_v1 }
0x1ae5   :  { %v3429_v45 = vsel %vm3235_vm12, %v3428_v60, 0.0 }
0x1ae6   :  { %3430 = vadd.xlane.f32.xlu0 %v3429_v45 }
0x1b6f   :  { %v3431_v50 = vpop.xlane.xlu0 %3430 }
0x1b70   :  { %v3432_v52 = vmul.f32 0.015625, %v3431_v50 }
0x1b72   :  { %v3433_v54 = vadd.f32 1e-05, %v3432_v52 }
0x1b74   :  { %7466 = vrsqrt.f32 %v3433_v54 }
0x1b81   :  { %v7467_v3 = vpop.eup %7466 }
0x1b82   :  { %v3435_v41 = vmul.f32 %v7467_v3, %v3427_v1 }
0x1b84   :  { %v3442_v58 = vmul.f32 %v6357_v2, %v3435_v41 }
0x1b86   :  { %v3449_v62 = vadd.f32 %v6358_v43, %v3442_v58 }
0x1b88   :  { %v3450_v4 = vpack.c.bf16 %v3449_v62, %v3449_v62 }
0x1b8a   :  { %6367 = vmatmul.mubr.msk.bf16.vlgmr.msra.gmra.mxu1 %vm3235_vm12, %v3450_v4 }
0x1b8b   :  { %7001 = vmatprep.mubr.msk.f32.mxu1 %vm7615_vm11, %v7614_v8 }
0x1c4a   :  { %v3539_v16 = vpop.f32.mrf.mxu1 }
0x1c4b   :  { %v8520_v61 = vadd.f32 %v3539_v16, %v3455_v6 }
0x1c4c   :  { %v3541_v59 = vpop.f32.mrf.mxu1 }
0x1c4d   :  { %3548 = vrot.lane.b32.xlu1 %v8520_v61, %s7610_s5  ;;  %v8525_v7 = vmul.f32 0.25, %v8520_v61  ;;  %v8534_v20 = vadd.f32 %v3541_v59, %v3459_v19 }
0x1c4e   :  { %v3543_v17 = vpop.f32.mrf.mxu1 }
0x1c50   :  { %v3544_v12 = vpop.f32.mrf.mxu1 }
0x1c51   :  { %3711 = vrot.lane.b32.xlu1 %v8525_v7, %s7612_s13 }
0x1cbf   :  { %v3549_v15 = vpop.permute.xlu1 %3548 }
0x1cc0   :  { %7000 = vmatpush3.xpose.msk.msra.mxu1 %vm636_vm2, %v3549_v15 }
0x1cc1   :  { %7004 = vmatprep.subr.mxu1 %v7614_v8 }
0x1cc3   :  { %7002 = vmatmul.mubr.msk.f32.vlgmr.msra.gmra.mxu1 %vm636_vm2, %v8525_v7  ;;  %v3712_v36 = vpop.permute.xlu1 %3711 }
0x1cc4   :  { %7005 = vmatpush3.msra.mxu1 %v8534_v20  ;;  %7006 = vmatprep.mubr.msk.f32.mxu1 %vm7615_vm11, %v7614_v8 }
0x1cc5   :  { %7009 = vmatprep.subr.mxu1 %v7614_v8 }
0x1d83   :  { %v3621_v22 = vpop.f32.mrf.mxu1 }
0x1d84   :  { %v3622_v23 = vadd.f32 %v3621_v22, %v3365_v21 }
0x1d85   :  { %v7003_v24 = vpop.f32.mrf.mxu1 }
0x1d86   :  { %v3626_v9 = vsel %vm3625_vm14, %v3622_v23, -inf }
0x1d87   :  { %3627 = vmax.xlane.f32.xlu0 %v3626_v9 }
0x1e10   :  { %v3628_v27 = vpop.xlane.xlu0 %3627 }
0x1e11   :  { %v3629_v28 = vsub.f32 %v3622_v23, %v3628_v27 }
0x1e13   :  { %v3630_v29 = vmul.f32 1.442695, %v3629_v28 }
0x1e15   :  { %7468 = vpow2.f32 %v3630_v29 }
0x1e22   :  { %v7469_v25 = vpop.eup %7468 }
0x1e23   :  { %v3632_v26 = vsel %vm3625_vm14, %v7469_v25, 0.0 }
0x1e24   :  { %3633 = vadd.xlane.f32.xlu0 %v3632_v26  ;;  %v3368_v26 = vld [vmem:[%s8913_s8 + $0x18] sm:$0xff] }
0x1e3a   :  { %3713 = vrot.lane.b32.xlu0 %v8520_v61, %s7613_s17 }
0x1ead   :  { %v3634_v32 = vpop.xlane.xlu0 %3633 }
0x1eae   :  { %7470 = vrcp.f32 %v3634_v32 }
0x1eb1   :  { %v3714_v34 = vpop.permute.xlu0 %3713 }
0x1ebb   :  { %v7471_v30 = vpop.eup %7470 }
0x1ebc   :  { %v3636_v33 = vmul.f32 %v7471_v30, %v7469_v25 }
0x1ebe   :  { %7007 = vmatmul.mubr.msk.f32.vlgmr.msra.gmra.mxu1 %vm3625_vm14, %v3636_v33 }
0x1ebf   :  { %7010 = vmatpush3.xpose.msk.msra.mxu1 %vm636_vm2, %v3714_v34  ;;  %7011 = vmatprep.mubr.msk.f32.mxu1 %vm7615_vm11, %v7614_v8 }
0x1ec0   :  { %7019 = vmatprep.subr.bf16.mxu1 %v7614_v8 }
0x1ec2   :  { %7012 = vmatmul.mubr.msk.f32.vlgmr.msra.gmra.mxu1 %vm636_vm2, %v3712_v36 }
0x1ec3   :  { %7021 = vmatprep.mubr.msk.bf16.mxu1 %vm7615_vm11, %v7614_v8  ;;  %7020 = vmatpush3.bf16.msra.mxu1 %v7253_v51 }
0x1ec4   :  { %7031 = vmatprep.subr.mxu1 %v7614_v8 }
0x1f7e   :  { %v3706_v31 = vpop.f32.mrf.mxu1 }
0x1f7f   :  { %v3710_v0 = vpack.c.bf16 %v3706_v31, %v3706_v31 }
0x1f80   :  { %v7008_v37 = vpop.f32.mrf.mxu1 }
0x1f82   :  { %v3785_v38 = vpop.f32.mrf.mxu1 }
0x1f83   :  { %v3786_v39 = vadd.f32 %v3785_v38, %v3366_v35 }
0x1f84   :  { %v7013_v53 = vpop.f32.mrf.mxu1 }
0x1f85   :  { %v3789_v40 = vsel %vm3625_vm14, %v3786_v39, -inf }
0x1f86   :  { %3790 = vmax.xlane.f32.xlu1 %v3789_v40 }
0x1f97   :  { %3801 = vrot.lane.b32.xlu1 %v8534_v20, %s7612_s13 }
0x1f9b   :  { %3976 = vrot.lane.b32.xlu1 %v8525_v7, %s7609_s0 }
0x200f   :  { %v3791_v14 = vpop.xlane.xlu1 %3790 }
0x2010   :  { %v3792_v42 = vsub.f32 %v3786_v39, %v3791_v14 }
0x2012   :  { %v3793_v44 = vmul.f32 1.442695, %v3792_v42 }
0x2013   :  { %v3802_v1 = vpop.permute.xlu1 %3801 }
0x2014   :  { %7472 = vpow2.f32 %v3793_v44  ;;  %7015 = vmatpush3.msra.mxu0 %v3802_v1 }
0x2015   :  { %7025 = vmatprep.subr.bf16.mxu0 %v7614_v8 }
0x2017   :  { %v3977_v41 = vpop.permute.xlu1 %3976 }
0x2021   :  { %v7473_v60 = vpop.eup %7472 }
0x2022   :  { %v3795_v45 = vsel %vm3625_vm14, %v7473_v60, 0.0 }
0x2023   :  { %3796 = vadd.xlane.f32.xlu0 %v3795_v45 }
0x2039   :  { %3978 = vrot.lane.b32.xlu0 %v8520_v61, %s7616_s11 }
0x20ac   :  { %v3797_v18 = vpop.xlane.xlu0 %3796 }
0x20ad   :  { %7474 = vrcp.f32 %v3797_v18  ;;  %v7255_v18 = vld [vmem:[%s8914_s14 + $0x18] sm:$0xff]  }
0x20b0   :  { %v3979_v52 = vpop.permute.xlu0 %3978 }
0x20ba   :  { %v7475_v10 = vpop.eup %7474 }
0x20bb   :  { %v3799_v11 = vmul.f32 %v7475_v10, %v7473_v60 }
0x20bd   :  { %7017 = vmatmul.mubr.msk.f32.vlgmr.msra.gmra.mxu0 %vm3625_vm14, %v3799_v11 }
0x20be   :  { %7026 = vmatpush3.bf16.msra.mxu0 %v7252_v56  ;;  %7027 = vmatprep.mubr.msk.bf16.mxu0 %vm7615_vm11, %v7614_v8 }
0x20bf   :  { %7036 = vmatprep.subr.mxu0 %v7614_v8 }
0x20c1   :  { %7028 = vmatmul.mubr.msk.bf16.vlgmr.msra.gmra.mxu0 %vm636_vm2, %v3710_v0 }
0x20c2   :  { %7038 = vmatprep.mubr.msk.f32.mxu0 %vm7615_vm11, %v7614_v8 }
0x217d   :  { %v3873_v63 = vpop.f32.mrf.mxu0 }
0x217e   :  { %v3877_v46 = vpack.c.bf16 %v3873_v63, %v3873_v63  ;;  %v6388_v63 = vld [vmem:[%s8915_s24] ss:$0 sm:$0xff] }
0x217f   :  { %v7018_v50 = vpop.f32.mrf.mxu0 }
0x2180   :  { %7022 = vmatmul.mubr.msk.bf16.vlgmr.msra.gmra.mxu1 %vm636_vm2, %v3877_v46 }
0x2181   :  { %7032 = vmatpush3.xpose.msk.msra.mxu1 %vm636_vm2, %v3979_v52  ;;  %v8577_v54 = vpop.f32.mrf.mxu0  ;;  %7033 = vmatprep.mubr.msk.f32.mxu1 %vm7615_vm11, %v7614_v8 }
0x2182   :  { %7041 = vmatprep.subr.bf16.mxu1 %v7614_v8 }
0x2183   :  { %v7029_v3 = vpop.f32.mrf.mxu0 }
0x2185   :  { %v3973_v2 = vpop.f32.mrf.mxu0 }
0x2187   :  { %v7030_v43 = vpop.f32.mrf.mxu0 }
0x2188   :  { %7034 = vmatmul.mubr.msk.f32.vlgmr.msra.gmra.mxu1 %vm636_vm2, %v3977_v41 }
0x2189   :  { %7043 = vmatprep.mubr.msk.bf16.mxu1 %vm7615_vm11, %v7614_v8 }
0x2240   :  { %v3921_v58 = vpop.f32.mrf.mxu1 }
0x2241   :  { %v3971_v39 = vadd.f32 %v8577_v54, %v3921_v58 }
0x2242   :  { %v7023_v62 = vpop.f32.mrf.mxu1 }
0x2244   :  { %v3924_v4 = vpop.f32.mrf.mxu1 }
0x2245   :  { %v7258_v4 = vld [vmem:[%s8916_s30 + $0x34] ss:$8 sps:$4 sm:$0xff]  }
0x2246   :  { %v7024_v55 = vpop.f32.mrf.mxu1 }
0x2247   :  { %v7256_v55 = vld [vmem:[%s8916_s30 + $0x30] ss:$8 sps:$4 sm:$0xff]  }
0x2248   :  { %v4050_v49 = vpop.f32.mrf.mxu1 }
0x2249   :  { %v4051_v6 = vadd.f32 %v4050_v49, %v3367_v57  ;;  %v7261_v57 = vld [vmem:[%s8916_s30 + $0x24] ss:$8 sps:$4 sm:$0xff]   ;;  %v7259_v49 = vld [vmem:[%s8916_s30 + $0x20] ss:$8 sps:$4 sm:$0xff]  }
0x224a   :  { %v7035_v16 = vpop.f32.mrf.mxu1 }
0x224b   :  { %v4054_v59 = vsel %vm3625_vm14, %v4051_v6, -inf  ;;  %v7262_v16 = vld [vmem:[%s8916_s30 + $0x10] ss:$8 sps:$4 sm:$0xff]  }
0x224c   :  { %4055 = vmax.xlane.f32.xlu1 %v4054_v59  ;;  %v7267_v59 = vld [vmem:[%s8916_s30 + $0x4] ss:$8 sps:$4 sm:$0xff]  }
0x225d   :  { %4065 = vrot.lane.b32.xlu1 %v8534_v20, %s7609_s0 }
0x2261   :  { %4192 = vrot.lane.b32.xlu1 %v8525_v7, %s7611_s9 }
0x22d5   :  { %v4056_v17 = vpop.xlane.xlu1 %4055 }
0x22d6   :  { %v4057_v12 = vsub.f32 %v4051_v6, %v4056_v17  ;;  %v7264_v6 = vld [vmem:[%s8916_s30 + $0x14] ss:$8 sps:$4 sm:$0xff]   ;;  %v7265_v17 = vld [vmem:[%s8916_s30] ss:$8 sps:$4 sm:$0xff]  }
0x22d8   :  { %v4058_v19 = vmul.f32 1.442695, %v4057_v12 }
0x22d9   :  { %v4066_v15 = vpop.permute.xlu1 %4065 }
0x22da   :  { %7476 = vpow2.f32 %v4058_v19  ;;  %7037 = vmatpush3.msra.mxu0 %v4066_v15 }
0x22db   :  { %7047 = vmatprep.subr.mxu0 %v7614_v8 }
0x22dd   :  { %v4193_v27 = vpop.permute.xlu1 %4192 }
0x22e7   :  { %v7477_v21 = vpop.eup %7476 }
0x22e8   :  { %v4060_v22 = vsel %vm3625_vm14, %v7477_v21, 0.0 }
0x22e9   :  { %4061 = vadd.xlane.f32.xlu0 %v4060_v22  ;;  %v6389_v22 = vld [vmem:[%s8917_s12] ss:$0 sm:$0xff] }
0x22ff   :  { %4194 = vrot.lane.b32.xlu0 %v8520_v61, %s7618_s19  ;;  %v7254_v61 = vld [vmem:[%s8914_s14 + $0x10] sm:$0xff]  }
0x2300   :  { %7042 = vmatpush3.bf16.msra.mxu1 %v7254_v61  ;;  %v7268_v61 = vld [vmem:[%s8919_s23 + $0x78] sm:$0xff]  }
0x2301   :  { %7057 = vmatprep.subr.bf16.mxu1 %v7614_v8 }
0x2372   :  { %v4062_v23 = vpop.xlane.xlu0 %4061 }
0x2373   :  { %7478 = vrcp.f32 %v4062_v23 }
0x2376   :  { %v4195_v9 = vpop.permute.xlu0 %4194 }
0x2380   :  { %v7479_v7 = vpop.eup %7478 }
0x2381   :  { %v4064_v24 = vmul.f32 %v7479_v7, %v7477_v21  ;;  %v6390_v7 = vld [vmem:[%s8918_s22] ss:$0 sm:$0xff] }
0x2383   :  { %7039 = vmatmul.mubr.msk.f32.vlgmr.msra.gmra.mxu0 %vm3625_vm14, %v4064_v24 }
0x2384   :  { %7048 = vmatpush3.xpose.msk.msra.mxu0 %vm636_vm2, %v4195_v9  ;;  %7049 = vmatprep.mubr.msk.f32.mxu0 %vm7615_vm11, %v7614_v8 }
0x2385   :  { %7052 = vmatprep.subr.mxu0 %v7614_v8 }
0x2387   :  { %7050 = vmatmul.mubr.msk.f32.vlgmr.msra.gmra.mxu0 %vm636_vm2, %v4193_v27 }
0x2388   :  { %7054 = vmatprep.mubr.msk.f32.mxu0 %vm7615_vm11, %v7614_v8 }
0x2443   :  { %v4137_v28 = vpop.f32.mrf.mxu0 }
0x2444   :  { %v4141_v29 = vpack.c.bf16 %v4137_v28, %v4137_v28  ;;  %v7269_v28 = vld [vmem:[%s8919_s23 + $0x38] sm:$0xff]  }
0x2445   :  { %v7040_v25 = vpop.f32.mrf.mxu0 }
0x2446   :  { %7044 = vmatmul.mubr.msk.bf16.vlgmr.msra.gmra.mxu1 %vm636_vm2, %v4141_v29  ;;  %v7270_v29 = vld [vmem:[%s8919_s23 + $0x70] sm:$0xff]  }
0x2447   :  { %v4266_v32 = vpop.f32.mrf.mxu0  ;;  %7059 = vmatprep.mubr.msk.bf16.mxu1 %vm7615_vm11, %v7614_v8  ;;  %7058 = vmatpush3.bf16.msra.mxu1 %v7255_v18  ;;  %v7271_v25 = vld [vmem:[%s8919_s23 + $0x30] sm:$0xff]  }
0x2448   :  { %v4267_v30 = vadd.f32 %v4266_v32, %v3368_v26  ;;  %6649 = vmatprep.subr.bf16.mxu1 %v7268_v61  ;;  %v7272_v26 = vld [vmem:[%s8919_s23 + $0x68] sm:$0xff]  }
0x2449   :  { %v7051_v33 = vpop.f32.mrf.mxu0  ;;  %v7273_v32 = vld [vmem:[%s8919_s23 + $0x28] sm:$0xff]  }
0x244a   :  { %v4270_v34 = vsel %vm3625_vm14, %v4267_v30, -inf  ;;  %v7275_v33 = vld [vmem:[%s8919_s23 + $0x20] sm:$0xff]  }
0x244b   :  { %4271 = vmax.xlane.f32.xlu1 %v4270_v34  ;;  %v7276_v34 = vld [vmem:[%s8919_s23 + $0x58] sm:$0xff]  }
0x24d4   :  { %v4272_v36 = vpop.xlane.xlu1 %4271 }
0x24d5   :  { %v4273_v31 = vsub.f32 %v4267_v30, %v4272_v36  ;;  %v7274_v30 = vld [vmem:[%s8919_s23 + $0x60] sm:$0xff]   ;;  %v7277_v36 = vld [vmem:[%s8919_s23 + $0x18] sm:$0xff]  }
0x24d7   :  { %v4274_v37 = vmul.f32 1.442695, %v4273_v31  ;;  %v7278_v31 = vld [vmem:[%s8919_s23 + $0x50] sm:$0xff]  }
0x24d9   :  { %7480 = vpow2.f32 %v4274_v37  ;;  %v7279_v37 = vld [vmem:[%s8919_s23 + $0x10] sm:$0xff]  }
0x24e6   :  { %v7481_v35 = vpop.eup %7480 }
0x24e7   :  { %v4276_v38 = vsel %vm3625_vm14, %v7481_v35, 0.0 }
0x24e8   :  { %4277 = vadd.xlane.f32.xlu0 %v4276_v38  ;;  %v7281_v38 = vld [vmem:[%s8919_s23 + $0x8] sm:$0xff]  }
0x24fe   :  { %4281 = vrot.lane.b32.xlu0 %v8534_v20, %s7611_s9 }
0x2506   :  { %v4185_v53 = vpop.f32.mrf.mxu1 }
0x2507   :  { %v4191_v40 = vadd.f32 %v4185_v53, %v3971_v39  ;;  %v7282_v39 = vld [vmem:[%s8919_s23 + $0x40] sm:$0xff]  }
0x2508   :  { %v7045_v14 = vpop.f32.mrf.mxu1  ;;  %v7283_v53 = vld [vmem:[%s8919_s23] sm:$0xff]  }
0x250a   :  { %v4188_v42 = vpop.f32.mrf.mxu1 }
0x250c   :  { %v7046_v44 = vpop.f32.mrf.mxu1 }
0x2571   :  { %v4278_v1 = vpop.xlane.xlu0 %4277 }
0x2572   :  { %7482 = vrcp.f32 %v4278_v1 }
0x2575   :  { %v4282_v60 = vpop.permute.xlu0 %4281 }
0x2576   :  { %7053 = vmatpush3.msra.mxu0 %v4282_v60 }
0x2577   :  { %4506 = vmatprep.subr.bf16.mxu0 %v7258_v4 }
0x257f   :  { %v7483_v45 = vpop.eup %7482 }
0x2580   :  { %v4280_v51 = vmul.f32 %v7483_v45, %v7481_v35  ;;  %v7280_v35 = vld [vmem:[%s8919_s23 + $0x48] sm:$0xff]  }
0x2582   :  { %7055 = vmatmul.mubr.msk.f32.vlgmr.msra.gmra.mxu0 %vm3625_vm14, %v4280_v51 }
0x2583   :  { %4530 = vmatprep.mubr.bf16.mxu0 %v7617_v48  ;;  %4507 = vmatpush1.bf16.msra.mxu0 %v7256_v55 }
0x2584   :  { %4508 = vmatprep.subr.bf16.mxu0 %v7261_v57 }
0x2587   :  { %4509 = vmatpush1.bf16.msra.mxu0 %v7259_v49 }
0x2588   :  { %4510 = vmatprep.subr.bf16.mxu0 %v7264_v6 }
0x258b   :  { %4511 = vmatpush1.bf16.msra.mxu0 %v7262_v16 }
0x258c   :  { %4512 = vmatprep.subr.bf16.mxu0 %v7267_v59 }
0x258f   :  { %4513 = vmatpush1.bf16.msra.mxu0 %v7265_v17 }
0x2642   :  { %v4353_v20 = vpop.f32.mrf.mxu0 }
0x2643   :  { %v4357_v10 = vpack.c.bf16 %v4353_v20, %v4353_v20 }
0x2644   :  { %v7056_v56 = vpop.f32.mrf.mxu0 }
0x2645   :  { %7060 = vmatmul.mubr.msk.bf16.vlgmr.msra.gmra.mxu1 %vm636_vm2, %v4357_v10 }
0x2646   :  { %6650 = vmatpush3.bf16.msra.mxu1 %v7269_v28 }
0x2647   :  { %6651 = vmatprep.subr.bf16.mxu1 %v7270_v29 }
0x264a   :  { %6652 = vmatpush3.bf16.msra.mxu1 %v7271_v25 }
0x264b   :  { %6653 = vmatprep.subr.bf16.mxu1 %v7272_v26 }
0x264e   :  { %6654 = vmatpush3.bf16.msra.mxu1 %v7273_v32 }
0x264f   :  { %6655 = vmatprep.subr.bf16.mxu1 %v7274_v30 }
0x2652   :  { %6656 = vmatpush3.bf16.msra.mxu1 %v7275_v33 }
0x2653   :  { %6657 = vmatprep.subr.bf16.mxu1 %v7276_v34 }
0x2656   :  { %6658 = vmatpush3.bf16.msra.mxu1 %v7277_v36 }
0x2657   :  { %6659 = vmatprep.subr.bf16.mxu1 %v7278_v31 }
0x265a   :  { %6660 = vmatpush3.bf16.msra.mxu1 %v7279_v37 }
0x265b   :  { %6661 = vmatprep.subr.bf16.mxu1 %v7280_v35 }
0x265e   :  { %6662 = vmatpush3.bf16.msra.mxu1 %v7281_v38 }
0x265f   :  { %6663 = vmatprep.subr.bf16.mxu1 %v7282_v39 }
0x2662   :  { %6664 = vmatpush3.bf16.msra.mxu1 %v7283_v53 }
0x2663   :  { %7068 = vmatprep.subr.mxu1 %v7614_v8 }
0x2705   :  { %v4401_v11 = vpop.f32.mrf.mxu1 }
0x2706   :  { %v4407_v0 = vadd.f32 %v4401_v11, %v4191_v40  ;;  %v3388_v40 = vld [vmem:[%s8920_s26] sm:$0x3] }
0x2707   :  { %v7061_v46 = vpop.f32.mrf.mxu1  ;;  %v4448_v14 = vrot.slane %v3388_v40, %v8516_v47  ;;  %v4452_v42 = vrot.slane %v3388_v40, %v8529_v5 }
0x2708   :  { %v4408_v50 = vadd.f32 %v4407_v0, %v8495_v13 }
0x2709   :  { %v4404_v52 = vpop.f32.mrf.mxu1 }
0x270a   :  { %v8620_v54 = vadd.f32 %v6388_v63, %v4408_v50 }
0x270b   :  { %v7062_v3 = vpop.f32.mrf.mxu1 }
0x270c   :  { %v4416_v2 = vsel %vm3235_vm12, %v8620_v54, 0.0 }
0x270d   :  { %4417 = vadd.xlane.f32.xlu1 %v4416_v2 }
0x2796   :  { %v4418_v41 = vpop.xlane.xlu1 %4417 }
0x2797   :  { %v4419_v43 = vmul.f32 0.015625, %v4418_v41 }
0x2799   :  { %v4420_v58 = vsub.f32 %v8620_v54, %v4419_v43 }
0x279b   :  { %v4421_v62 = vmul.f32 %v4420_v58, %v4420_v58 }
0x279d   :  { %v4422_v13 = vsel %vm3235_vm12, %v4421_v62, 0.0 }
0x279e   :  { %4423 = vadd.xlane.f32.xlu1 %v4422_v13 }
0x2827   :  { %v4424_v12 = vpop.xlane.xlu1 %4423 }
0x2828   :  { %v4425_v19 = vmul.f32 0.015625, %v4424_v12 }
0x282a   :  { %v4426_v15 = vadd.f32 1e-05, %v4425_v19 }
0x282c   :  { %7484 = vrsqrt.f32 %v4426_v15 }
0x2839   :  { %v7485_v21 = vpop.eup %7484 }
0x283a   :  { %v4428_v23 = vmul.f32 %v7485_v21, %v4420_v58 }
0x283c   :  { %v4435_v24 = vmul.f32 %v6389_v22, %v4428_v23 }
0x283e   :  { %v4442_v9 = vadd.f32 %v6390_v7, %v4435_v24 }
0x2840   :  { %v4443_v27 = vpack.c.bf16 %v4442_v9, %v4442_v9 }
0x2842   :  { %6399 = vmatmul.mubr.msk.bf16.vlgmr.msra.gmra.mxu0 %vm3235_vm12, %v4443_v27 }
0x2843   :  { %4920 = vmatprep.mubr.bf16.mxu0 %v7617_v48 }
0x2902   :  { %v4532_v44 = vpop.f32.mrf.mxu0 }
0x2903   :  { %v4533_v1 = vadd.f32 %v4532_v44, %v4448_v14  ;;  %v6400_v44 = vld [vmem:[%s8921_s28] ss:$0 sm:$0xff] }
0x2904   :  { %v4534_v60 = vpop.f32.mrf.mxu0 }
0x2905   :  { %v4539_v45 = vmul.f32 0.70710677, %v4533_v1  ;;  %v4535_v51 = vadd.f32 %v4534_v60, %v4452_v42  ;;  %v4587_v31 = vmul.f32 0.5, %v4533_v1 }
0x2906   :  { %v4536_v18 = vpop.f32.mrf.mxu0 }
0x2907   :  { %v4541_v20 = vand.u32 2147483647, %v4539_v45  ;;  %v4540_v10 = vmul.f32 0.70710677, %v4535_v51  ;;  %vm4581_vm15 = vcmp.ge.f32.partialorder %v4539_v45, 0.0  ;;  %v4588_v35 = vmul.f32 0.5, %v4535_v51 }
0x2908   :  { %v4537_v56 = vpop.f32.mrf.mxu0 }
0x2909   :  { %v4543_v11 = vmul.f32 0.3275911, %v4541_v20  ;;  %v4542_v0 = vand.u32 2147483647, %v4540_v10  ;;  %v4569_v52 = vsub.f32 0.0, %v4541_v20  ;;  %vm4582_vm0 = vcmp.ge.f32.partialorder %v4540_v10, 0.0 }
0x290b   :  { %v4545_v63 = vadd.f32 1.0, %v4543_v11  ;;  %v4544_v46 = vmul.f32 0.3275911, %v4542_v0  ;;  %v4570_v3 = vsub.f32 0.0, %v4542_v0  ;;  %v4571_v2 = vmul.f32 %v4569_v52, %v4541_v20  ;;  %v7284_v52 = vld [vmem:[%s8922_s1 + $0x30] ss:$8 sps:$4 sm:$0xff]  }
0x290d   :  { %7486 = vrcp.f32 %v4545_v63  ;;  %v4546_v50 = vadd.f32 1.0, %v4544_v46  ;;  %v4572_v43 = vmul.f32 %v4570_v3, %v4542_v0  ;;  %v4573_v62 = vmul.f32 1.442695, %v4571_v2  ;;  %v7287_v3 = vld [vmem:[%s8922_s1 + $0x20] ss:$8 sps:$4 sm:$0xff]  }
0x290e   :  { %v7292_v2 = vld [vmem:[%s8922_s1 + $0x14] ss:$8 sps:$4 sm:$0xff]  }
0x290f   :  { %7488 = vrcp.f32 %v4546_v50  ;;  %v4575_v55 = vmul.f32 1.442695, %v4572_v43  ;;  %v7286_v50 = vld [vmem:[%s8922_s1 + $0x34] ss:$8 sps:$4 sm:$0xff]   ;;  %v7295_v43 = vld [vmem:[%s8922_s1 + $0x4] ss:$8 sps:$4 sm:$0xff]  }
0x2910   :  { %7490 = vpow2.f32 %v4573_v62  ;;  %4896 = vmatprep.subr.bf16.mxu0 %v7286_v50 }
0x2911   :  { %7492 = vpow2.f32 %v4575_v55  ;;  %4897 = vmatpush1.bf16.msra.mxu0 %v7284_v52 }
0x291a   :  { %v7487_v41 = vpop.eup %7486 }
0x291b   :  { %v4551_v58 = vmul.f32 1.0614054, %v7487_v41 }
0x291c   :  { %v7489_v13 = vpop.eup %7488 }
0x291d   :  { %v4553_v4 = vadd.f32 -1.4531521, %v4551_v58  ;;  %v4552_v57 = vmul.f32 1.0614054, %v7489_v13  ;;  %v7491_v9 = vpop.eup %7490  ;;  %v7293_v58 = vld [vmem:[%s8922_s1] ss:$8 sps:$4 sm:$0xff]  }
0x291e   :  { %v7493_v29 = vpop.eup %7492 }
0x291f   :  { %v4555_v49 = vmul.f32 %v7487_v41, %v4553_v4  ;;  %v4554_v6 = vadd.f32 -1.4531521, %v4552_v57  ;;  %v6417_v57 = vld [vmem:[%s8923_s2] ss:$0 sm:$0xff] }
0x2921   :  { %v4557_v16 = vadd.f32 1.4214138, %v4555_v49  ;;  %v4556_v59 = vmul.f32 %v7489_v13, %v4554_v6  ;;  %v6418_v6 = vld [vmem:[%s8924_s7] ss:$0 sm:$0xff] }
0x2923   :  { %v4559_v17 = vmul.f32 %v7487_v41, %v4557_v16  ;;  %v4558_v12 = vadd.f32 1.4214138, %v4556_v59 }
0x2925   :  { %v4561_v19 = vadd.f32 -0.28449672, %v4559_v17  ;;  %v4560_v15 = vmul.f32 %v7489_v13, %v4558_v12  ;;  %v4748_v12 = vld [vmem:[%s8925_s10] sm:$0x3] }
0x2927   :  { %v4563_v21 = vmul.f32 %v7487_v41, %v4561_v19  ;;  %v4562_v22 = vadd.f32 -0.28449672, %v4560_v15  ;;  %v4838_v19 = vrot.slane %v4748_v12, %v8516_v47  ;;  %v4842_v15 = vrot.slane %v4748_v12, %v8529_v5  ;;  %v4751_v12 = vld [vmem:[%s8926_s15 + $0x10] sm:$0xff] }
0x2929   :  { %v4565_v23 = vadd.f32 0.2548296, %v4563_v21  ;;  %v4564_v7 = vmul.f32 %v7489_v13, %v4562_v22 }
0x292b   :  { %v4567_v24 = vmul.f32 %v7487_v41, %v4565_v23  ;;  %v4566_v27 = vadd.f32 0.2548296, %v4564_v7  ;;  %v7290_v41 = vld [vmem:[%s8922_s1 + $0x10] ss:$8 sps:$4 sm:$0xff]  }
0x292d   :  { %v4577_v61 = vmul.f32 %v7491_v9, %v4567_v24  ;;  %v4568_v28 = vmul.f32 %v7489_v13, %v4566_v27 }
0x292f   :  { %v4579_v25 = vsub.f32 1.0, %v4577_v61  ;;  %v4578_v26 = vmul.f32 %v7493_v29, %v4568_v28 }
0x2931   :  { %v4583_v32 = vsub.f32 0.0, %v4579_v25  ;;  %v4580_v30 = vsub.f32 1.0, %v4578_v26 }
0x2933   :  { %v4585_v33 = vsel %vm4581_vm15, %v4579_v25, %v4583_v32  ;;  %v4584_v36 = vsub.f32 0.0, %v4580_v30  ;;  %v4749_v25 = vld [vmem:[%s8926_s15] sm:$0xff] }
0x2934   :  { %v4589_v34 = vadd.f32 1.0, %v4585_v33  ;;  %v4750_v33 = vld [vmem:[%s8926_s15 + $0x8] sm:$0xff] }
0x2935   :  { %v4586_v37 = vsel %vm4582_vm0, %v4580_v30, %v4584_v36 }
0x2936   :  { %v4590_v38 = vadd.f32 1.0, %v4586_v37  ;;  %v4591_v39 = vmul.f32 %v4589_v34, %v4587_v31 }
0x2938   :  { %v4592_v53 = vmul.f32 %v4590_v38, %v4588_v35  ;;  %v4593_v14 = vpack.c.bf16 %v4591_v39, %v4591_v39 }
0x293a   :  { %v4594_v40 = vpack.c.bf16 %v4592_v53, %v4592_v53 }
0x293c   :  { %4729 = vmatprep.mubr.bf16.mxu1 %v4594_v40 }
0x293d   :  { %4730 = vmatmul.mubr.bf16.vlgmr.msra.gmra.mxu1 %v4593_v14 }
0x293e   :  { %7070 = vmatprep.mubr.msk.f32.mxu1 %vm7615_vm11, %v7614_v8 }
0x29fd   :  { %v6665_v42 = vpop.f32.mrf.mxu1 }
0x29ff   :  { %v6666_v60 = vpop.f32.mrf.mxu1 }
0x2a00   :  { %v6667_v45 = vadd.f32 %v6666_v60, %v6665_v42 }
0x2a01   :  { %v6668_v18 = vpop.f32.mrf.mxu1 }
0x2a02   :  { %v4732_v1 = vadd.f32 %v6667_v45, %v6400_v44 }
0x2a03   :  { %v6669_v51 = vpop.f32.mrf.mxu1 }
0x2a04   :  { %v8662_v20 = vadd.f32 %v4732_v1, %v8620_v54  ;;  %v7289_v54 = vld [vmem:[%s8922_s1 + $0x24] ss:$8 sps:$4 sm:$0xff]  }
0x2a05   :  { %4898 = vmatprep.subr.bf16.mxu0 %v7289_v54 }
0x2a06   :  { %v4806_v10 = vsel %vm3235_vm12, %v8662_v20, 0.0  ;;  %4899 = vmatpush1.bf16.msra.mxu0 %v7287_v3 }
0x2a07   :  { %4807 = vadd.xlane.f32.xlu1 %v4806_v10  ;;  %4900 = vmatprep.subr.bf16.mxu0 %v7292_v2 }
0x2a0a   :  { %4901 = vmatpush1.bf16.msra.mxu0 %v7290_v41 }
0x2a0b   :  { %4902 = vmatprep.subr.bf16.mxu0 %v7295_v43 }
0x2a0e   :  { %4903 = vmatpush1.bf16.msra.mxu0 %v7293_v58 }
0x2a0f   :  { %7063 = vmatprep.subr.mxu0 %v7614_v8 }
0x2a90   :  { %v4808_v56 = vpop.xlane.xlu1 %4807 }
0x2a91   :  { %v4809_v11 = vmul.f32 0.015625, %v4808_v56 }
0x2a93   :  { %v4810_v0 = vsub.f32 %v8662_v20, %v4809_v11 }
0x2a95   :  { %v4811_v63 = vmul.f32 %v4810_v0, %v4810_v0 }
0x2a97   :  { %v4812_v46 = vsel %vm3235_vm12, %v4811_v63, 0.0 }
0x2a98   :  { %4813 = vadd.xlane.f32.xlu1 %v4812_v46 }
0x2b21   :  { %v4814_v62 = vpop.xlane.xlu1 %4813 }
0x2b22   :  { %v4815_v13 = vmul.f32 0.015625, %v4814_v62 }
0x2b24   :  { %v4816_v4 = vadd.f32 1e-05, %v4815_v13 }
0x2b26   :  { %7494 = vrsqrt.f32 %v4816_v4 }
0x2b33   :  { %v7495_v55 = vpop.eup %7494 }
0x2b34   :  { %v4818_v49 = vmul.f32 %v7495_v55, %v4810_v0 }
0x2b36   :  { %v4825_v16 = vmul.f32 %v6417_v57, %v4818_v49 }
0x2b38   :  { %v4832_v59 = vadd.f32 %v6418_v6, %v4825_v16 }
0x2b3a   :  { %v4833_v17 = vpack.c.bf16 %v4832_v59, %v4832_v59 }
0x2b3c   :  { %6427 = vmatmul.mubr.msk.bf16.vlgmr.msra.gmra.mxu0 %vm3235_vm12, %v4833_v17 }
0x2b3d   :  { %7065 = vmatprep.mubr.msk.f32.mxu0 %vm7615_vm11, %v7614_v8 }
0x2bfc   :  { %v4922_v21 = vpop.f32.mrf.mxu0 }
0x2bfd   :  { %v8685_v22 = vadd.f32 %v4922_v21, %v4838_v19 }
0x2bfe   :  { %v4924_v23 = vpop.f32.mrf.mxu0 }
0x2bff   :  { %v8687_v7 = vadd.f32 %v4924_v23, %v4842_v15  ;;  %5095 = vrot.lane.b32.xlu0 %v8685_v22, %s7613_s17  ;;  %4931 = vrot.lane.b32.xlu1 %v8685_v22, %s7610_s5  ;;  %v8695_v9 = vmul.f32 0.25, %v8685_v22  ;;  %s8927_s5 = sld [smem:[#allocation44_spill]] }
0x2c00   :  { %v4926_v24 = vpop.f32.mrf.mxu0  ;;  %s8931_s17 = sld [smem:[#allocation47_spill]] }
0x2c01   :  { %7069 = vmatpush3.msra.mxu1 %v8687_v7 }
0x2c02   :  { %v4927_v27 = vpop.f32.mrf.mxu0  ;;  %7078 = vmatprep.subr.mxu1 %v7614_v8 }
0x2c03   :  { %5093 = vrot.lane.b32.xlu0 %v8695_v9, %s7612_s13 }
0x2c05   :  { %v7296_v46 = vld [vmem:[%s8927_s5] sm:$0xff]   ;;  %v7297_v50 = vld [vmem:[%s8927_s5 + $0x8] sm:$0xff]  }
0x2c71   :  { %v4932_v61 = vpop.permute.xlu1 %4931  ;;  %v5096_v28 = vpop.permute.xlu0 %5095 }
0x2c72   :  { %7064 = vmatpush3.xpose.msk.msra.mxu0 %vm636_vm2, %v4932_v61 }
0x2c73   :  { %7073 = vmatprep.subr.mxu0 %v7614_v8 }
0x2c75   :  { %7066 = vmatmul.mubr.msk.f32.vlgmr.msra.gmra.mxu0 %vm636_vm2, %v8695_v9  ;;  %v5094_v29 = vpop.permute.xlu0 %5093 }
0x2c76   :  { %7074 = vmatpush3.xpose.msk.msra.mxu0 %vm636_vm2, %v5096_v28  ;;  %7075 = vmatprep.mubr.msk.f32.mxu0 %vm7615_vm11, %v7614_v8 }
0x2c77   :  { %7083 = vmatprep.subr.bf16.mxu0 %v7614_v8 }
0x2c79   :  { %7076 = vmatmul.mubr.msk.f32.vlgmr.msra.gmra.mxu0 %vm636_vm2, %v5094_v29 }
0x2c7a   :  { %7085 = vmatprep.mubr.msk.bf16.mxu0 %vm7615_vm11, %v7614_v8  ;;  %7084 = vmatpush3.bf16.msra.mxu0 %v7297_v50 }
0x2c7b   :  { %7095 = vmatprep.subr.mxu0 %v7614_v8 }
0x2d35   :  { %v5004_v26 = vpop.f32.mrf.mxu0 }
0x2d36   :  { %v5005_v32 = vadd.f32 %v5004_v26, %v4749_v25 }
0x2d37   :  { %v7067_v30 = vpop.f32.mrf.mxu0 }
0x2d38   :  { %v5008_v34 = vsel %vm3625_vm14, %v5005_v32, -inf }
0x2d39   :  { %5009 = vmax.xlane.f32.xlu0 %v5008_v34  ;;  %v5167_v36 = vpop.f32.mrf.mxu0 }
0x2d3a   :  { %v5168_v31 = vadd.f32 %v5167_v36, %v4750_v33  ;;  %v7298_v33 = vld [vmem:[%s8927_s5 + $0x10] sm:$0xff]  }
0x2d3b   :  { %v7077_v37 = vpop.f32.mrf.mxu0 }
0x2d3c   :  { %v5171_v35 = vsel %vm3625_vm14, %v5168_v31, -inf  ;;  %v4752_v37 = vld [vmem:[%s8926_s15 + $0x18] sm:$0xff] }
0x2d3d   :  { %5172 = vmax.xlane.f32.xlu1 %v5171_v35 }
0x2d4e   :  { %5360 = vrot.lane.b32.xlu1 %v8685_v22, %s7616_s11  ;;  %s8932_s11 = sld [smem:[#allocation50_spill]] }
0x2d52   :  { %5358 = vrot.lane.b32.xlu1 %v8695_v9, %s7609_s0 }
0x2dc2   :  { %v5010_v38 = vpop.xlane.xlu0 %5009 }
0x2dc3   :  { %v5011_v39 = vsub.f32 %v5005_v32, %v5010_v38 }
0x2dc5   :  { %v5012_v53 = vmul.f32 1.442695, %v5011_v39 }
0x2dc6   :  { %v5173_v40 = vpop.xlane.xlu1 %5172 }
0x2dc7   :  { %7496 = vpow2.f32 %v5012_v53  ;;  %v5174_v14 = vsub.f32 %v5168_v31, %v5173_v40 }
0x2dc9   :  { %v5175_v42 = vmul.f32 1.442695, %v5174_v14 }
0x2dca   :  { %v5361_v58 = vpop.permute.xlu1 %5360 }
0x2dcb   :  { %7498 = vpow2.f32 %v5175_v42 }
0x2dce   :  { %v5359_v62 = vpop.permute.xlu1 %5358 }
0x2dd4   :  { %v7497_v44 = vpop.eup %7496 }
0x2dd5   :  { %v5014_v60 = vsel %vm3625_vm14, %v7497_v44, 0.0 }
0x2dd6   :  { %5015 = vadd.xlane.f32.xlu0 %v5014_v60 }
0x2dd8   :  { %v7499_v45 = vpop.eup %7498 }
0x2dd9   :  { %v5177_v18 = vsel %vm3625_vm14, %v7499_v45, 0.0 }
0x2dda   :  { %5178 = vadd.xlane.f32.xlu0 %v5177_v18 }
0x2df0   :  { %5183 = vrot.lane.b32.xlu0 %v8687_v7, %s7612_s13  ;;  %s8930_s13 = sld [smem:[#allocation46_spill]] }
0x2e5f   :  { %v5016_v1 = vpop.xlane.xlu0 %5015 }
0x2e60   :  { %7500 = vrcp.f32 %v5016_v1 }
0x2e63   :  { %v5179_v51 = vpop.xlane.xlu0 %5178 }
0x2e64   :  { %7502 = vrcp.f32 %v5179_v51 }
0x2e67   :  { %v5184_v11 = vpop.permute.xlu0 %5183 }
0x2e6d   :  { %v7501_v10 = vpop.eup %7500 }
0x2e6e   :  { %v5018_v56 = vmul.f32 %v7501_v10, %v7497_v44 }
0x2e70   :  { %7071 = vmatmul.mubr.msk.f32.vlgmr.msra.gmra.mxu1 %vm3625_vm14, %v5018_v56 }
0x2e71   :  { %v7503_v0 = vpop.eup %7502  ;;  %7079 = vmatpush3.msra.mxu1 %v5184_v11  ;;  %7080 = vmatprep.mubr.msk.f32.mxu1 %vm7615_vm11, %v7614_v8 }
0x2e72   :  { %v5181_v63 = vmul.f32 %v7503_v0, %v7499_v45  ;;  %7089 = vmatprep.subr.bf16.mxu1 %v7614_v8  ;;  %v7299_v0 = vld [vmem:[%s8927_s5 + $0x18] sm:$0xff]  }
0x2e74   :  { %7081 = vmatmul.mubr.msk.f32.vlgmr.msra.gmra.mxu1 %vm3625_vm14, %v5181_v63 }
0x2e75   :  { %7091 = vmatprep.mubr.msk.bf16.mxu1 %vm7615_vm11, %v7614_v8  ;;  %7090 = vmatpush3.bf16.msra.mxu1 %v7296_v46 }
0x2e76   :  { %7100 = vmatprep.subr.mxu1 %v7614_v8 }
0x2f30   :  { %v5088_v52 = vpop.f32.mrf.mxu1 }
0x2f31   :  { %v5092_v54 = vpack.c.bf16 %v5088_v52, %v5088_v52 }
0x2f32   :  { %v7072_v3 = vpop.f32.mrf.mxu1 }
0x2f33   :  { %7092 = vmatmul.mubr.msk.bf16.vlgmr.msra.gmra.mxu1 %vm636_vm2, %v5092_v54 }
0x2f34   :  { %v5255_v2 = vpop.f32.mrf.mxu1  ;;  %7102 = vmatprep.mubr.msk.f32.mxu1 %vm7615_vm11, %v7614_v8 }
0x2f35   :  { %v5259_v41 = vpack.c.bf16 %v5255_v2, %v5255_v2 }
0x2f36   :  { %v7082_v43 = vpop.f32.mrf.mxu1 }
0x2f37   :  { %7086 = vmatmul.mubr.msk.bf16.vlgmr.msra.gmra.mxu0 %vm636_vm2, %v5259_v41 }
0x2f38   :  { %7096 = vmatpush3.xpose.msk.msra.mxu0 %vm636_vm2, %v5361_v58  ;;  %7097 = vmatprep.mubr.msk.f32.mxu0 %vm7615_vm11, %v7614_v8 }
0x2f39   :  { %7105 = vmatprep.subr.bf16.mxu0 %v7614_v8 }
0x2f3f   :  { %7098 = vmatmul.mubr.msk.f32.vlgmr.msra.gmra.mxu0 %vm636_vm2, %v5359_v62 }
0x2f40   :  { %7107 = vmatprep.mubr.msk.bf16.mxu0 %vm7615_vm11, %v7614_v8  ;;  %7106 = vmatpush3.bf16.msra.mxu0 %v7298_v33  ;;  %v7315_v33 = vld [vmem:[%s8932_s11 + $0x30] sm:$0xff]  }
0x2f41   :  { %7121 = vmatprep.subr.bf16.mxu0 %v7614_v8 }
0x2ff3   :  { %v5352_v13 = vpop.f32.mrf.mxu1 }
0x2ff5   :  { %v7093_v4 = vpop.f32.mrf.mxu1 }
0x2ff7   :  { %v5303_v55 = vpop.f32.mrf.mxu0  ;;  %v5355_v57 = vpop.f32.mrf.mxu1 }
0x2ff8   :  { %v5353_v49 = vadd.f32 %v5352_v13, %v5303_v55 }
0x2ff9   :  { %v7087_v6 = vpop.f32.mrf.mxu0  ;;  %v7094_v16 = vpop.f32.mrf.mxu1 }
0x2ffb   :  { %v5306_v59 = vpop.f32.mrf.mxu0 }
0x2ffd   :  { %v7088_v17 = vpop.f32.mrf.mxu0 }
0x2fff   :  { %v5432_v19 = vpop.f32.mrf.mxu0 }
0x3000   :  { %v5433_v15 = vadd.f32 %v5432_v19, %v4751_v12 }
0x3001   :  { %v7099_v21 = vpop.f32.mrf.mxu0 }
0x3002   :  { %v5436_v23 = vsel %vm3625_vm14, %v5433_v15, -inf }
0x3003   :  { %5437 = vmax.xlane.f32.xlu1 %v5436_v23 }
0x3014   :  { %5576 = vrot.lane.b32.xlu1 %v8685_v22, %s7618_s19 }
0x3018   :  { %5574 = vrot.lane.b32.xlu1 %v8695_v9, %s7611_s9 }
0x308c   :  { %v5438_v24 = vpop.xlane.xlu1 %5437 }
0x308d   :  { %v5439_v27 = vsub.f32 %v5433_v15, %v5438_v24 }
0x308f   :  { %v5440_v61 = vmul.f32 1.442695, %v5439_v27 }
0x3090   :  { %v5577_v9 = vpop.permute.xlu1 %5576 }
0x3091   :  { %7504 = vpow2.f32 %v5440_v61  ;;  %v6449_v61 = vld [vmem:[%s8930_s13] ss:$0 sm:$0xff] }
0x3094   :  { %v5575_v30 = vpop.permute.xlu1 %5574 }
0x309e   :  { %v7505_v28 = vpop.eup %7504 }
0x309f   :  { %v5442_v29 = vsel %vm3625_vm14, %v7505_v28, 0.0 }
0x30a0   :  { %5443 = vadd.xlane.f32.xlu0 %v5442_v29  ;;  %v6450_v29 = vld [vmem:[%s8931_s17] ss:$0 sm:$0xff] }
0x30b6   :  { %5447 = vrot.lane.b32.xlu0 %v8687_v7, %s7609_s0  ;;  %s8928_s0 = sld [smem:[#allocation45_spill]] }
0x30bc   :  { %v6448_v3 = vld [vmem:[%s8928_s0] ss:$0 sm:$0xff] }
0x3129   :  { %v5444_v25 = vpop.xlane.xlu0 %5443 }
0x312a   :  { %7506 = vrcp.f32 %v5444_v25 }
0x312d   :  { %v5448_v26 = vpop.permute.xlu0 %5447 }
0x312e   :  { %7101 = vmatpush3.msra.mxu1 %v5448_v26 }
0x312f   :  { %7111 = vmatprep.subr.mxu1 %v7614_v8 }
0x3137   :  { %v7507_v22 = vpop.eup %7506 }
0x3138   :  { %v5446_v32 = vmul.f32 %v7507_v22, %v7505_v28 }
0x313a   :  { %7103 = vmatmul.mubr.msk.f32.vlgmr.msra.gmra.mxu1 %vm3625_vm14, %v5446_v32  ;;  %v7313_v32 = vld [vmem:[%s8932_s11 + $0x38] sm:$0xff]  }
0x313b   :  { %7112 = vmatpush3.xpose.msk.msra.mxu1 %vm636_vm2, %v5577_v9  ;;  %7113 = vmatprep.mubr.msk.f32.mxu1 %vm7615_vm11, %v7614_v8  ;;  %v7312_v9 = vld [vmem:[%s8932_s11 + $0x78] sm:$0xff]  }
0x313c   :  { %7116 = vmatprep.subr.mxu1 %v7614_v8 }
0x313e   :  { %7114 = vmatmul.mubr.msk.f32.vlgmr.msra.gmra.mxu1 %vm636_vm2, %v5575_v30  ;;  %v7314_v30 = vld [vmem:[%s8932_s11 + $0x70] sm:$0xff]  }
0x313f   :  { %7118 = vmatprep.mubr.msk.f32.mxu1 %vm7615_vm11, %v7614_v8 }
0x31fa   :  { %v5519_v34 = vpop.f32.mrf.mxu1 }
0x31fb   :  { %v5523_v36 = vpack.c.bf16 %v5519_v34, %v5519_v34  ;;  %v7316_v34 = vld [vmem:[%s8932_s11 + $0x68] sm:$0xff]  }
0x31fc   :  { %v7104_v31 = vpop.f32.mrf.mxu1 }
0x31fd   :  { %7108 = vmatmul.mubr.msk.bf16.vlgmr.msra.gmra.mxu0 %vm636_vm2, %v5523_v36  ;;  %v7317_v36 = vld [vmem:[%s8932_s11 + $0x28] sm:$0xff]   ;;  %v7318_v31 = vld [vmem:[%s8932_s11 + $0x60] sm:$0xff]  }
0x31fe   :  { %v5648_v35 = vpop.f32.mrf.mxu1  ;;  %7123 = vmatprep.mubr.msk.bf16.mxu0 %vm7615_vm11, %v7614_v8  ;;  %7122 = vmatpush3.bf16.msra.mxu0 %v7299_v0 }
0x31ff   :  { %v5649_v38 = vadd.f32 %v5648_v35, %v4752_v37  ;;  %6695 = vmatprep.subr.bf16.mxu0 %v7312_v9  ;;  %v7319_v37 = vld [vmem:[%s8932_s11 + $0x20] sm:$0xff]   ;;  %v7320_v35 = vld [vmem:[%s8932_s11 + $0x58] sm:$0xff]  }
0x3200   :  { %v7115_v39 = vpop.f32.mrf.mxu1 }
0x3201   :  { %v5652_v53 = vsel %vm3625_vm14, %v5649_v38, -inf  ;;  %v7322_v39 = vld [vmem:[%s8932_s11 + $0x50] sm:$0xff]  }
0x3202   :  { %5653 = vmax.xlane.f32.xlu0 %v5652_v53  ;;  %v7323_v53 = vld [vmem:[%s8932_s11 + $0x10] sm:$0xff]  }
0x3218   :  { %5663 = vrot.lane.b32.xlu0 %v8687_v7, %s7611_s9  ;;  %s8929_s9 = sld [smem:[#allocation48_spill]] }
0x321e   :  { %v7300_v6 = vld [vmem:[%s8929_s9 + $0x30] ss:$8 sps:$4 sm:$0xff]   ;;  %v7305_v16 = vld [vmem:[%s8929_s9 + $0x24] ss:$8 sps:$4 sm:$0xff]   ;;  %v7303_v59 = vld [vmem:[%s8929_s9 + $0x20] ss:$8 sps:$4 sm:$0xff]  }
0x321f   :  { %v7308_v17 = vld [vmem:[%s8929_s9 + $0x14] ss:$8 sps:$4 sm:$0xff]   ;;  %v7306_v12 = vld [vmem:[%s8929_s9 + $0x10] ss:$8 sps:$4 sm:$0xff]   ;;  %v7311_v19 = vld [vmem:[%s8929_s9 + $0x4] ss:$8 sps:$4 sm:$0xff]  }
0x3220   :  { %v7309_v15 = vld [vmem:[%s8929_s9] ss:$8 sps:$4 sm:$0xff]  }
0x328b   :  { %v5654_v40 = vpop.xlane.xlu0 %5653 }
0x328c   :  { %v5655_v14 = vsub.f32 %v5649_v38, %v5654_v40  ;;  %v7321_v38 = vld [vmem:[%s8932_s11 + $0x18] sm:$0xff]   ;;  %v7324_v40 = vld [vmem:[%s8932_s11 + $0x48] sm:$0xff]  }
0x328e   :  { %v5656_v42 = vmul.f32 1.442695, %v5655_v14  ;;  %v7325_v14 = vld [vmem:[%s8932_s11 + $0x8] sm:$0xff]  }
0x328f   :  { %v5664_v44 = vpop.permute.xlu0 %5663 }
0x3290   :  { %7508 = vpow2.f32 %v5656_v42  ;;  %7117 = vmatpush3.msra.mxu1 %v5664_v44  ;;  %v7326_v42 = vld [vmem:[%s8932_s11 + $0x40] sm:$0xff]  }
0x3291   :  { %v7327_v44 = vld [vmem:[%s8932_s11] sm:$0xff]  }
0x329d   :  { %v7509_v60 = vpop.eup %7508 }
0x329e   :  { %v5658_v45 = vsel %vm3625_vm14, %v7509_v60, 0.0 }
0x329f   :  { %5659 = vadd.xlane.f32.xlu1 %v5658_v45 }
0x32bd   :  { %v5567_v8 = vpop.f32.mrf.mxu0 }
0x32be   :  { %v5573_v18 = vadd.f32 %v5567_v8, %v5353_v49  ;;  %v7302_v49 = vld [vmem:[%s8929_s9 + $0x34] ss:$8 sps:$4 sm:$0xff]  }
0x32bf   :  { %v7109_v1 = vpop.f32.mrf.mxu0  ;;  %5888 = vmatprep.subr.bf16.mxu1 %v7302_v49 }
0x32c1   :  { %v5570_v51 = vpop.f32.mrf.mxu0 }
0x32c3   :  { %v7110_v10 = vpop.f32.mrf.mxu0 }
0x3328   :  { %v5660_v56 = vpop.xlane.xlu1 %5659 }
0x3329   :  { %7510 = vrcp.f32 %v5660_v56 }
0x3336   :  { %v7511_v7 = vpop.eup %7510 }
0x3337   :  { %v5662_v11 = vmul.f32 %v7511_v7, %v7509_v60  ;;  %v4772_v60 = vld [vmem:[%s8933_s16] sm:$0x3] }
0x3338   :  { %v5830_v45 = vrot.slane %v4772_v60, %v8516_v47  ;;  %v5834_v8 = vrot.slane %v4772_v60, %v8529_v5 }
0x3339   :  { %7119 = vmatmul.mubr.msk.f32.vlgmr.msra.gmra.mxu1 %vm3625_vm14, %v5662_v11 }
0x333a   :  { %5912 = vmatprep.mubr.bf16.mxu1 %v7617_v48  ;;  %5889 = vmatpush1.bf16.msra.mxu1 %v7300_v6 }
0x333b   :  { %5890 = vmatprep.subr.bf16.mxu1 %v7305_v16 }
0x333e   :  { %5891 = vmatpush1.bf16.msra.mxu1 %v7303_v59 }
0x333f   :  { %5892 = vmatprep.subr.bf16.mxu1 %v7308_v17 }
0x3342   :  { %5893 = vmatpush1.bf16.msra.mxu1 %v7306_v12 }
0x3343   :  { %5894 = vmatprep.subr.bf16.mxu1 %v7311_v19 }
0x3346   :  { %5895 = vmatpush1.bf16.msra.mxu1 %v7309_v15 }
0x33f9   :  { %v5735_v63 = vpop.f32.mrf.mxu1 }
0x33fa   :  { %v5739_v46 = vpack.c.bf16 %v5735_v63, %v5735_v63 }
0x33fb   :  { %v7120_v50 = vpop.f32.mrf.mxu1 }
0x33fc   :  { %7124 = vmatmul.mubr.msk.bf16.vlgmr.msra.gmra.mxu0 %vm636_vm2, %v5739_v46 }
0x33fd   :  { %6696 = vmatpush3.bf16.msra.mxu0 %v7313_v32 }
0x33fe   :  { %6697 = vmatprep.subr.bf16.mxu0 %v7314_v30 }
0x3401   :  { %6698 = vmatpush3.bf16.msra.mxu0 %v7315_v33 }
0x3402   :  { %6699 = vmatprep.subr.bf16.mxu0 %v7316_v34 }
0x3405   :  { %6700 = vmatpush3.bf16.msra.mxu0 %v7317_v36 }
0x3406   :  { %6701 = vmatprep.subr.bf16.mxu0 %v7318_v31 }
0x3409   :  { %6702 = vmatpush3.bf16.msra.mxu0 %v7319_v37 }
0x340a   :  { %6703 = vmatprep.subr.bf16.mxu0 %v7320_v35 }
0x340d   :  { %6704 = vmatpush3.bf16.msra.mxu0 %v7321_v38 }
0x340e   :  { %6705 = vmatprep.subr.bf16.mxu0 %v7322_v39 }
0x3411   :  { %6706 = vmatpush3.bf16.msra.mxu0 %v7323_v53 }
0x3412   :  { %6707 = vmatprep.subr.bf16.mxu0 %v7324_v40 }
0x3415   :  { %6708 = vmatpush3.bf16.msra.mxu0 %v7325_v14 }
0x3416   :  { %6709 = vmatprep.subr.bf16.mxu0 %v7326_v42 }
0x3419   :  { %6710 = vmatpush3.bf16.msra.mxu0 %v7327_v44  ;;  %v6460_v44 = vld [vmem:[%s7928_s27] ss:$0 sm:$0xff]  ;;  %s7619_s27 = smov [#allocation2]  }
0x341a   :  { %s6156_s18 = sshll.u32 %s7619_s27, 4  ;;  %s6157_s18 = int_to_ptr.vmem [resolvable:$true] %s6156_s18 }
0x341b   :  { %s7524_s21 = scalar_lea.vmem %s6157_s18, 128  ;;  %p7529_p1 = scmp.lt.s32.totalorder %s6157_s18, %s6157_s18 }
0x341c   :  { %p7525_p0 = scmp.ne.s32.totalorder %s6157_s18, %s7524_s21  ;;  %p7530_p2 = scmp.lt.s32.totalorder %s7524_s21, %s7524_s21 }
0x341e   :  { %p7531_p3 = por %p7530_p2, %p7529_p1 }
0x3420   :  { %p7532_p4 = pnand %p7531_p3, %p7525_p0 }
0x34bc   :  { %v5783_v52 = vpop.f32.mrf.mxu0 }
0x34bd   :  { %v5789_v54 = vadd.f32 %v5783_v52, %v5573_v18 }
0x34be   :  { %v7125_v2 = vpop.f32.mrf.mxu0 }
0x34bf   :  { %v5790_v41 = vadd.f32 %v5789_v54, %v8662_v20 }
0x34c0   :  { %v5786_v43 = vpop.f32.mrf.mxu0 }
0x34c1   :  { %v8779_v58 = vadd.f32 %v6448_v3, %v5790_v41 }
0x34c2   :  { %v7126_v48 = vpop.f32.mrf.mxu0 }
0x34c3   :  { %v5798_v62 = vsel %vm3235_vm12, %v8779_v58, 0.0 }
0x34c4   :  { %5799 = vadd.xlane.f32.xlu1 %v5798_v62 }
0x354d   :  { %v5800_v13 = vpop.xlane.xlu1 %5799 }
0x354e   :  { %v5801_v4 = vmul.f32 0.015625, %v5800_v13 }
0x3550   :  { %v5802_v55 = vsub.f32 %v8779_v58, %v5801_v4 }
0x3552   :  { %v5803_v57 = vmul.f32 %v5802_v55, %v5802_v55 }
0x3554   :  { %v5804_v20 = vsel %vm3235_vm12, %v5803_v57, 0.0 }
0x3555   :  { %5805 = vadd.xlane.f32.xlu1 %v5804_v20 }
0x35de   :  { %v5806_v21 = vpop.xlane.xlu1 %5805 }
0x35df   :  { %v5807_v23 = vmul.f32 0.015625, %v5806_v21 }
0x35e1   :  { %v5808_v24 = vadd.f32 1e-05, %v5807_v23 }
0x35e3   :  { %7512 = vrsqrt.f32 %v5808_v24 }
0x35f0   :  { %v7513_v27 = vpop.eup %7512 }
0x35f1   :  { %v5810_v28 = vmul.f32 %v7513_v27, %v5802_v55 }
0x35f3   :  { %v5817_v25 = vmul.f32 %v6449_v61, %v5810_v28 }
0x35f5   :  { %v5824_v26 = vadd.f32 %v6450_v29, %v5817_v25 }
0x35f7   :  { %v5825_v22 = vpack.c.bf16 %v5824_v26, %v5824_v26 }
0x35f9   :  { %6459 = vmatmul.mubr.msk.bf16.vlgmr.msra.gmra.mxu1 %vm3235_vm12, %v5825_v22 }
0x36b9   :  { %v5914_v18 = vpop.f32.mrf.mxu1 }
0x36ba   :  { %v5915_v1 = vadd.f32 %v5914_v18, %v5830_v45 }
0x36bb   :  { %v5916_v51 = vpop.f32.mrf.mxu1 }
0x36bc   :  { %v5921_v10 = vmul.f32 0.70710677, %v5915_v1  ;;  %v5917_v56 = vadd.f32 %v5916_v51, %v5834_v8  ;;  %v5969_v31 = vmul.f32 0.5, %v5915_v1 }
0x36bd   :  { %v5918_v7 = vpop.f32.mrf.mxu1 }
0x36be   :  { %v5923_v11 = vand.u32 2147483647, %v5921_v10  ;;  %v5922_v0 = vmul.f32 0.70710677, %v5917_v56  ;;  %vm5963_vm1 = vcmp.ge.f32.partialorder %v5921_v10, 0.0  ;;  %v5970_v35 = vmul.f32 0.5, %v5917_v56 }
0x36bf   :  { %v5919_v63 = vpop.f32.mrf.mxu1 }
0x36c0   :  { %v5925_v46 = vmul.f32 0.3275911, %v5923_v11  ;;  %v5924_v50 = vand.u32 2147483647, %v5922_v0  ;;  %v5951_v2 = vsub.f32 0.0, %v5923_v11  ;;  %vm5964_vm2 = vcmp.ge.f32.partialorder %v5922_v0, 0.0 }
0x36c2   :  { %v5927_v52 = vadd.f32 1.0, %v5925_v46  ;;  %v5926_v54 = vmul.f32 0.3275911, %v5924_v50  ;;  %v5952_v47 = vsub.f32 0.0, %v5924_v50  ;;  %v5953_v41 = vmul.f32 %v5951_v2, %v5923_v11 }
0x36c4   :  { %7514 = vrcp.f32 %v5927_v52  ;;  %v5928_v3 = vadd.f32 1.0, %v5926_v54  ;;  %v5954_v43 = vmul.f32 %v5952_v47, %v5924_v50  ;;  %v5955_v62 = vmul.f32 1.442695, %v5953_v41  ;;  %v6478_v47 = vld [vmem:[%s7938_s6] ss:$0 sm:$0xff] }
0x36c6   :  { %7516 = vrcp.f32 %v5928_v3  ;;  %v5957_v55 = vmul.f32 1.442695, %v5954_v43  ;;  %v6477_v3 = vld [vmem:[%s7933_s4] ss:$0 sm:$0xff] }
0x36c7   :  { %7518 = vpow2.f32 %v5955_v62 }
0x36c8   :  { %7520 = vpow2.f32 %v5957_v55 }
0x36d1   :  { %v7515_v5 = vpop.eup %7514 }
0x36d2   :  { %v5933_v48 = vmul.f32 1.0614054, %v7515_v5 }
0x36d3   :  { %v7517_v13 = vpop.eup %7516 }
0x36d4   :  { %v5935_v4 = vadd.f32 -1.4531521, %v5933_v48  ;;  %v5934_v57 = vmul.f32 1.0614054, %v7517_v13  ;;  %v7519_v61 = vpop.eup %7518 }
0x36d5   :  { %v7521_v26 = vpop.eup %7520 }
0x36d6   :  { %v5937_v20 = vmul.f32 %v7515_v5, %v5935_v4  ;;  %v5936_v49 = vadd.f32 -1.4531521, %v5934_v57 }
0x36d8   :  { %v5939_v6 = vadd.f32 1.4214138, %v5937_v20  ;;  %v5938_v16 = vmul.f32 %v7517_v13, %v5936_v49 }
0x36da   :  { %v5941_v59 = vmul.f32 %v7515_v5, %v5939_v6  ;;  %v5940_v17 = vadd.f32 1.4214138, %v5938_v16 }
0x36dc   :  { %v5943_v12 = vadd.f32 -0.28449672, %v5941_v59  ;;  %v5942_v19 = vmul.f32 %v7517_v13, %v5940_v17 }
0x36de   :  { %v5945_v15 = vmul.f32 %v7515_v5, %v5943_v12  ;;  %v5944_v21 = vadd.f32 -0.28449672, %v5942_v19 }
0x36e0   :  { %v5947_v23 = vadd.f32 0.2548296, %v5945_v15  ;;  %v5946_v24 = vmul.f32 %v7517_v13, %v5944_v21 }
0x36e2   :  { %v5949_v27 = vmul.f32 %v7515_v5, %v5947_v23  ;;  %v5948_v28 = vadd.f32 0.2548296, %v5946_v24 }
0x36e4   :  { %v5959_v29 = vmul.f32 %v7519_v61, %v5949_v27  ;;  %v5950_v25 = vmul.f32 %v7517_v13, %v5948_v28 }
0x36e6   :  { %v5961_v22 = vsub.f32 1.0, %v5959_v29  ;;  %v5960_v9 = vmul.f32 %v7521_v26, %v5950_v25 }
0x36e8   :  { %v5965_v32 = vsub.f32 0.0, %v5961_v22  ;;  %v5962_v30 = vsub.f32 1.0, %v5960_v9 }
0x36ea   :  { %v5967_v33 = vsel %vm5963_vm1, %v5961_v22, %v5965_v32  ;;  %v5966_v36 = vsub.f32 0.0, %v5962_v30 }
0x36eb   :  { %v5971_v34 = vadd.f32 1.0, %v5967_v33 }
0x36ec   :  { %v5968_v37 = vsel %vm5964_vm2, %v5962_v30, %v5966_v36 }
0x36ed   :  { %v5972_v38 = vadd.f32 1.0, %v5968_v37  ;;  %v5973_v39 = vmul.f32 %v5971_v34, %v5969_v31 }
0x36ef   :  { %v5974_v53 = vmul.f32 %v5972_v38, %v5970_v35  ;;  %v5975_v14 = vpack.c.bf16 %v5973_v39, %v5973_v39 }
0x36f1   :  { %v5976_v40 = vpack.c.bf16 %v5974_v53, %v5974_v53 }
0x36f3   :  { %6111 = vmatprep.mubr.bf16.mxu0 %v5976_v40 }
0x36f4   :  { %6112 = vmatmul.mubr.bf16.vlgmr.msra.gmra.mxu0 %v5975_v14 }
0x37b4   :  { %v6711_v42 = vpop.f32.mrf.mxu0 }
0x37b6   :  { %v6712_v60 = vpop.f32.mrf.mxu0 }
0x37b7   :  { %v6713_v45 = vadd.f32 %v6712_v60, %v6711_v42 }
0x37b8   :  { %v6714_v8 = vpop.f32.mrf.mxu0 }
0x37b9   :  { %v6114_v18 = vadd.f32 %v6713_v45, %v6460_v44 }
0x37ba   :  { %v6715_v51 = vpop.f32.mrf.mxu0 }
0x37bb   :  { %v6119_v10 = vadd.f32 %v6114_v18, %v8779_v58 }
0x37bd   :  { %v6122_v1 = vsel %vm3235_vm12, %v6119_v10, 0.0 }
0x37be   :  { %6123 = vadd.xlane.f32.xlu1 %v6122_v1 }
0x3847   :  { %v6124_v56 = vpop.xlane.xlu1 %6123 }
0x3848   :  { %v6125_v7 = vmul.f32 0.015625, %v6124_v56 }
0x384a   :  { %v6126_v11 = vsub.f32 %v6119_v10, %v6125_v7 }
0x384c   :  { %v6127_v0 = vmul.f32 %v6126_v11, %v6126_v11 }
0x384e   :  { %v6128_v63 = vsel %vm3235_vm12, %v6127_v0, 0.0 }
0x384f   :  { %6129 = vadd.xlane.f32.xlu1 %v6128_v63 }
0x38d8   :  { %v6130_v46 = vpop.xlane.xlu1 %6129 }
0x38d9   :  { %v6131_v50 = vmul.f32 0.015625, %v6130_v46 }
0x38db   :  { %v6132_v52 = vadd.f32 1e-05, %v6131_v50 }
0x38dd   :  { %7522 = vrsqrt.f32 %v6132_v52 }
0x38ea   :  { %v7523_v54 = vpop.eup %7522 }
0x38eb   :  { %v6134_v2 = vmul.f32 %v7523_v54, %v6126_v11 }
0x38ed   :  { %v6141_v58 = vmul.f32 %v6477_v3, %v6134_v2 }
0x38ef   :  { %v6148_v41 = vadd.f32 %v6478_v47, %v6141_v58 }
0x38f1   :  { %6149 = vst.msk [vmem:[#allocation2] sm:$0xff] %vm3235_vm12, %v6148_v41 }
0x38f2   :  { %7535 = shalt.err (!%p7532_p4)
}
0x38f3   :  { %6159 = dma.vmem_to_hbm [thread:$0]  %s6157_s18, 128, %s7943_s20, [#allocation3]  }
0x38f4   :  { %7544 = dma.done.wait [#allocation3], 128  }
0x38f5   :  { %7545 = vsyncadd [#allocation3], 4294967168 }
0x38f6   :  { %6163 = vsyncpa [#allocation3], 1 }

</bundles_post_ra>
